<compile_context>
chip_gen: v7x
topology: tpu7x:2x2x1
jax: 0.10.0
libtpu: 0.0.40
codegen_flags: <defaults>
</compile_context>

<pallas_src>
import functools

import numpy as np
import jax
import jax.numpy as jnp
from jax.experimental import pallas as pl
from jax.experimental.pallas import tpu as pltpu


def _round_up(v, m):
    return (v + m - 1) // m * m


# ----------------------------------------------------------------------------
# Bicubic upsample (torch nn.Upsample(mode='bicubic', align_corners=False)):
# cubic kernel A=-0.75, src = (dst + 0.5)/scale - 0.5, clamped borders.
# Separable -> two interpolation-matrix matmuls, each run as a lane-dense
# row-tiled Pallas matmul over a flattened slab.
# ----------------------------------------------------------------------------
_A_CUBIC = -0.75


def _cubic_coeffs(t, a=_A_CUBIC):
    def c1(x):  # |x| <= 1
        return ((a + 2.0) * x - (a + 3.0)) * x * x + 1.0

    def c2(x):  # 1 < |x| < 2
        return ((a * x - 5.0 * a) * x + 8.0 * a) * x - 4.0 * a

    return np.array([c2(t + 1.0), c1(t), c1(1.0 - t), c2(2.0 - t)], dtype=np.float64)


def _bicubic_matrix(in_size, out_size):
    """(out_size, in_size) interpolation matrix reproducing torch bicubic."""
    scale = in_size / out_size
    m = np.zeros((out_size, in_size), dtype=np.float64)
    for o in range(out_size):
        real = (o + 0.5) * scale - 0.5
        idx = int(np.floor(real))
        t = real - idx
        coeffs = _cubic_coeffs(t)
        for k in range(4):
            src = min(max(idx - 1 + k, 0), in_size - 1)
            m[o, src] += coeffs[k]
    return m.astype(np.float32)


def _rows_mm_kernel(x_ref, m_ref, o_ref):
    o_ref[...] = jnp.dot(
        x_ref[...], m_ref[...], preferred_element_type=jnp.float32
    ).astype(o_ref.dtype)


def _rows_matmul(x2d, m, *, max_tile=512):
    """(R, K) @ (K, N): R tiled across a parallel grid, RHS resident in VMEM."""
    r, k = x2d.shape
    n_out = m.shape[1]
    tile = min(max_tile, _round_up(r, 8))
    rp = _round_up(r, tile)
    if rp != r:
        x2d = jnp.pad(x2d, ((0, rp - r), (0, 0)))
    out = pl.pallas_call(
        _rows_mm_kernel,
        out_shape=jax.ShapeDtypeStruct((rp, n_out), x2d.dtype),
        grid=(rp // tile,),
        in_specs=[
            pl.BlockSpec((tile, k), lambda i: (i, 0)),
            pl.BlockSpec((k, n_out), lambda i: (0, 0)),   # resident
        ],
        out_specs=pl.BlockSpec((tile, n_out), lambda i: (i, 0)),
        compiler_params=pltpu.CompilerParams(
            dimension_semantics=("parallel",),
            vmem_limit_bytes=32 * 1024 * 1024,
        ),
    )(x2d, m)
    return out[:r]


def bicubic_upsample(x_nchw, factor):
    n, c, h, w = x_nchw.shape
    ho, wo = h * factor, w * factor
    mw_t = jnp.asarray(_bicubic_matrix(w, wo).T)   # (W, Wo)
    mh_t = jnp.asarray(_bicubic_matrix(h, ho).T)   # (H, Ho)

    # Width pass: single lane-dense matmul over the flattened (N*C*H, W) slab.
    yw = _rows_matmul(x_nchw.reshape(n * c * h, w), mw_t)        # (N*C*H, Wo)
    yw = yw.reshape(n * c, h, wo)

    # Height pass: transpose so H is the contraction dim, then one matmul.
    xh = jnp.transpose(yw, (0, 2, 1)).reshape(n * c * wo, h)     # (N*C*Wo, H)
    yh = _rows_matmul(xh, mh_t)                                  # (N*C*Wo, Ho)
    y = jnp.transpose(yh.reshape(n * c, wo, ho), (0, 2, 1))
    return y.reshape(n, c, ho, wo)


# ----------------------------------------------------------------------------
# Convolutions as channel-major im2col matmuls.
#   patches: (N, K, HW_pad)   weight: (Cout, K)   output: (N, Cout, HW_pad)
# Spatial axis tiled (grid=(N, HW/TILE)); weights resident; conv1+relu and
# conv2(1x1)+relu fused in one kernel; conv3 emits a lane-dense (3, TILE) block.
# ----------------------------------------------------------------------------
_CONV_VMEM_LIMIT = 32 * 1024 * 1024  # tiles sized well below this, so the same
                                     # budget also fits v7x's 64 MiB physical VMEM.


def _conv_tile(hw, max_tile=2048):
    tile = min(max_tile, _round_up(hw, 128))
    return tile, _round_up(hw, tile)


def _im2col_cm(x_nchw, kh, kw, pad, k_pad, hw_pad, dtype):
    """Channel-major im2col: (N, Cin*KH*KW -> k_pad, H*W -> hw_pad)."""
    n, c, h, w = x_nchw.shape
    xp = jnp.pad(x_nchw, ((0, 0), (0, 0), (pad, pad), (pad, pad)))
    taps = [xp[:, :, dy:dy + h, dx:dx + w] for dy in range(kh) for dx in range(kw)]
    p = jnp.stack(taps, axis=2)                       # (N, C, KH*KW, H, W)
    p = p.reshape(n, c * kh * kw, h * w)              # matches torch weight order
    k = c * kh * kw
    p = jnp.pad(p, ((0, 0), (0, k_pad - k), (0, hw_pad - h * w)))
    return p.astype(dtype)


def _prep_weight(w, k_pad=None, dtype=jnp.bfloat16):
    cout = w.shape[0]
    k = int(np.prod(w.shape[1:]))
    wm = w.reshape(cout, k)
    if k_pad is not None and k_pad > k:
        wm = jnp.pad(wm, ((0, 0), (0, k_pad - k)))
    return wm.astype(dtype)


def _conv12_kernel(p_ref, w1_ref, b1_ref, w2_ref, b2_ref, o_ref):
    # p: (1, K1, T) bf16; w1: (64, K1) bf16; w2: (32, 64) bf16; biases (C,1) f32.
    h1 = jnp.dot(w1_ref[...], p_ref[0], preferred_element_type=jnp.float32)
    h1 = jnp.maximum(h1 + b1_ref[...], 0.0)                       # (64, T) f32
    h2 = jnp.dot(w2_ref[...], h1.astype(jnp.bfloat16),
                 preferred_element_type=jnp.float32)
    h2 = jnp.maximum(h2 + b2_ref[...], 0.0)                       # (32, T) f32
    o_ref[0] = h2.astype(o_ref.dtype)


def _conv3_kernel(p_ref, w_ref, b_ref, o_ref):
    acc = jnp.dot(w_ref[...], p_ref[0], preferred_element_type=jnp.float32)
    o_ref[0] = (acc + b_ref[...]).astype(o_ref.dtype)             # (3, T)


def _conv_pallas(kernel, patches, weights_and_biases, cout, out_dtype, tile):
    n, kdim, hwp = patches.shape
    specs = [pl.BlockSpec((1, kdim, tile), lambda i, j: (i, 0, j))]
    for arr in weights_and_biases:                 # full-array resident blocks
        specs.append(pl.BlockSpec(arr.shape, lambda i, j: (0, 0)))
    return pl.pallas_call(
        kernel,
        out_shape=jax.ShapeDtypeStruct((n, cout, hwp), out_dtype),
        grid=(n, hwp // tile),
        in_specs=specs,
        out_specs=pl.BlockSpec((1, cout, tile), lambda i, j: (i, 0, j)),
        compiler_params=pltpu.CompilerParams(
            dimension_semantics=("parallel", "parallel"),
            vmem_limit_bytes=_CONV_VMEM_LIMIT,
        ),
    )(patches, *weights_and_biases)


# ----------------------------------------------------------------------------
# SuperResolutionNet: upsample -> conv1(9x9,p4)+relu -> conv2(1x1)+relu -> conv3(5x5,p2)
# ----------------------------------------------------------------------------
def init_params(key):
    ks = jax.random.split(key, 6)

    def conv_init(kw_, kb_, cout, cin, k):
        fan_in = cin * k * k
        bound = 1.0 / np.sqrt(fan_in)
        w = jax.random.uniform(kw_, (cout, cin, k, k), jnp.float32, -bound, bound)
        b = jax.random.uniform(kb_, (cout,), jnp.float32, -bound, bound)
        return w, b

    w1, b1 = conv_init(ks[0], ks[1], 64, 3, 9)
    w2, b2 = conv_init(ks[2], ks[3], 32, 64, 1)
    w3, b3 = conv_init(ks[4], ks[5], 3, 32, 5)
    return dict(w1=w1, b1=b1, w2=w2, b2=b2, w3=w3, b3=b3)


def super_resolution_forward(params, x_nchw, upscale_factor):
    n, cin, h, w = x_nchw.shape
    ho, wo = h * upscale_factor, w * upscale_factor
    hw = ho * wo
    tile, hw_pad = _conv_tile(hw)

    x_up = bicubic_upsample(x_nchw, upscale_factor)               # (N, 3, Ho, Wo) f32

    # conv1 (9x9, pad 4) + ReLU, fused with conv2 (1x1) + ReLU.
    k1 = cin * 9 * 9                                              # 243
    k1p = _round_up(k1, 128)                                      # 256, MXU-aligned
    p1 = _im2col_cm(x_up, 9, 9, 4, k1p, hw_pad, jnp.bfloat16)     # (N, 256, HWp)
    w1m = _prep_weight(params["w1"], k1p)                         # (64, 256) bf16
    w2m = _prep_weight(params["w2"])                              # (32, 64)  bf16
    b1 = params["b1"].reshape(-1, 1).astype(jnp.float32)
    b2 = params["b2"].reshape(-1, 1).astype(jnp.float32)
    c_mid = w2m.shape[0]
    h12 = _conv_pallas(_conv12_kernel, p1, (w1m, b1, w2m, b2),
                       cout=c_mid, out_dtype=jnp.bfloat16, tile=tile)
    h12 = h12[:, :, :hw].reshape(n, c_mid, ho, wo)                # (N, 32, Ho, Wo)

    # conv3 (5x5, pad 2), no activation; channel-major -> lane-dense stores.
    k3 = c_mid * 5 * 5                                            # 800 (8-aligned)
    p3 = _im2col_cm(h12, 5, 5, 2, k3, hw_pad, jnp.bfloat16)       # (N, 800, HWp)
    w3m = _prep_weight(params["w3"])                              # (3, 800) bf16
    b3 = params["b3"].reshape(-1, 1).astype(jnp.float32)
    out = _conv_pallas(_conv3_kernel, p3, (w3m, b3),
                       cout=3, out_dtype=jnp.float32, tile=tile)  # (N, 3, HWp)
    return out[:, :, :hw].reshape(n, 3, ho, wo)


if __name__ == "__main__":
    key = jax.random.PRNGKey(0)
    k_in, k_par = jax.random.split(key)

    # Small example consistent with the module: NCHW, 3 input channels.
    x = jax.random.normal(k_in, (2, 3, 16, 16), dtype=jnp.float32)
    params = init_params(k_par)

    upscale_factor = 2
    fwd = jax.jit(functools.partial(super_resolution_forward,
                                    upscale_factor=upscale_factor))
    out = fwd(params, x)
    jax.block_until_ready(out)

    assert out.shape == (2, 3, 16 * upscale_factor, 16 * upscale_factor), out.shape
    assert out.dtype == jnp.float32
    print("KERNEL_OK")
</pallas_src>

<mosaic_0001>
module attributes {stable_mosaic.version = 11 : i64} {
  func.func @_rows_mm_kernel(%arg0: i32, %arg1: memref<96x16xf32, #tpu.memory_space<vmem>>, %arg2: memref<16x32xf32, #tpu.memory_space<vmem>>, %arg3: memref<96x32xf32, #tpu.memory_space<vmem>>) attributes {dimension_semantics = [#tpu.dimension_semantics<parallel>], iteration_bounds = array<i64: 1>, scalar_prefetch = 0 : i64, scratch_operands = 0 : i64, tpu.core_type = #tpu.core_type<tc>, window_params = [{transform_indices = @transform_0, window_bounds = array<i64: 96, 16>}, {pipeline_mode = #tpu.pipeline_mode<synchronous>, transform_indices = @transform_1, window_bounds = array<i64: 16, 32>}, {transform_indices = @transform_2, window_bounds = array<i64: 96, 32>}]} {
    %c0 = arith.constant 0 : index
    %c0_0 = arith.constant 0 : index
    %0 = vector.load %arg1[%c0, %c0_0] : memref<96x16xf32, #tpu.memory_space<vmem>>, vector<96x16xf32>
    %c0_1 = arith.constant 0 : index
    %c0_2 = arith.constant 0 : index
    %1 = vector.load %arg2[%c0_1, %c0_2] : memref<16x32xf32, #tpu.memory_space<vmem>>, vector<16x32xf32>
    %cst = arith.constant dense<0.000000e+00> : vector<96x32xf32>
    %2 = tpu.matmul %0, %1, %cst {dimension_numbers = #tpu.dot_dimension_numbers<[1], [0], [0], [1], [0, 0, 1, 1], [], []>} : vector<96x16xf32>, vector<16x32xf32>, vector<96x32xf32> -> vector<96x32xf32>
    %c0_3 = arith.constant 0 : index
    %c0_4 = arith.constant 0 : index
    %3 = vector.load %arg3[%c0_3, %c0_4] : memref<96x32xf32, #tpu.memory_space<vmem>>, vector<96x32xf32>
    tpu.vector_store %arg3[%c0_3, %c0_4], %2 {strides = array<i32>} : memref<96x32xf32, #tpu.memory_space<vmem>>, vector<96x32xf32>,
    return
  }
  func.func @transform_0(%arg0: i32) -> (i32, i32) {
    %c0_i32 = arith.constant 0 : i32
    %c0_i32_0 = arith.constant 0 : i32
    return %arg0, %c0_i32 : i32, i32
  }
  func.func @transform_1(%arg0: i32) -> (i32, i32) {
    %c0_i32 = arith.constant 0 : i32
    %c0_i32_0 = arith.constant 0 : i32
    %c0_i32_1 = arith.constant 0 : i32
    return %c0_i32, %c0_i32_0 : i32, i32
  }
  func.func @transform_2(%arg0: i32) -> (i32, i32) {
    %c0_i32 = arith.constant 0 : i32
    %c0_i32_0 = arith.constant 0 : i32
    return %arg0, %c0_i32 : i32, i32
  }
}

module attributes {stable_mosaic.version = 11 : i64} {
  func.func @_rows_mm_kernel(%arg0: i32, %arg1: memref<192x16xf32, #tpu.memory_space<vmem>>, %arg2: memref<16x32xf32, #tpu.memory_space<vmem>>, %arg3: memref<192x32xf32, #tpu.memory_space<vmem>>) attributes {dimension_semantics = [#tpu.dimension_semantics<parallel>], iteration_bounds = array<i64: 1>, scalar_prefetch = 0 : i64, scratch_operands = 0 : i64, tpu.core_type = #tpu.core_type<tc>, window_params = [{transform_indices = @transform_0, window_bounds = array<i64: 192, 16>}, {pipeline_mode = #tpu.pipeline_mode<synchronous>, transform_indices = @transform_1, window_bounds = array<i64: 16, 32>}, {transform_indices = @transform_2, window_bounds = array<i64: 192, 32>}]} {
    %c0 = arith.constant 0 : index
    %c0_0 = arith.constant 0 : index
    %0 = vector.load %arg1[%c0, %c0_0] : memref<192x16xf32, #tpu.memory_space<vmem>>, vector<192x16xf32>
    %c0_1 = arith.constant 0 : index
    %c0_2 = arith.constant 0 : index
    %1 = vector.load %arg2[%c0_1, %c0_2] : memref<16x32xf32, #tpu.memory_space<vmem>>, vector<16x32xf32>
    %cst = arith.constant dense<0.000000e+00> : vector<192x32xf32>
    %2 = tpu.matmul %0, %1, %cst {dimension_numbers = #tpu.dot_dimension_numbers<[1], [0], [0], [1], [0, 0, 1, 1], [], []>} : vector<192x16xf32>, vector<16x32xf32>, vector<192x32xf32> -> vector<192x32xf32>
    %c0_3 = arith.constant 0 : index
    %c0_4 = arith.constant 0 : index
    %3 = vector.load %arg3[%c0_3, %c0_4] : memref<192x32xf32, #tpu.memory_space<vmem>>, vector<192x32xf32>
    tpu.vector_store %arg3[%c0_3, %c0_4], %2 {strides = array<i32>} : memref<192x32xf32, #tpu.memory_space<vmem>>, vector<192x32xf32>,
    return
  }
  func.func @transform_0(%arg0: i32) -> (i32, i32) {
    %c0_i32 = arith.constant 0 : i32
    %c0_i32_0 = arith.constant 0 : i32
    return %arg0, %c0_i32 : i32, i32
  }
  func.func @transform_1(%arg0: i32) -> (i32, i32) {
    %c0_i32 = arith.constant 0 : i32
    %c0_i32_0 = arith.constant 0 : i32
    %c0_i32_1 = arith.constant 0 : i32
    return %c0_i32, %c0_i32_0 : i32, i32
  }
  func.func @transform_2(%arg0: i32) -> (i32, i32) {
    %c0_i32 = arith.constant 0 : i32
    %c0_i32_0 = arith.constant 0 : i32
    return %arg0, %c0_i32 : i32, i32
  }
}

module attributes {stable_mosaic.version = 11 : i64} {
  func.func @_conv12_kernel(%arg0: i32, %arg1: i32, %arg2: memref<1x256x1024xbf16, #tpu.memory_space<vmem>>, %arg3: memref<64x256xbf16, #tpu.memory_space<vmem>>, %arg4: memref<64x1xf32, #tpu.memory_space<vmem>>, %arg5: memref<32x64xbf16, #tpu.memory_space<vmem>>, %arg6: memref<32x1xf32, #tpu.memory_space<vmem>>, %arg7: memref<1x32x1024xbf16, #tpu.memory_space<vmem>>) attributes {dimension_semantics = [#tpu.dimension_semantics<parallel>, #tpu.dimension_semantics<parallel>], iteration_bounds = array<i64: 2, 1>, scalar_prefetch = 0 : i64, scratch_operands = 0 : i64, tpu.core_type = #tpu.core_type<tc>, window_params = [{transform_indices = @transform_0, window_bounds = array<i64: 1, 256, 1024>}, {pipeline_mode = #tpu.pipeline_mode<synchronous>, transform_indices = @transform_1, window_bounds = array<i64: 64, 256>}, {pipeline_mode = #tpu.pipeline_mode<synchronous>, transform_indices = @transform_2, window_bounds = array<i64: 64, 1>}, {pipeline_mode = #tpu.pipeline_mode<synchronous>, transform_indices = @transform_3, window_bounds = array<i64: 32, 64>}, {pipeline_mode = #tpu.pipeline_mode<synchronous>, transform_indices = @transform_4, window_bounds = array<i64: 32, 1>}, {transform_indices = @transform_5, window_bounds = array<i64: 1, 32, 1024>}]} {
    %c0 = arith.constant 0 : index
    %c0_0 = arith.constant 0 : index
    %0 = vector.load %arg3[%c0, %c0_0] : memref<64x256xbf16, #tpu.memory_space<vmem>>, vector<64x256xbf16>
    %c0_1 = arith.constant 0 : index
    %c0_2 = arith.constant 0 : index
    %c0_3 = arith.constant 0 : index
    %1 = vector.load %arg2[%c0_1, %c0_2, %c0_3] : memref<1x256x1024xbf16, #tpu.memory_space<vmem>>, vector<1x256x1024xbf16>
    %2 = vector.shape_cast %1 : vector<1x256x1024xbf16> to vector<256x1024xbf16>
    %cst = arith.constant dense<0.000000e+00> : vector<64x1024xf32>
    %3 = tpu.matmul %0, %2, %cst {dimension_numbers = #tpu.dot_dimension_numbers<[1], [0], [0], [1], [0, 0, 1, 1], [], []>} : vector<64x256xbf16>, vector<256x1024xbf16>, vector<64x1024xf32> -> vector<64x1024xf32>
    %c0_4 = arith.constant 0 : index
    %c0_5 = arith.constant 0 : index
    %4 = vector.load %arg4[%c0_4, %c0_5] : memref<64x1xf32, #tpu.memory_space<vmem>>, vector<64x1xf32>
    %5 = vector.broadcast %4 : vector<64x1xf32> to vector<64x1024xf32>
    %6 = arith.addf %3, %5 : vector<64x1024xf32>
    %cst_6 = arith.constant 0.000000e+00 : f32
    %7 = vector.broadcast %cst_6 : f32 to vector<64x1024xf32>
    %8 = arith.maximumf %6, %7 : vector<64x1024xf32>
    %c0_7 = arith.constant 0 : index
    %c0_8 = arith.constant 0 : index
    %9 = vector.load %arg5[%c0_7, %c0_8] : memref<32x64xbf16, #tpu.memory_space<vmem>>, vector<32x64xbf16>
    %10 = arith.truncf %8 : vector<64x1024xf32> to vector<64x1024xbf16>
    %cst_9 = arith.constant dense<0.000000e+00> : vector<32x1024xf32>
    %11 = tpu.matmul %9, %10, %cst_9 {dimension_numbers = #tpu.dot_dimension_numbers<[1], [0], [0], [1], [0, 0, 1, 1], [], []>} : vector<32x64xbf16>, vector<64x1024xbf16>, vector<32x1024xf32> -> vector<32x1024xf32>
    %c0_10 = arith.constant 0 : index
    %c0_11 = arith.constant 0 : index
    %12 = vector.load %arg6[%c0_10, %c0_11] : memref<32x1xf32, #tpu.memory_space<vmem>>, vector<32x1xf32>
    %13 = vector.broadcast %12 : vector<32x1xf32> to vector<32x1024xf32>
    %14 = arith.addf %11, %13 : vector<32x1024xf32>
    %cst_12 = arith.constant 0.000000e+00 : f32
    %15 = vector.broadcast %cst_12 : f32 to vector<32x1024xf32>
    %16 = arith.maximumf %14, %15 : vector<32x1024xf32>
    %17 = arith.truncf %16 : vector<32x1024xf32> to vector<32x1024xbf16>
    %c0_13 = arith.constant 0 : index
    %c0_14 = arith.constant 0 : index
    %c0_15 = arith.constant 0 : index
    %18 = vector.load %arg7[%c0_13, %c0_14, %c0_15] : memref<1x32x1024xbf16, #tpu.memory_space<vmem>>, vector<1x32x1024xbf16>
    %19 = vector.shape_cast %18 : vector<1x32x1024xbf16> to vector<32x1024xbf16>
    %20 = vector.shape_cast %17 : vector<32x1024xbf16> to vector<1x32x1024xbf16>
    tpu.vector_store %arg7[%c0_13, %c0_14, %c0_15], %20 {strides = array<i32>} : memref<1x32x1024xbf16, #tpu.memory_space<vmem>>, vector<1x32x1024xbf16>,
    return
  }
  func.func @transform_0(%arg0: i32, %arg1: i32) -> (i32, i32, i32) {
    %c0_i32 = arith.constant 0 : i32
    %c0_i32_0 = arith.constant 0 : i32
    return %arg0, %c0_i32, %arg1 : i32, i32, i32
  }
  func.func @transform_1(%arg0: i32, %arg1: i32) -> (i32, i32) {
    %c0_i32 = arith.constant 0 : i32
    %c0_i32_0 = arith.constant 0 : i32
    %c0_i32_1 = arith.constant 0 : i32
    return %c0_i32, %c0_i32_0 : i32, i32
  }
  func.func @transform_2(%arg0: i32, %arg1: i32) -> (i32, i32) {
    %c0_i32 = arith.constant 0 : i32
    %c0_i32_0 = arith.constant 0 : i32
    %c0_i32_1 = arith.constant 0 : i32
    return %c0_i32, %c0_i32_0 : i32, i32
  }
  func.func @transform_3(%arg0: i32, %arg1: i32) -> (i32, i32) {
    %c0_i32 = arith.constant 0 : i32
    %c0_i32_0 = arith.constant 0 : i32
    %c0_i32_1 = arith.constant 0 : i32
    return %c0_i32, %c0_i32_0 : i32, i32
  }
  func.func @transform_4(%arg0: i32, %arg1: i32) -> (i32, i32) {
    %c0_i32 = arith.constant 0 : i32
    %c0_i32_0 = arith.constant 0 : i32
    %c0_i32_1 = arith.constant 0 : i32
    return %c0_i32, %c0_i32_0 : i32, i32
  }
  func.func @transform_5(%arg0: i32, %arg1: i32) -> (i32, i32, i32) {
    %c0_i32 = arith.constant 0 : i32
    %c0_i32_0 = arith.constant 0 : i32
    return %arg0, %c0_i32, %arg1 : i32, i32, i32
  }
}

module attributes {stable_mosaic.version = 11 : i64} {
  func.func @_conv3_kernel(%arg0: i32, %arg1: i32, %arg2: memref<1x800x1024xbf16, #tpu.memory_space<vmem>>, %arg3: memref<3x800xbf16, #tpu.memory_space<vmem>>, %arg4: memref<3x1xf32, #tpu.memory_space<vmem>>, %arg5: memref<1x3x1024xf32, #tpu.memory_space<vmem>>) attributes {dimension_semantics = [#tpu.dimension_semantics<parallel>, #tpu.dimension_semantics<parallel>], iteration_bounds = array<i64: 2, 1>, scalar_prefetch = 0 : i64, scratch_operands = 0 : i64, tpu.core_type = #tpu.core_type<tc>, window_params = [{transform_indices = @transform_0, window_bounds = array<i64: 1, 800, 1024>}, {pipeline_mode = #tpu.pipeline_mode<synchronous>, transform_indices = @transform_1, window_bounds = array<i64: 3, 800>}, {pipeline_mode = #tpu.pipeline_mode<synchronous>, transform_indices = @transform_2, window_bounds = array<i64: 3, 1>}, {transform_indices = @transform_3, window_bounds = array<i64: 1, 3, 1024>}]} {
    %c0 = arith.constant 0 : index
    %c0_0 = arith.constant 0 : index
    %0 = vector.load %arg3[%c0, %c0_0] : memref<3x800xbf16, #tpu.memory_space<vmem>>, vector<3x800xbf16>
    %c0_1 = arith.constant 0 : index
    %c0_2 = arith.constant 0 : index
    %c0_3 = arith.constant 0 : index
    %1 = vector.load %arg2[%c0_1, %c0_2, %c0_3] : memref<1x800x1024xbf16, #tpu.memory_space<vmem>>, vector<1x800x1024xbf16>
    %2 = vector.shape_cast %1 : vector<1x800x1024xbf16> to vector<800x1024xbf16>
    %cst = arith.constant dense<0.000000e+00> : vector<3x1024xf32>
    %3 = tpu.matmul %0, %2, %cst {dimension_numbers = #tpu.dot_dimension_numbers<[1], [0], [0], [1], [0, 0, 1, 1], [], []>} : vector<3x800xbf16>, vector<800x1024xbf16>, vector<3x1024xf32> -> vector<3x1024xf32>
    %c0_4 = arith.constant 0 : index
    %c0_5 = arith.constant 0 : index
    %4 = vector.load %arg4[%c0_4, %c0_5] : memref<3x1xf32, #tpu.memory_space<vmem>>, vector<3x1xf32>
    %5 = vector.broadcast %4 : vector<3x1xf32> to vector<3x1024xf32>
    %6 = arith.addf %3, %5 : vector<3x1024xf32>
    %c0_6 = arith.constant 0 : index
    %c0_7 = arith.constant 0 : index
    %c0_8 = arith.constant 0 : index
    %7 = vector.load %arg5[%c0_6, %c0_7, %c0_8] : memref<1x3x1024xf32, #tpu.memory_space<vmem>>, vector<1x3x1024xf32>
    %8 = vector.shape_cast %7 : vector<1x3x1024xf32> to vector<3x1024xf32>
    %9 = vector.shape_cast %6 : vector<3x1024xf32> to vector<1x3x1024xf32>
    tpu.vector_store %arg5[%c0_6, %c0_7, %c0_8], %9 {strides = array<i32>} : memref<1x3x1024xf32, #tpu.memory_space<vmem>>, vector<1x3x1024xf32>,
    return
  }
  func.func @transform_0(%arg0: i32, %arg1: i32) -> (i32, i32, i32) {
    %c0_i32 = arith.constant 0 : i32
    %c0_i32_0 = arith.constant 0 : i32
    return %arg0, %c0_i32, %arg1 : i32, i32, i32
  }
  func.func @transform_1(%arg0: i32, %arg1: i32) -> (i32, i32) {
    %c0_i32 = arith.constant 0 : i32
    %c0_i32_0 = arith.constant 0 : i32
    %c0_i32_1 = arith.constant 0 : i32
    return %c0_i32, %c0_i32_0 : i32, i32
  }
  func.func @transform_2(%arg0: i32, %arg1: i32) -> (i32, i32) {
    %c0_i32 = arith.constant 0 : i32
    %c0_i32_0 = arith.constant 0 : i32
    %c0_i32_1 = arith.constant 0 : i32
    return %c0_i32, %c0_i32_0 : i32, i32
  }
  func.func @transform_3(%arg0: i32, %arg1: i32) -> (i32, i32, i32) {
    %c0_i32 = arith.constant 0 : i32
    %c0_i32_0 = arith.constant 0 : i32
    return %arg0, %c0_i32, %arg1 : i32, i32, i32
  }
}

</mosaic_0001>

<bundles_post_ra>
// kernel: super_resolution_forward.4
= control target key start
LH: loop header
LB: loop body
LE: loop exit
PB: predicated region body
PF: predicated region fallthrough
CT: control target
= control target key end

     0   :  { %7 = vsyncpa [#allocation3], 0  ;;  %s443_s0 = inlined_call_operand.hbm [shape: f32[96,16], index: 0, kind: input, shape index: {}]   ;;  %s444_s1 = inlined_call_operand.hbm [shape: f32[16,32], index: 1, kind: input, shape index: {}]   ;;  %s445_s2 = inlined_call_operand.vmem [shape: f32[96,32], index: 2, kind: output, shape index: {}]  }
   0x1   :  { %8 = vsyncpa [#allocation5], 0  ;;  %s340_s9 = smov [#allocation2]   ;;  %s292_s13 = scalar_lea.hbm %s443_s0, 1536 }
   0x2   :  { %s14_s10 = sshll.u32 %s340_s9, 4  ;;  %p293_p0 = scmp.ne.s32.totalorder %s443_s0, %s292_s13  ;;  %s15_s10 = int_to_ptr.vmem [resolvable:$true] %s14_s10 }
   0x3   :  { %p296_p1 = scmp.lt.u32.totalorder %s292_s13, %s443_s0 }
   0x5   :  { %p298_p2 = pnand %p296_p1, %p293_p0 }
   0x7   :  { %301 = shalt.err (!%p298_p2)
}
   0x8   :  { %s302_s18 = scalar_lea.vmem %s15_s10, 1536  ;;  %p307_p4 = scmp.lt.s32.totalorder %s15_s10, %s15_s10 }
   0x9   :  { %p303_p3 = scmp.ne.s32.totalorder %s15_s10, %s302_s18  ;;  %p308_p5 = scmp.lt.s32.totalorder %s302_s18, %s302_s18 }
   0xb   :  { %p309_p6 = por %p308_p5, %p307_p4 }
   0xd   :  { %p310_p7 = pnand %p309_p6, %p303_p3 }
   0xf   :  { %313 = shalt.err (!%p310_p7)
}
  0x10   :  { %s341_s19 = smov 128   ;;  %s342_s20 = smov 8  }
  0x11   :  { %20 = dma.hbm_to_vmem [thread:$0]  %s443_s0, 1536, %s15_s10, [#allocation3], %s341_s19, %s341_s19, %s342_s20  }
  0x12   :  { %s343_s23 = smov [#allocation4]   ;;  %s314_s27 = scalar_lea.hbm %s444_s1, 256 }
  0x13   :  { %s26_s24 = sshll.u32 %s343_s23, 4  ;;  %p315_p8 = scmp.ne.s32.totalorder %s444_s1, %s314_s27  ;;  %s27_s24 = int_to_ptr.vmem [resolvable:$true] %s26_s24 }
  0x14   :  { %p318_p9 = scmp.lt.u32.totalorder %s314_s27, %s444_s1 }
  0x16   :  { %p320_p10 = pnand %p318_p9, %p315_p8 }
  0x18   :  { %323 = shalt.err (!%p320_p10)
}
  0x19   :  { %s324_s4 = scalar_lea.vmem %s27_s24, 256  ;;  %p329_p12 = scmp.lt.s32.totalorder %s27_s24, %s27_s24 }
  0x1a   :  { %p325_p11 = scmp.ne.s32.totalorder %s27_s24, %s324_s4  ;;  %p330_p13 = scmp.lt.s32.totalorder %s324_s4, %s324_s4 }
  0x1c   :  { %p331_p0 = por %p330_p13, %p329_p12 }
  0x1e   :  { %p332_p1 = pnand %p331_p0, %p325_p11 }
  0x20   :  { %335 = shalt.err (!%p332_p1)
}
  0x21   :  { %32 = dma.hbm_to_vmem [thread:$0]  %s444_s1, 256, %s27_s24, [#allocation5], %s341_s19, %s341_s19, %s342_s20  }
  0x22   :  { %336 = dma.done.wait [#allocation3], 1536  }
  0x23   :  { %337 = vsyncadd [#allocation3], 4294965760 }
  0x24   :  { %338 = dma.done.wait [#allocation5], 256  }
  0x25   :  { %339 = vsyncadd [#allocation5], 4294967040  ;;  %vm53_vm0 = vcmask 130048   ;;  %v51_v0 = vld [vmem:[#allocation4] sm:$0xff]  ;;  %v52_v1 = vld [vmem:[#allocation4 + $0x8] sm:$0xff]  ;;  %vm215_vm1 = vcmask 261120  }
  0x26   :  { %v39_v2 = vld [vmem:[#allocation2] sm:$0xff]  ;;  %v282_v3 = vpack.c.bf16 %v52_v1, %v51_v0  ;;  %v45_v4 = vld [vmem:[#allocation2 + $0x30] sm:$0xff]  ;;  %v40_v5 = vld [vmem:[#allocation2 + $0x8] sm:$0xff] }
  0x27   :  { %264 = vmatprep.mubr.msk.f32.mxu0 %vm53_vm0, %v39_v2  ;;  %273 = vmatprep.mubr.msk.f32.mxu1 %vm53_vm0, %v45_v4  ;;  %v46_v6 = vld [vmem:[#allocation2 + $0x38] sm:$0xff]  ;;  %v41_v7 = vld [vmem:[#allocation2 + $0x10] sm:$0xff]  ;;  %v47_v8 = vld [vmem:[#allocation2 + $0x40] sm:$0xff] }
  0x28   :  { %283 = vmatprep.subr.bf16.mxu0 %v282_v3  ;;  %286 = vmatprep.subr.bf16.mxu1 %v282_v3  ;;  %v42_v9 = vld [vmem:[#allocation2 + $0x18] sm:$0xff]  ;;  %v48_v10 = vld [vmem:[#allocation2 + $0x48] sm:$0xff]  ;;  %v43_v11 = vld [vmem:[#allocation2 + $0x20] sm:$0xff] }
  0x29   :  { %285 = vmatpush3.bf16.msra.mxu0 %v282_v3  ;;  %287 = vmatpush3.bf16.msra.mxu1 %v282_v3  ;;  %v49_v12 = vld [vmem:[#allocation2 + $0x50] sm:$0xff]  ;;  %v44_v13 = vld [vmem:[#allocation2 + $0x28] sm:$0xff]  ;;  %v50_v14 = vld [vmem:[#allocation2 + $0x58] sm:$0xff] }
  0x2c   :  { %265 = vmatmul.mubr.msk.f32.vlgmr.msra.gmra.mrb[0].mxu0 %vm53_vm0, %v40_v5  ;;  %274 = vmatmul.mubr.msk.f32.vlgmr.msra.gmra.mrb[0].mxu1 %vm53_vm0, %v46_v6 }
  0x2d   :  { %267 = vmatprep.mubr.msk.f32.mxu0 %vm53_vm0, %v41_v7  ;;  %276 = vmatprep.mubr.msk.f32.mxu1 %vm53_vm0, %v47_v8 }
  0x30   :  { %268 = vmatmul.mubr.msk.f32.gmra.mrb[2].mxu0 %vm53_vm0, %v42_v9  ;;  %277 = vmatmul.mubr.msk.f32.gmra.mrb[2].mxu1 %vm53_vm0, %v48_v10 }
  0x31   :  { %270 = vmatprep.mubr.msk.f32.mxu0 %vm53_vm0, %v43_v11  ;;  %279 = vmatprep.mubr.msk.f32.mxu1 %vm53_vm0, %v49_v12 }
  0x34   :  { %271 = vmatmul.mubr.msk.f32.gmra.mrb[4].mxu0 %vm53_vm0, %v44_v13  ;;  %280 = vmatmul.mubr.msk.f32.gmra.mrb[4].mxu1 %vm53_vm0, %v50_v14 }
  0xff   :  { %v266_v15 = vpop.f32.mrb[0].mxu0  ;;  %v275_v16 = vpop.f32.mrb[0].mxu1 }
 0x100   :  { %217 = vst.msk [vmem:[%s445_s2 + $0x8] sm:$0xff] %vm215_vm1, %v266_v15  ;;  %223 = vst.msk [vmem:[%s445_s2 + $0x38] sm:$0xff] %vm215_vm1, %v275_v16  ;;  %v156_v17 = vpop.f32.mrb[1].mxu0  ;;  %v186_v18 = vpop.f32.mrb[1].mxu1 }
 0x101   :  { %216 = vst.msk [vmem:[%s445_s2] sm:$0xff] %vm215_vm1, %v156_v17  ;;  %222 = vst.msk [vmem:[%s445_s2 + $0x30] sm:$0xff] %vm215_vm1, %v186_v18 }
 0x103   :  { %v269_v19 = vpop.f32.mrb[2].mxu0  ;;  %v278_v20 = vpop.f32.mrb[2].mxu1 }
 0x104   :  { %219 = vst.msk [vmem:[%s445_s2 + $0x18] sm:$0xff] %vm215_vm1, %v269_v19  ;;  %225 = vst.msk [vmem:[%s445_s2 + $0x48] sm:$0xff] %vm215_vm1, %v278_v20  ;;  %v166_v21 = vpop.f32.mrb[3].mxu0  ;;  %v196_v22 = vpop.f32.mrb[3].mxu1 }
 0x105   :  { %218 = vst.msk [vmem:[%s445_s2 + $0x10] sm:$0xff] %vm215_vm1, %v166_v21  ;;  %224 = vst.msk [vmem:[%s445_s2 + $0x40] sm:$0xff] %vm215_vm1, %v196_v22 }
 0x107   :  { %v272_v23 = vpop.f32.mrb[4].mxu0  ;;  %v281_v24 = vpop.f32.mrb[4].mxu1 }
 0x108   :  { %221 = vst.msk [vmem:[%s445_s2 + $0x28] sm:$0xff] %vm215_vm1, %v272_v23  ;;  %227 = vst.msk [vmem:[%s445_s2 + $0x58] sm:$0xff] %vm215_vm1, %v281_v24  ;;  %v176_v25 = vpop.f32.mrb[5].mxu0  ;;  %v206_v26 = vpop.f32.mrb[5].mxu1 }
 0x109   :  { %220 = vst.msk [vmem:[%s445_s2 + $0x20] sm:$0xff] %vm215_vm1, %v176_v25  ;;  %226 = vst.msk [vmem:[%s445_s2 + $0x50] sm:$0xff] %vm215_vm1, %v206_v26 }
 0x10a   :  { %232 = vsyncpa [#allocation3], 1 }
 0x10b   :  { %233 = vsyncpa [#allocation5], 1 }

// kernel: super_resolution_forward.5
= control target key start
LH: loop header
LB: loop body
LE: loop exit
PB: predicated region body
PF: predicated region fallthrough
CT: control target
= control target key end

     0   :  { %7 = vsyncpa [#allocation3], 0  ;;  %s462_s9 = smov [#allocation2]   ;;  %s684_s0 = inlined_call_operand.vmem [shape: f32[192,16], index: 0, kind: input, shape index: {}]   ;;  %s685_s1 = inlined_call_operand.hbm [shape: f32[16,32], index: 1, kind: input, shape index: {}]   ;;  %s686_s2 = inlined_call_operand.vmem [shape: f32[192,32], index: 2, kind: output, shape index: {}]  }
   0x1   :  { %s15_s10 = sshll.u32 %s462_s9, 4  ;;  %s438_s13 = scalar_lea.hbm %s685_s1, 256  ;;  %s16_s10 = int_to_ptr.vmem [resolvable:$true] %s15_s10 }
   0x2   :  { %p439_p0 = scmp.ne.s32.totalorder %s685_s1, %s438_s13  ;;  %p442_p1 = scmp.lt.u32.totalorder %s438_s13, %s685_s1 }
   0x4   :  { %p444_p2 = pnand %p442_p1, %p439_p0 }
   0x6   :  { %447 = shalt.err (!%p444_p2)
}
   0x7   :  { %s448_s18 = scalar_lea.vmem %s16_s10, 256  ;;  %p453_p4 = scmp.lt.s32.totalorder %s16_s10, %s16_s10 }
   0x8   :  { %p449_p3 = scmp.ne.s32.totalorder %s16_s10, %s448_s18  ;;  %p454_p5 = scmp.lt.s32.totalorder %s448_s18, %s448_s18 }
   0xa   :  { %p455_p6 = por %p454_p5, %p453_p4 }
   0xc   :  { %p456_p7 = pnand %p455_p6, %p449_p3 }
   0xe   :  { %459 = shalt.err (!%p456_p7)
}
   0xf   :  { %s463_s19 = smov 128   ;;  %s464_s20 = smov 8  }
  0x10   :  { %21 = dma.hbm_to_vmem [thread:$0]  %s685_s1, 256, %s16_s10, [#allocation3], %s463_s19, %s463_s19, %s464_s20  }
  0x11   :  { %460 = dma.done.wait [#allocation3], 256  }
  0x12   :  { %461 = vsyncadd [#allocation3], 4294967040  ;;  %vm51_vm0 = vcmask 130048   ;;  %v49_v0 = vld [vmem:[#allocation2] sm:$0xff]  ;;  %v50_v1 = vld [vmem:[#allocation2 + $0x8] sm:$0xff]  ;;  %vm309_vm1 = vcmask 261120  }
  0x13   :  { %v25_v2 = vld [vmem:[%s684_s0] sm:$0xff]  ;;  %v429_v3 = vpack.c.bf16 %v50_v1, %v49_v0  ;;  %v26_v5 = vld [vmem:[%s684_s0 + $0x8] sm:$0xff]  ;;  %v27_v7 = vld [vmem:[%s684_s0 + $0x10] sm:$0xff] }
  0x14   :  { %393 = vmatprep.mubr.msk.f32.mxu0 %vm51_vm0, %v25_v2  ;;  %v37_v4 = vld [vmem:[%s684_s0 + $0x60] sm:$0xff]  ;;  %v38_v6 = vld [vmem:[%s684_s0 + $0x68] sm:$0xff]  ;;  %v39_v8 = vld [vmem:[%s684_s0 + $0x70] sm:$0xff] }
  0x15   :  { %411 = vmatprep.mubr.msk.f32.mxu1 %vm51_vm0, %v37_v4  ;;  %430 = vmatprep.subr.bf16.mxu0 %v429_v3  ;;  %v28_v9 = vld [vmem:[%s684_s0 + $0x18] sm:$0xff]  ;;  %v29_v11 = vld [vmem:[%s684_s0 + $0x20] sm:$0xff]  ;;  %v30_v13 = vld [vmem:[%s684_s0 + $0x28] sm:$0xff] }
  0x16   :  { %433 = vmatprep.subr.bf16.mxu1 %v429_v3  ;;  %432 = vmatpush3.bf16.msra.mxu0 %v429_v3  ;;  %v40_v10 = vld [vmem:[%s684_s0 + $0x78] sm:$0xff]  ;;  %v41_v12 = vld [vmem:[%s684_s0 + $0x80] sm:$0xff]  ;;  %v42_v14 = vld [vmem:[%s684_s0 + $0x88] sm:$0xff] }
  0x17   :  { %434 = vmatpush3.bf16.msra.mxu1 %v429_v3  ;;  %v31_v15 = vld [vmem:[%s684_s0 + $0x30] sm:$0xff]  ;;  %v32_v17 = vld [vmem:[%s684_s0 + $0x38] sm:$0xff]  ;;  %v33_v19 = vld [vmem:[%s684_s0 + $0x40] sm:$0xff] }
  0x18   :  { %v43_v16 = vld [vmem:[%s684_s0 + $0x90] sm:$0xff]  ;;  %v44_v18 = vld [vmem:[%s684_s0 + $0x98] sm:$0xff]  ;;  %v45_v20 = vld [vmem:[%s684_s0 + $0xa0] sm:$0xff] }
  0x19   :  { %394 = vmatmul.mubr.msk.f32.vlgmr.msra.gmra.mrb[0].mxu0 %vm51_vm0, %v26_v5  ;;  %v34_v21 = vld [vmem:[%s684_s0 + $0x48] sm:$0xff]  ;;  %v35_v23 = vld [vmem:[%s684_s0 + $0x50] sm:$0xff]  ;;  %v36_v25 = vld [vmem:[%s684_s0 + $0x58] sm:$0xff] }
  0x1a   :  { %412 = vmatmul.mubr.msk.f32.vlgmr.msra.gmra.mrb[0].mxu1 %vm51_vm0, %v38_v6  ;;  %396 = vmatprep.mubr.msk.f32.mxu0 %vm51_vm0, %v27_v7  ;;  %v46_v22 = vld [vmem:[%s684_s0 + $0xa8] sm:$0xff]  ;;  %v47_v24 = vld [vmem:[%s684_s0 + $0xb0] sm:$0xff]  ;;  %v48_v26 = vld [vmem:[%s684_s0 + $0xb8] sm:$0xff] }
  0x1b   :  { %414 = vmatprep.mubr.msk.f32.mxu1 %vm51_vm0, %v39_v8 }
  0x1d   :  { %397 = vmatmul.mubr.msk.f32.gmra.mrb[2].mxu0 %vm51_vm0, %v28_v9 }
  0x1e   :  { %415 = vmatmul.mubr.msk.f32.gmra.mrb[2].mxu1 %vm51_vm0, %v40_v10  ;;  %399 = vmatprep.mubr.msk.f32.mxu0 %vm51_vm0, %v29_v11 }
  0x1f   :  { %417 = vmatprep.mubr.msk.f32.mxu1 %vm51_vm0, %v41_v12 }
  0x21   :  { %400 = vmatmul.mubr.msk.f32.gmra.mrb[4].mxu0 %vm51_vm0, %v30_v13 }
  0x22   :  { %418 = vmatmul.mubr.msk.f32.gmra.mrb[4].mxu1 %vm51_vm0, %v42_v14  ;;  %402 = vmatprep.mubr.msk.f32.mxu0 %vm51_vm0, %v31_v15 }
  0x23   :  { %420 = vmatprep.mubr.msk.f32.mxu1 %vm51_vm0, %v43_v16 }
  0x25   :  { %403 = vmatmul.mubr.msk.f32.gmra.mrb[6].mxu0 %vm51_vm0, %v32_v17 }
  0x26   :  { %421 = vmatmul.mubr.msk.f32.gmra.mrb[6].mxu1 %vm51_vm0, %v44_v18  ;;  %405 = vmatprep.mubr.msk.f32.mxu0 %vm51_vm0, %v33_v19 }
  0x27   :  { %423 = vmatprep.mubr.msk.f32.mxu1 %vm51_vm0, %v45_v20 }
  0x29   :  { %406 = vmatmul.mubr.msk.f32.gmra.mrb[8].mxu0 %vm51_vm0, %v34_v21 }
  0x2a   :  { %424 = vmatmul.mubr.msk.f32.gmra.mrb[8].mxu1 %vm51_vm0, %v46_v22  ;;  %408 = vmatprep.mubr.msk.f32.mxu0 %vm51_vm0, %v35_v23 }
  0x2b   :  { %426 = vmatprep.mubr.msk.f32.mxu1 %vm51_vm0, %v47_v24 }
  0x2d   :  { %409 = vmatmul.mubr.msk.f32.gmra.mrb[10].mxu0 %vm51_vm0, %v36_v25 }
  0x2e   :  { %427 = vmatmul.mubr.msk.f32.gmra.mrb[10].mxu1 %vm51_vm0, %v48_v26 }
  0xec   :  { %v395_v27 = vpop.f32.mrb[0].mxu0 }
  0xed   :  { %v413_v28 = vpop.f32.mrb[0].mxu1  ;;  %311 = vst.msk [vmem:[%s686_s2 + $0x8] sm:$0xff] %vm309_vm1, %v395_v27  ;;  %v190_v29 = vpop.f32.mrb[1].mxu0 }
  0xee   :  { %323 = vst.msk [vmem:[%s686_s2 + $0x68] sm:$0xff] %vm309_vm1, %v413_v28  ;;  %v250_v30 = vpop.f32.mrb[1].mxu1  ;;  %310 = vst.msk [vmem:[%s686_s2] sm:$0xff] %vm309_vm1, %v190_v29 }
  0xef   :  { %322 = vst.msk [vmem:[%s686_s2 + $0x60] sm:$0xff] %vm309_vm1, %v250_v30 }
  0xf0   :  { %v398_v31 = vpop.f32.mrb[2].mxu0 }
  0xf1   :  { %v416_v32 = vpop.f32.mrb[2].mxu1  ;;  %313 = vst.msk [vmem:[%s686_s2 + $0x18] sm:$0xff] %vm309_vm1, %v398_v31  ;;  %v200_v33 = vpop.f32.mrb[3].mxu0 }
  0xf2   :  { %325 = vst.msk [vmem:[%s686_s2 + $0x78] sm:$0xff] %vm309_vm1, %v416_v32  ;;  %v260_v34 = vpop.f32.mrb[3].mxu1  ;;  %312 = vst.msk [vmem:[%s686_s2 + $0x10] sm:$0xff] %vm309_vm1, %v200_v33 }
  0xf3   :  { %324 = vst.msk [vmem:[%s686_s2 + $0x70] sm:$0xff] %vm309_vm1, %v260_v34 }
  0xf4   :  { %v401_v35 = vpop.f32.mrb[4].mxu0 }
  0xf5   :  { %v419_v36 = vpop.f32.mrb[4].mxu1  ;;  %315 = vst.msk [vmem:[%s686_s2 + $0x28] sm:$0xff] %vm309_vm1, %v401_v35  ;;  %v210_v37 = vpop.f32.mrb[5].mxu0 }
  0xf6   :  { %327 = vst.msk [vmem:[%s686_s2 + $0x88] sm:$0xff] %vm309_vm1, %v419_v36  ;;  %v270_v38 = vpop.f32.mrb[5].mxu1  ;;  %314 = vst.msk [vmem:[%s686_s2 + $0x20] sm:$0xff] %vm309_vm1, %v210_v37 }
  0xf7   :  { %326 = vst.msk [vmem:[%s686_s2 + $0x80] sm:$0xff] %vm309_vm1, %v270_v38 }
  0xf8   :  { %v404_v39 = vpop.f32.mrb[6].mxu0 }
  0xf9   :  { %v422_v40 = vpop.f32.mrb[6].mxu1  ;;  %317 = vst.msk [vmem:[%s686_s2 + $0x38] sm:$0xff] %vm309_vm1, %v404_v39  ;;  %v220_v41 = vpop.f32.mrb[7].mxu0 }
  0xfa   :  { %329 = vst.msk [vmem:[%s686_s2 + $0x98] sm:$0xff] %vm309_vm1, %v422_v40  ;;  %v280_v42 = vpop.f32.mrb[7].mxu1  ;;  %316 = vst.msk [vmem:[%s686_s2 + $0x30] sm:$0xff] %vm309_vm1, %v220_v41 }
  0xfb   :  { %328 = vst.msk [vmem:[%s686_s2 + $0x90] sm:$0xff] %vm309_vm1, %v280_v42 }
  0xfc   :  { %v407_v43 = vpop.f32.mrb[8].mxu0 }
  0xfd   :  { %v425_v44 = vpop.f32.mrb[8].mxu1  ;;  %319 = vst.msk [vmem:[%s686_s2 + $0x48] sm:$0xff] %vm309_vm1, %v407_v43  ;;  %v230_v45 = vpop.f32.mrb[9].mxu0 }
  0xfe   :  { %331 = vst.msk [vmem:[%s686_s2 + $0xa8] sm:$0xff] %vm309_vm1, %v425_v44  ;;  %v290_v46 = vpop.f32.mrb[9].mxu1  ;;  %318 = vst.msk [vmem:[%s686_s2 + $0x40] sm:$0xff] %vm309_vm1, %v230_v45 }
  0xff   :  { %330 = vst.msk [vmem:[%s686_s2 + $0xa0] sm:$0xff] %vm309_vm1, %v290_v46 }
 0x100   :  { %v410_v47 = vpop.f32.mrb[10].mxu0 }
 0x101   :  { %v428_v48 = vpop.f32.mrb[10].mxu1  ;;  %321 = vst.msk [vmem:[%s686_s2 + $0x58] sm:$0xff] %vm309_vm1, %v410_v47  ;;  %v240_v49 = vpop.f32.mrb[11].mxu0 }
 0x102   :  { %333 = vst.msk [vmem:[%s686_s2 + $0xb8] sm:$0xff] %vm309_vm1, %v428_v48  ;;  %v300_v50 = vpop.f32.mrb[11].mxu1  ;;  %320 = vst.msk [vmem:[%s686_s2 + $0x50] sm:$0xff] %vm309_vm1, %v240_v49 }
 0x103   :  { %332 = vst.msk [vmem:[%s686_s2 + $0xb0] sm:$0xff] %vm309_vm1, %v300_v50 }
 0x104   :  { %338 = vsyncpa [#allocation3], 1 }

// kernel: super_resolution_forward.6
= control target key start
LH: loop header
LB: loop body
LE: loop exit
PB: predicated region body
PF: predicated region fallthrough
CT: control target
= control target key end

     0   :  { %s2292_s18 = smov 0   ;;  %s2294_s19 = smov 0   ;;  %s2741_s0 = inlined_call_operand.vmem [shape: bf16[2,256,1024], index: 0, kind: input, shape index: {}]   ;;  %s2742_s1 = inlined_call_operand.vmem [shape: bf16[64,256], index: 1, kind: input, shape index: {}]   ;;  %s2743_s2 = inlined_call_operand.vmem [shape: f32[64,1], index: 2, kind: input, shape index: {}]   ;;  %s2744_s3 = inlined_call_operand.vmem [shape: bf16[32,64], index: 3, kind: input, shape index: {}]   ;;  %s2745_s4 = inlined_call_operand.vmem [shape: f32[32,1], index: 4, kind: input, shape index: {}]   ;;  %s2746_s5 = inlined_call_operand.vmem [shape: bf16[2,32,1024], index: 5, kind: output, shape index: {}]  }
   0x1   :  { %s2296_s20 = smov 0  }
   0x2 LB: > { %s27_s21 = sadd.s32 1, %s2255_s19  ;;  %p2009_p0 = scmp.ge.s32.totalorder %s2259_s20, 1  ;;  %s2259_s20 = sphi %s2296_s20, %s15_s20   ;;  %s2255_s19 = sphi %s2294_s19, %s2748_s19   ;;  %s2251_s18 = sphi %s2292_s18, %s2747_s18  }
   0x3   : > { %p29_p1 = scmp.ge.s32.totalorder %s27_s21, 2  ;;  %p208_p2 = scmp.lt.s32.totalorder %s2259_s20, 3 }
   0x5   : > { %s2750_s21 = smov (%p29_p1, %s27_s21), 0  ;;  %p209_p3 = pnand %p2009_p0, %p208_p2 }
   0x6   : > { %p245_p4 = scmp.lt.s32.totalorder (!%p209_p3), %s2251_s18, 1  ;;  %v2313_v0 = vld [vmem:[%s2742_s1 + $0x4] ss:$8 sps:$4 sm:$0xff] (!%p209_p3)   ;;  %v2261_v59 = vmov (!%p209_p3), 0   ;;  %vm1555_vm0 = vcmask (!%p209_p3), 523264  }
   0x7   : > { %212 = sbr.rel (%p209_p3) target bundleno = 628 (0x274), region = 40  ;;  %1161 = vmatprep.mubr.bf16.mxu0 (!%p209_p3), %v2313_v0  ;;  %1234 = vmatprep.mubr.bf16.mxu1 (!%p209_p3), %v2313_v0 }
   0x8   : > { %2221 = vset.pattern.permute.xlu0 (!%p209_p3), %v2261_v59  ;;  %2222 = vset.pattern.permute.xlu1 (!%p209_p3), %v2261_v59 }
   0xe   : > { %s2752_s18 = smov (!%p245_p4, %s2251_s18), 1 }
   0xf   : > { %s2178_s24 = sshll.u32 %s2752_s18, 10  ;;  %s2179_s29 = sshll.u32 %s2752_s18, 7 }
  0x10   : > { %s2323_s27 = scalar_lea.vmem %s2741_s0, %s2178_s24  ;;  %s2685_s6 = scalar_lea.vmem %s2746_s5, %s2179_s29 }
  0x11   : > { %v273_v1 = vld [vmem:[%s2323_s27] sm:$0xff]  ;;  %v274_v3 = vld [vmem:[%s2323_s27 + $0x8] sm:$0xff] }
  0x12   : > { %v277_v2 = vld [vmem:[%s2323_s27 + $0x20] sm:$0xff]  ;;  %v278_v5 = vld [vmem:[%s2323_s27 + $0x28] sm:$0xff] }
  0x13   : > { %v2023_v4 = vcombine.high %v273_v1, %v277_v2  ;;  %v2022_v6 = vcombine.low %v273_v1, %v277_v2  ;;  %v281_v7 = vld [vmem:[%s2323_s27 + $0x40] sm:$0xff]  ;;  %v2025_v9 = vcombine.high %v274_v3, %v278_v5  ;;  %v2024_v10 = vcombine.low %v274_v3, %v278_v5  ;;  %v282_v12 = vld [vmem:[%s2323_s27 + $0x48] sm:$0xff] }
  0x14   : > { %v285_v8 = vld [vmem:[%s2323_s27 + $0x60] sm:$0xff]  ;;  %v286_v13 = vld [vmem:[%s2323_s27 + $0x68] sm:$0xff] }
  0x15   : > { %v2031_v11 = vcombine.high %v281_v7, %v285_v8  ;;  %v289_v14 = vld [vmem:[%s2323_s27 + $0x80] sm:$0xff]  ;;  %1129 = vmatprep.subr.bf16.mxu0 %v2023_v4  ;;  %v2033_v15 = vcombine.high %v282_v12, %v286_v13  ;;  %v290_v17 = vld [vmem:[%s2323_s27 + $0x88] sm:$0xff]  ;;  %1202 = vmatprep.subr.bf16.mxu1 %v2025_v9  ;;  %v2030_v19 = vcombine.low %v281_v7, %v285_v8 }
  0x16   : > { %v293_v16 = vld [vmem:[%s2323_s27 + $0xa0] sm:$0xff]  ;;  %v294_v18 = vld [vmem:[%s2323_s27 + $0xa8] sm:$0xff]  ;;  %1130 = vmatpush1.bf16.msra.mxu0 %v2022_v6  ;;  %1203 = vmatpush1.bf16.msra.mxu1 %v2024_v10  ;;  %v2032_v20 = vcombine.low %v282_v12, %v286_v13 }
  0x17   : > { %1131 = vmatprep.subr.bf16.mxu0 %v2031_v11  ;;  %v2039_v21 = vcombine.high %v289_v14, %v293_v16  ;;  %1204 = vmatprep.subr.bf16.mxu1 %v2033_v15  ;;  %v2041_v22 = vcombine.high %v290_v17, %v294_v18  ;;  %v297_v23 = vld [vmem:[%s2323_s27 + $0xc0] sm:$0xff]  ;;  %v298_v25 = vld [vmem:[%s2323_s27 + $0xc8] sm:$0xff]  ;;  %v2038_v27 = vcombine.low %v289_v14, %v293_v16 }
  0x18   : > { %v301_v24 = vld [vmem:[%s2323_s27 + $0xe0] sm:$0xff]  ;;  %v302_v26 = vld [vmem:[%s2323_s27 + $0xe8] sm:$0xff]  ;;  %v2040_v28 = vcombine.low %v290_v17, %v294_v18 }
  0x19   : > { %v2047_v29 = vcombine.high %v297_v23, %v301_v24  ;;  %v2049_v30 = vcombine.high %v298_v25, %v302_v26  ;;  %v305_v31 = vld [vmem:[%s2323_s27 + $0x100] sm:$0xff]  ;;  %v306_v33 = vld [vmem:[%s2323_s27 + $0x108] sm:$0xff]  ;;  %v2046_v35 = vcombine.low %v297_v23, %v301_v24  ;;  %v2048_v36 = vcombine.low %v298_v25, %v302_v26 }
  0x1a   : > { %1132 = vmatpush1.bf16.msra.mxu0 %v2030_v19  ;;  %1205 = vmatpush1.bf16.msra.mxu1 %v2032_v20  ;;  %v309_v32 = vld [vmem:[%s2323_s27 + $0x120] sm:$0xff]  ;;  %v310_v34 = vld [vmem:[%s2323_s27 + $0x128] sm:$0xff] }
  0x1b   : > { %1133 = vmatprep.subr.bf16.mxu0 %v2039_v21  ;;  %1206 = vmatprep.subr.bf16.mxu1 %v2041_v22  ;;  %v2055_v37 = vcombine.high %v305_v31, %v309_v32  ;;  %v2057_v38 = vcombine.high %v306_v33, %v310_v34  ;;  %v313_v39 = vld [vmem:[%s2323_s27 + $0x140] sm:$0xff]  ;;  %v314_v41 = vld [vmem:[%s2323_s27 + $0x148] sm:$0xff]  ;;  %v2054_v43 = vcombine.low %v305_v31, %v309_v32 }
  0x1c   : > { %v317_v40 = vld [vmem:[%s2323_s27 + $0x160] sm:$0xff]  ;;  %v318_v42 = vld [vmem:[%s2323_s27 + $0x168] sm:$0xff]  ;;  %v2056_v44 = vcombine.low %v306_v33, %v310_v34 }
  0x1d   : > { %v2063_v45 = vcombine.high %v313_v39, %v317_v40  ;;  %v2065_v46 = vcombine.high %v314_v41, %v318_v42  ;;  %v321_v47 = vld [vmem:[%s2323_s27 + $0x180] sm:$0xff]  ;;  %v322_v49 = vld [vmem:[%s2323_s27 + $0x188] sm:$0xff]  ;;  %v2062_v51 = vcombine.low %v313_v39, %v317_v40  ;;  %v2064_v52 = vcombine.low %v314_v41, %v318_v42 }
  0x1e   : > { %1134 = vmatpush1.bf16.msra.mxu0 %v2038_v27  ;;  %1207 = vmatpush1.bf16.msra.mxu1 %v2040_v28  ;;  %v325_v48 = vld [vmem:[%s2323_s27 + $0x1a0] sm:$0xff]  ;;  %v326_v50 = vld [vmem:[%s2323_s27 + $0x1a8] sm:$0xff] }
  0x1f   : > { %1135 = vmatprep.subr.bf16.mxu0 %v2047_v29  ;;  %1208 = vmatprep.subr.bf16.mxu1 %v2049_v30  ;;  %v2071_v53 = vcombine.high %v321_v47, %v325_v48  ;;  %v2073_v54 = vcombine.high %v322_v49, %v326_v50  ;;  %v329_v55 = vld [vmem:[%s2323_s27 + $0x1c0] sm:$0xff]  ;;  %v330_v57 = vld [vmem:[%s2323_s27 + $0x1c8] sm:$0xff]  ;;  %v2070_v60 = vcombine.low %v321_v47, %v325_v48 }
  0x20   : > { %v333_v56 = vld [vmem:[%s2323_s27 + $0x1e0] sm:$0xff]  ;;  %v334_v58 = vld [vmem:[%s2323_s27 + $0x1e8] sm:$0xff]  ;;  %v2072_v61 = vcombine.low %v322_v49, %v326_v50 }
  0x21   : > { %v2079_v62 = vcombine.high %v329_v55, %v333_v56  ;;  %v2081_v63 = vcombine.high %v330_v57, %v334_v58  ;;  %v337_v1 = vld [vmem:[%s2323_s27 + $0x200] sm:$0xff]  ;;  %v338_v3 = vld [vmem:[%s2323_s27 + $0x208] sm:$0xff]  ;;  %v2078_v5 = vcombine.low %v329_v55, %v333_v56  ;;  %v2080_v6 = vcombine.low %v330_v57, %v334_v58 }
  0x22   : > { %1136 = vmatpush1.bf16.msra.mxu0 %v2046_v35  ;;  %1209 = vmatpush1.bf16.msra.mxu1 %v2048_v36  ;;  %v341_v2 = vld [vmem:[%s2323_s27 + $0x220] sm:$0xff]  ;;  %v342_v4 = vld [vmem:[%s2323_s27 + $0x228] sm:$0xff] }
  0x23   : > { %1137 = vmatprep.subr.bf16.mxu0 %v2055_v37  ;;  %1210 = vmatprep.subr.bf16.mxu1 %v2057_v38  ;;  %v2087_v7 = vcombine.high %v337_v1, %v341_v2  ;;  %v2089_v8 = vcombine.high %v338_v3, %v342_v4  ;;  %v345_v9 = vld [vmem:[%s2323_s27 + $0x240] sm:$0xff]  ;;  %v346_v11 = vld [vmem:[%s2323_s27 + $0x248] sm:$0xff]  ;;  %v2086_v13 = vcombine.low %v337_v1, %v341_v2  ;;  %v403_v38 = vld [vmem:[%s2743_s2 + $0x10] sm:$0xff] }
  0x24   : > { %v349_v10 = vld [vmem:[%s2323_s27 + $0x260] sm:$0xff]  ;;  %v350_v12 = vld [vmem:[%s2323_s27 + $0x268] sm:$0xff]  ;;  %v2088_v14 = vcombine.low %v338_v3, %v342_v4  ;;  %421 = vperm.xlu1 %2222, %v403_v38   ;;  %v408_v1 = vld [vmem:[%s2743_s2 + $0x38] sm:$0xff] }
  0x25   : > { %v2095_v15 = vcombine.high %v345_v9, %v349_v10  ;;  %v2097_v16 = vcombine.high %v346_v11, %v350_v12  ;;  %v353_v17 = vld [vmem:[%s2323_s27 + $0x280] sm:$0xff]  ;;  %v354_v19 = vld [vmem:[%s2323_s27 + $0x288] sm:$0xff]  ;;  %v2094_v21 = vcombine.low %v345_v9, %v349_v10  ;;  %v2096_v22 = vcombine.low %v346_v11, %v350_v12 }
  0x26   : > { %1138 = vmatpush1.bf16.msra.mxu0 %v2054_v43  ;;  %1211 = vmatpush1.bf16.msra.mxu1 %v2056_v44  ;;  %v357_v18 = vld [vmem:[%s2323_s27 + $0x2a0] sm:$0xff]  ;;  %v358_v20 = vld [vmem:[%s2323_s27 + $0x2a8] sm:$0xff]  ;;  %v404_v43 = vld [vmem:[%s2743_s2 + $0x18] sm:$0xff] }
  0x27   : > { %1139 = vmatprep.subr.bf16.mxu0 %v2063_v45  ;;  %1212 = vmatprep.subr.bf16.mxu1 %v2065_v46  ;;  %v2103_v23 = vcombine.high %v353_v17, %v357_v18  ;;  %v2105_v24 = vcombine.high %v354_v19, %v358_v20  ;;  %v361_v25 = vld [vmem:[%s2323_s27 + $0x2c0] sm:$0xff]  ;;  %v362_v27 = vld [vmem:[%s2323_s27 + $0x2c8] sm:$0xff]  ;;  %v2102_v29 = vcombine.low %v353_v17, %v357_v18  ;;  %v1523_v18 = vld [vmem:[%s2745_s4 + $0x10] sm:$0xff] }
  0x28   : > { %v365_v26 = vld [vmem:[%s2323_s27 + $0x2e0] sm:$0xff]  ;;  %v366_v28 = vld [vmem:[%s2323_s27 + $0x2e8] sm:$0xff]  ;;  %v2104_v30 = vcombine.low %v354_v19, %v358_v20  ;;  %426 = vperm.xlu1 %2222, %v404_v43   ;;  %v2458_v43 = vld [vmem:[%s2742_s1 + $0x10] ss:$8 sps:$4 sm:$0xff]  }
  0x29   : > { %v2111_v31 = vcombine.high %v361_v25, %v365_v26  ;;  %v2113_v32 = vcombine.high %v362_v27, %v366_v28  ;;  %v369_v33 = vld [vmem:[%s2323_s27 + $0x300] sm:$0xff]  ;;  %v370_v36 = vld [vmem:[%s2323_s27 + $0x308] sm:$0xff]  ;;  %v2110_v39 = vcombine.low %v361_v25, %v365_v26  ;;  %v2112_v41 = vcombine.low %v362_v27, %v366_v28  ;;  %v284_v26 = vld [vmem:[%s2323_s27 + $0x58] sm:$0xff] }
  0x2a   : > { %1140 = vmatpush1.bf16.msra.mxu0 %v2062_v51  ;;  %1213 = vmatpush1.bf16.msra.mxu1 %v2064_v52  ;;  %v373_v34 = vld [vmem:[%s2323_s27 + $0x320] sm:$0xff]  ;;  %v374_v37 = vld [vmem:[%s2323_s27 + $0x328] sm:$0xff]  ;;  %v288_v27 = vld [vmem:[%s2323_s27 + $0x78] sm:$0xff] }
  0x2b   : > { %1141 = vmatprep.subr.bf16.mxu0 %v2071_v53  ;;  %1214 = vmatprep.subr.bf16.mxu1 %v2073_v54  ;;  %v401_v35 = vld [vmem:[%s2743_s2] sm:$0xff]  ;;  %v402_v40 = vld [vmem:[%s2743_s2 + $0x8] sm:$0xff]  ;;  %v2119_v42 = vcombine.high %v369_v33, %v373_v34  ;;  %v2121_v44 = vcombine.high %v370_v36, %v374_v37  ;;  %v2118_v49 = vcombine.low %v369_v33, %v373_v34  ;;  %v291_v33 = vld [vmem:[%s2323_s27 + $0x90] sm:$0xff] }
  0x2c   : > { %411 = vperm.xlu0 %2221, %v401_v35   ;;  %v377_v45 = vld [vmem:[%s2323_s27 + $0x340] sm:$0xff]  ;;  %v378_v47 = vld [vmem:[%s2323_s27 + $0x348] sm:$0xff]  ;;  %v2120_v51 = vcombine.low %v370_v36, %v374_v37  ;;  %v295_v34 = vld [vmem:[%s2323_s27 + $0xb0] sm:$0xff]  ;;  %v2036_v38 = vcombine.low %v284_v26, %v288_v27 }
  0x2d   : > { %v381_v46 = vld [vmem:[%s2323_s27 + $0x360] sm:$0xff]  ;;  %v382_v48 = vld [vmem:[%s2323_s27 + $0x368] sm:$0xff]  ;;  %v292_v35 = vld [vmem:[%s2323_s27 + $0x98] sm:$0xff] }
  0x2e   : > { %1142 = vmatpush1.bf16.msra.mxu0 %v2070_v60  ;;  %1215 = vmatpush1.bf16.msra.mxu1 %v2072_v61  ;;  %v405_v50 = vld [vmem:[%s2743_s2 + $0x20] sm:$0xff]  ;;  %v2127_v52 = vcombine.high %v377_v45, %v381_v46  ;;  %v406_v53 = vld [vmem:[%s2743_s2 + $0x28] sm:$0xff]  ;;  %v2129_v54 = vcombine.high %v378_v47, %v382_v48  ;;  %v2126_v60 = vcombine.low %v377_v45, %v381_v46  ;;  %v407_v61 = vld [vmem:[%s2743_s2 + $0x30] sm:$0xff] }
  0x2f   : > { %1143 = vmatprep.subr.bf16.mxu0 %v2079_v62  ;;  %1216 = vmatprep.subr.bf16.mxu1 %v2081_v63  ;;  %v385_v55 = vld [vmem:[%s2323_s27 + $0x380] sm:$0xff]  ;;  %v386_v57 = vld [vmem:[%s2323_s27 + $0x388] sm:$0xff]  ;;  %v2128_v62 = vcombine.low %v378_v47, %v382_v48  ;;  %v296_v36 = vld [vmem:[%s2323_s27 + $0xb8] sm:$0xff]  ;;  %v2042_v46 = vcombine.low %v291_v33, %v295_v34 }
  0x30   : > { %416 = vperm.xlu0 %2221, %v402_v40   ;;  %v389_v56 = vld [vmem:[%s2323_s27 + $0x3a0] sm:$0xff]  ;;  %v390_v58 = vld [vmem:[%s2323_s27 + $0x3a8] sm:$0xff]  ;;  %436 = vperm.xlu1 %2222, %v406_v53   ;;  %v2045_v40 = vcombine.high %v292_v35, %v296_v36  ;;  %v304_v45 = vld [vmem:[%s2323_s27 + $0xf8] sm:$0xff]  ;;  %v2044_v47 = vcombine.low %v292_v35, %v296_v36 }
  0x31   : > { %v2135_v63 = vcombine.high %v385_v55, %v389_v56  ;;  %v2137_v2 = vcombine.high %v386_v57, %v390_v58  ;;  %v393_v3 = vld [vmem:[%s2323_s27 + $0x3c0] sm:$0xff]  ;;  %v2136_v9 = vcombine.low %v386_v57, %v390_v58  ;;  %v1522_v11 = vld [vmem:[%s2745_s4 + $0x8] sm:$0xff]  ;;  %v308_v53 = vld [vmem:[%s2323_s27 + $0x118] sm:$0xff] }
  0x32   : > { %1144 = vmatpush1.bf16.msra.mxu0 %v2078_v5  ;;  %1217 = vmatpush1.bf16.msra.mxu1 %v2080_v6  ;;  %v397_v4 = vld [vmem:[%s2323_s27 + $0x3e0] sm:$0xff]  ;;  %v394_v5 = vld [vmem:[%s2323_s27 + $0x3c8] sm:$0xff]  ;;  %v351_v35 = vld [vmem:[%s2323_s27 + $0x270] sm:$0xff] }
  0x33   : > { %1145 = vmatprep.subr.bf16.mxu0 %v2087_v7  ;;  %1218 = vmatprep.subr.bf16.mxu1 %v2089_v8  ;;  %v398_v6 = vld [vmem:[%s2323_s27 + $0x3e8] sm:$0xff]  ;;  %v2134_v7 = vcombine.low %v385_v55, %v389_v56  ;;  %v1521_v8 = vld [vmem:[%s2745_s4] sm:$0xff]  ;;  %v2143_v10 = vcombine.high %v393_v3, %v397_v4  ;;  %v2142_v17 = vcombine.low %v393_v3, %v397_v4  ;;  %v348_v36 = vld [vmem:[%s2323_s27 + $0x258] sm:$0xff] }
  0x34   : > { %431 = vperm.xlu0 %2221, %v405_v50   ;;  %446 = vperm.xlu1 %2222, %v408_v1   ;;  %v2145_v12 = vcombine.high %v394_v5, %v398_v6  ;;  %v2144_v19 = vcombine.low %v394_v5, %v398_v6  ;;  %v2436_v25 = vld [vmem:[%s2742_s1] ss:$8 sps:$4 sm:$0xff]   ;;  %v2465_v50 = vld [vmem:[%s2742_s1 + $0x24] ss:$8 sps:$4 sm:$0xff]   ;;  %v320_v1 = vld [vmem:[%s2323_s27 + $0x178] sm:$0xff] }
  0x35   : > { %v2487_v6 = vld [vmem:[%s2742_s1 + $0x34] ss:$8 sps:$4 sm:$0xff]  }
  0x36   : > { %1146 = vmatpush1.bf16.msra.mxu0 %v2086_v13  ;;  %1219 = vmatpush1.bf16.msra.mxu1 %v2088_v14  ;;  %v275_v13 = vld [vmem:[%s2323_s27 + $0x10] sm:$0xff] }
  0x37   : > { %1147 = vmatprep.subr.bf16.mxu0 %v2095_v15  ;;  %1220 = vmatprep.subr.bf16.mxu1 %v2097_v16  ;;  %v279_v14 = vld [vmem:[%s2323_s27 + $0x30] sm:$0xff]  ;;  %v276_v15 = vld [vmem:[%s2323_s27 + $0x18] sm:$0xff] }
  0x38   : > { %441 = vperm.xlu0 %2221, %v407_v61   ;;  %v280_v16 = vld [vmem:[%s2323_s27 + $0x38] sm:$0xff]  ;;  %1532 = vperm.xlu1 %2222, %v1522_v11   ;;  %v2027_v20 = vcombine.high %v275_v13, %v279_v14  ;;  %v2026_v28 = vcombine.low %v275_v13, %v279_v14  ;;  %v319_v61 = vld [vmem:[%s2323_s27 + $0x170] sm:$0xff] }
  0x3a   : > { %1148 = vmatpush1.bf16.msra.mxu0 %v2094_v21  ;;  %1221 = vmatpush1.bf16.msra.mxu1 %v2096_v22  ;;  %v1524_v21 = vld [vmem:[%s2745_s4 + $0x18] sm:$0xff]  ;;  %v2029_v22 = vcombine.high %v276_v15, %v280_v16 }
  0x3b   : > { %1149 = vmatprep.subr.bf16.mxu0 %v2103_v23  ;;  %1222 = vmatprep.subr.bf16.mxu1 %v2105_v24  ;;  %v283_v23 = vld [vmem:[%s2323_s27 + $0x50] sm:$0xff] }
  0x3c   : > { %1527 = vperm.xlu0 %2221, %v1521_v8   ;;  %v287_v24 = vld [vmem:[%s2323_s27 + $0x70] sm:$0xff]  ;;  %1542 = vperm.xlu1 %2222, %v1524_v21  }
  0x3d   : > { %v2034_v37 = vcombine.low %v283_v23, %v287_v24  ;;  %v327_v8 = vld [vmem:[%s2323_s27 + $0x1b0] sm:$0xff] }
  0x3e   : > { %1150 = vmatpush1.bf16.msra.mxu0 %v2102_v29  ;;  %1223 = vmatpush1.bf16.msra.mxu1 %v2104_v30  ;;  %v2028_v29 = vcombine.low %v276_v15, %v280_v16  ;;  %v2035_v30 = vcombine.high %v283_v23, %v287_v24  ;;  %v331_v15 = vld [vmem:[%s2323_s27 + $0x1d0] sm:$0xff] }
  0x3f   : > { %1151 = vmatprep.subr.bf16.mxu0 %v2111_v31  ;;  %1224 = vmatprep.subr.bf16.mxu1 %v2113_v32  ;;  %v2037_v31 = vcombine.high %v284_v26, %v288_v27  ;;  %v2443_v32 = vld [vmem:[%s2742_s1 + $0x14] ss:$8 sps:$4 sm:$0xff]  }
  0x40   : > { %1537 = vperm.xlu0 %2221, %v1523_v18   ;;  %v335_v16 = vld [vmem:[%s2323_s27 + $0x1f0] sm:$0xff]  ;;  %v332_v18 = vld [vmem:[%s2323_s27 + $0x1d8] sm:$0xff] }
  0x41   : > { %v339_v24 = vld [vmem:[%s2323_s27 + $0x210] sm:$0xff]  ;;  %v340_v27 = vld [vmem:[%s2323_s27 + $0x218] sm:$0xff] }
  0x42   : > { %1152 = vmatpush1.bf16.msra.mxu0 %v2110_v39  ;;  %1225 = vmatpush1.bf16.msra.mxu1 %v2112_v41  ;;  %v2043_v39 = vcombine.high %v291_v33, %v295_v34  ;;  %v299_v41 = vld [vmem:[%s2323_s27 + $0xd0] sm:$0xff] }
  0x43   : > { %1153 = vmatprep.subr.bf16.mxu0 %v2119_v42  ;;  %1226 = vmatprep.subr.bf16.mxu1 %v2121_v44  ;;  %v303_v42 = vld [vmem:[%s2323_s27 + $0xf0] sm:$0xff]  ;;  %v300_v44 = vld [vmem:[%s2323_s27 + $0xd8] sm:$0xff] }
  0x44   : > { %v2051_v48 = vcombine.high %v299_v41, %v303_v42  ;;  %v2050_v55 = vcombine.low %v299_v41, %v303_v42  ;;  %v2052_v56 = vcombine.low %v300_v44, %v304_v45  ;;  %v343_v26 = vld [vmem:[%s2323_s27 + $0x230] sm:$0xff] }
  0x45   : > { %v347_v34 = vld [vmem:[%s2323_s27 + $0x250] sm:$0xff] }
  0x46   : > { %1154 = vmatpush1.bf16.msra.mxu0 %v2118_v49  ;;  %1227 = vmatpush1.bf16.msra.mxu1 %v2120_v51  ;;  %v2053_v49 = vcombine.high %v300_v44, %v304_v45  ;;  %v307_v51 = vld [vmem:[%s2323_s27 + $0x110] sm:$0xff]  ;;  %v356_v45 = vld [vmem:[%s2323_s27 + $0x298] sm:$0xff] }
  0x47   : > { %1155 = vmatprep.subr.bf16.mxu0 %v2127_v52  ;;  %1228 = vmatprep.subr.bf16.mxu1 %v2129_v54  ;;  %v311_v52 = vld [vmem:[%s2323_s27 + $0x130] sm:$0xff]  ;;  %v312_v54 = vld [vmem:[%s2323_s27 + $0x138] sm:$0xff] }
  0x48   : > { %v2059_v57 = vcombine.high %v307_v51, %v311_v52  ;;  %v2061_v58 = vcombine.high %v308_v53, %v312_v54  ;;  %v2060_v3 = vcombine.low %v308_v53, %v312_v54  ;;  %v355_v42 = vld [vmem:[%s2323_s27 + $0x290] sm:$0xff]  ;;  %v364_v53 = vld [vmem:[%s2323_s27 + $0x2d8] sm:$0xff] }
  0x49   : > { %v359_v44 = vld [vmem:[%s2323_s27 + $0x2b0] sm:$0xff]  ;;  %v368_v54 = vld [vmem:[%s2323_s27 + $0x2f8] sm:$0xff] }
  0x4a   : > { %1156 = vmatpush1.bf16.msra.mxu0 %v2126_v60  ;;  %1229 = vmatpush1.bf16.msra.mxu1 %v2128_v62  ;;  %v315_v60 = vld [vmem:[%s2323_s27 + $0x150] sm:$0xff]  ;;  %v2480_v62 = vld [vmem:[%s2742_s1 + $0x20] ss:$8 sps:$4 sm:$0xff]  }
  0x4b   : > { %1157 = vmatprep.subr.bf16.mxu0 %v2135_v63  ;;  %1230 = vmatprep.subr.bf16.mxu1 %v2137_v2  ;;  %v316_v63 = vld [vmem:[%s2323_s27 + $0x158] sm:$0xff]  ;;  %v2058_v2 = vcombine.low %v307_v51, %v311_v52  ;;  %v2067_v4 = vcombine.high %v315_v60, %v319_v61  ;;  %v2066_v11 = vcombine.low %v315_v60, %v319_v61  ;;  %v363_v51 = vld [vmem:[%s2323_s27 + $0x2d0] sm:$0xff] }
  0x4c   : > { %v2069_v5 = vcombine.high %v316_v63, %v320_v1  ;;  %v367_v52 = vld [vmem:[%s2323_s27 + $0x2f0] sm:$0xff] }
  0x4d   : > { %v371_v60 = vld [vmem:[%s2323_s27 + $0x310] sm:$0xff] }
  0x4e   : > { %1158 = vmatpush1.bf16.msra.mxu0 %v2134_v7  ;;  %1231 = vmatpush1.bf16.msra.mxu1 %v2136_v9  ;;  %v323_v7 = vld [vmem:[%s2323_s27 + $0x190] sm:$0xff]  ;;  %v324_v9 = vld [vmem:[%s2323_s27 + $0x198] sm:$0xff] }
  0x4f   : > { %1159 = vmatprep.subr.bf16.mxu0 %v2143_v10  ;;  %1232 = vmatprep.subr.bf16.mxu1 %v2145_v12  ;;  %v328_v10 = vld [vmem:[%s2323_s27 + $0x1b8] sm:$0xff]  ;;  %v2068_v12 = vcombine.low %v316_v63, %v320_v1  ;;  %v2075_v13 = vcombine.high %v323_v7, %v327_v8  ;;  %v375_v61 = vld [vmem:[%s2323_s27 + $0x330] sm:$0xff] }
  0x50   : > { %v2077_v14 = vcombine.high %v324_v9, %v328_v10  ;;  %v2076_v21 = vcombine.low %v324_v9, %v328_v10  ;;  %v372_v63 = vld [vmem:[%s2323_s27 + $0x318] sm:$0xff] }
  0x51   : > { %v376_v1 = vld [vmem:[%s2323_s27 + $0x338] sm:$0xff] }
  0x52   : > { %1160 = vmatpush1.bf16.msra.mxu0 %v2142_v17  ;;  %1233 = vmatpush1.bf16.msra.mxu1 %v2144_v19  ;;  %v2502_v17 = vld [vmem:[%s2742_s1 + $0x30] ss:$8 sps:$4 sm:$0xff]  }
  0x53   : > { %1275 = vmatprep.subr.bf16.mxu0 %v2027_v20  ;;  %1348 = vmatprep.subr.bf16.mxu1 %v2029_v22  ;;  %v336_v19 = vld [vmem:[%s2323_s27 + $0x1f8] sm:$0xff]  ;;  %v2074_v20 = vcombine.low %v323_v7, %v327_v8  ;;  %v2083_v22 = vcombine.high %v331_v15, %v335_v16  ;;  %v379_v7 = vld [vmem:[%s2323_s27 + $0x350] sm:$0xff] }
  0x54   : > { %v2085_v23 = vcombine.high %v332_v18, %v336_v19  ;;  %v383_v8 = vld [vmem:[%s2323_s27 + $0x370] sm:$0xff]  ;;  %v380_v9 = vld [vmem:[%s2323_s27 + $0x358] sm:$0xff] }
  0x55   : > { %1162 = vmatmul.mubr.bf16.vlgmr.msra.gmra.mrb[0].mxu0 %v2436_v25  ;;  %1235 = vmatmul.mubr.bf16.vlgmr.msra.gmra.mrb[0].mxu1 %v2436_v25  ;;  %v384_v10 = vld [vmem:[%s2323_s27 + $0x378] sm:$0xff] }
  0x56   : > { %1276 = vmatpush1.bf16.msra.mxu0 %v2026_v28  ;;  %1349 = vmatpush1.bf16.msra.mxu1 %v2028_v29  ;;  %v344_v28 = vld [vmem:[%s2323_s27 + $0x238] sm:$0xff]  ;;  %v2082_v29 = vcombine.low %v331_v15, %v335_v16  ;;  %v387_v15 = vld [vmem:[%s2323_s27 + $0x390] sm:$0xff] }
  0x57   : > { %1277 = vmatprep.subr.bf16.mxu0 %v2035_v30  ;;  %1350 = vmatprep.subr.bf16.mxu1 %v2037_v31  ;;  %v2084_v30 = vcombine.low %v332_v18, %v336_v19  ;;  %v2091_v31 = vcombine.high %v339_v24, %v343_v26  ;;  %v2093_v33 = vcombine.high %v340_v27, %v344_v28  ;;  %v391_v16 = vld [vmem:[%s2323_s27 + $0x3b0] sm:$0xff]  ;;  %v388_v18 = vld [vmem:[%s2323_s27 + $0x398] sm:$0xff] }
  0x58   : > { %1171 = vmatprep.mubr.bf16.mxu0 %v2443_v32  ;;  %1244 = vmatprep.mubr.bf16.mxu1 %v2443_v32  ;;  %v392_v19 = vld [vmem:[%s2323_s27 + $0x3b8] sm:$0xff] }
  0x5a   : > { %1278 = vmatpush1.bf16.msra.mxu0 %v2034_v37  ;;  %1351 = vmatpush1.bf16.msra.mxu1 %v2036_v38  ;;  %v352_v37 = vld [vmem:[%s2323_s27 + $0x278] sm:$0xff]  ;;  %v2090_v38 = vcombine.low %v339_v24, %v343_v26  ;;  %v395_v24 = vld [vmem:[%s2323_s27 + $0x3d0] sm:$0xff] }
  0x5b   : > { %1279 = vmatprep.subr.bf16.mxu0 %v2043_v39  ;;  %1352 = vmatprep.subr.bf16.mxu1 %v2045_v40  ;;  %v2092_v39 = vcombine.low %v340_v27, %v344_v28  ;;  %v2099_v40 = vcombine.high %v347_v34, %v351_v35  ;;  %v2101_v41 = vcombine.high %v348_v36, %v352_v37  ;;  %v399_v26 = vld [vmem:[%s2323_s27 + $0x3f0] sm:$0xff]  ;;  %v396_v27 = vld [vmem:[%s2323_s27 + $0x3d8] sm:$0xff] }
  0x5c   : > { %v400_v28 = vld [vmem:[%s2323_s27 + $0x3f8] sm:$0xff] }
  0x5d   : > { %1172 = vmatmul.mubr.bf16.gmra.mrb[4].mxu0 %v2458_v43  ;;  %1245 = vmatmul.mubr.bf16.gmra.mrb[4].mxu1 %v2458_v43 }
  0x5e   : > { %1280 = vmatpush1.bf16.msra.mxu0 %v2042_v46  ;;  %1353 = vmatpush1.bf16.msra.mxu1 %v2044_v47  ;;  %v360_v46 = vld [vmem:[%s2323_s27 + $0x2b8] sm:$0xff]  ;;  %v2098_v47 = vcombine.low %v347_v34, %v351_v35  ;;  %v2146_v34 = vcombine.low %v395_v24, %v399_v26  ;;  %v2148_v35 = vcombine.low %v396_v27, %v400_v28 }
  0x5f   : > { %1281 = vmatprep.subr.bf16.mxu0 %v2051_v48  ;;  %1354 = vmatprep.subr.bf16.mxu1 %v2053_v49  ;;  %v2107_v48 = vcombine.high %v355_v42, %v359_v44  ;;  %v2109_v49 = vcombine.high %v356_v45, %v360_v46 }
  0x60   : > { %1181 = vmatprep.mubr.bf16.mxu0 %v2465_v50  ;;  %1254 = vmatprep.mubr.bf16.mxu1 %v2465_v50 }
  0x62   : > { %1282 = vmatpush1.bf16.msra.mxu0 %v2050_v55  ;;  %1355 = vmatpush1.bf16.msra.mxu1 %v2052_v56  ;;  %v2106_v55 = vcombine.low %v355_v42, %v359_v44  ;;  %v2108_v56 = vcombine.low %v356_v45, %v360_v46 }
  0x63   : > { %1283 = vmatprep.subr.bf16.mxu0 %v2059_v57  ;;  %1356 = vmatprep.subr.bf16.mxu1 %v2061_v58  ;;  %v2115_v57 = vcombine.high %v363_v51, %v367_v52  ;;  %v2117_v58 = vcombine.high %v364_v53, %v368_v54 }
  0x65   : > { %1182 = vmatmul.mubr.bf16.gmra.mrb[8].mxu0 %v2480_v62  ;;  %1255 = vmatmul.mubr.bf16.gmra.mrb[8].mxu1 %v2480_v62 }
  0x66   : > { %1284 = vmatpush1.bf16.msra.mxu0 %v2058_v2  ;;  %1357 = vmatpush1.bf16.msra.mxu1 %v2060_v3  ;;  %v2114_v2 = vcombine.low %v363_v51, %v367_v52  ;;  %v2116_v3 = vcombine.low %v364_v53, %v368_v54 }
  0x67   : > { %1285 = vmatprep.subr.bf16.mxu0 %v2067_v4  ;;  %1358 = vmatprep.subr.bf16.mxu1 %v2069_v5  ;;  %v2123_v4 = vcombine.high %v371_v60, %v375_v61  ;;  %v2125_v5 = vcombine.high %v372_v63, %v376_v1 }
  0x68   : > { %1191 = vmatprep.mubr.bf16.mxu0 %v2487_v6  ;;  %1264 = vmatprep.mubr.bf16.mxu1 %v2487_v6 }
  0x6a   : > { %1286 = vmatpush1.bf16.msra.mxu0 %v2066_v11  ;;  %1359 = vmatpush1.bf16.msra.mxu1 %v2068_v12  ;;  %v2122_v11 = vcombine.low %v371_v60, %v375_v61  ;;  %v2124_v12 = vcombine.low %v372_v63, %v376_v1 }
  0x6b   : > { %1287 = vmatprep.subr.bf16.mxu0 %v2075_v13  ;;  %1360 = vmatprep.subr.bf16.mxu1 %v2077_v14  ;;  %v2131_v13 = vcombine.high %v379_v7, %v383_v8  ;;  %v2133_v14 = vcombine.high %v380_v9, %v384_v10 }
  0x6d   : > { %1192 = vmatmul.mubr.bf16.gmra.mrb[12].mxu0 %v2502_v17  ;;  %1265 = vmatmul.mubr.bf16.gmra.mrb[12].mxu1 %v2502_v17 }
  0x6e   : > { %1288 = vmatpush1.bf16.msra.mxu0 %v2074_v20  ;;  %1361 = vmatpush1.bf16.msra.mxu1 %v2076_v21  ;;  %v2130_v20 = vcombine.low %v379_v7, %v383_v8  ;;  %v2132_v21 = vcombine.low %v380_v9, %v384_v10 }
  0x6f   : > { %1289 = vmatprep.subr.bf16.mxu0 %v2083_v22  ;;  %1362 = vmatprep.subr.bf16.mxu1 %v2085_v23  ;;  %v2139_v22 = vcombine.high %v387_v15, %v391_v16  ;;  %v2141_v23 = vcombine.high %v388_v18, %v392_v19 }
  0x70   : > { %1307 = vmatprep.mubr.bf16.mxu0 %v2313_v0  ;;  %1380 = vmatprep.mubr.bf16.mxu1 %v2313_v0  ;;  %v2100_v0 = vcombine.low %v348_v36, %v352_v37 }
  0x72   : > { %1290 = vmatpush1.bf16.msra.mxu0 %v2082_v29  ;;  %1363 = vmatpush1.bf16.msra.mxu1 %v2084_v30  ;;  %v2138_v29 = vcombine.low %v387_v15, %v391_v16  ;;  %v2140_v30 = vcombine.low %v388_v18, %v392_v19 }
  0x73   : > { %1291 = vmatprep.subr.bf16.mxu0 %v2091_v31  ;;  %1364 = vmatprep.subr.bf16.mxu1 %v2093_v33  ;;  %v2147_v31 = vcombine.high %v395_v24, %v399_v26  ;;  %v2149_v33 = vcombine.high %v396_v27, %v400_v28 }
  0x76   : > { %1292 = vmatpush1.bf16.msra.mxu0 %v2090_v38  ;;  %1365 = vmatpush1.bf16.msra.mxu1 %v2092_v39 }
  0x77   : > { %1293 = vmatprep.subr.bf16.mxu0 %v2099_v40  ;;  %1366 = vmatprep.subr.bf16.mxu1 %v2101_v41 }
  0x7a   : > { %1294 = vmatpush1.bf16.msra.mxu0 %v2098_v47  ;;  %1367 = vmatpush1.bf16.msra.mxu1 %v2100_v0 }
  0x7b   : > { %1295 = vmatprep.subr.bf16.mxu0 %v2107_v48  ;;  %1368 = vmatprep.subr.bf16.mxu1 %v2109_v49 }
  0x7e   : > { %1296 = vmatpush1.bf16.msra.mxu0 %v2106_v55  ;;  %1369 = vmatpush1.bf16.msra.mxu1 %v2108_v56 }
  0x7f   : > { %1297 = vmatprep.subr.bf16.mxu0 %v2115_v57  ;;  %1370 = vmatprep.subr.bf16.mxu1 %v2117_v58 }
  0x82   : > { %1298 = vmatpush1.bf16.msra.mxu0 %v2114_v2  ;;  %1371 = vmatpush1.bf16.msra.mxu1 %v2116_v3 }
  0x83   : > { %1299 = vmatprep.subr.bf16.mxu0 %v2123_v4  ;;  %1372 = vmatprep.subr.bf16.mxu1 %v2125_v5 }
  0x86   : > { %1300 = vmatpush1.bf16.msra.mxu0 %v2122_v11  ;;  %1373 = vmatpush1.bf16.msra.mxu1 %v2124_v12 }
  0x87   : > { %1301 = vmatprep.subr.bf16.mxu0 %v2131_v13  ;;  %1374 = vmatprep.subr.bf16.mxu1 %v2133_v14 }
  0x8a   : > { %1302 = vmatpush1.bf16.msra.mxu0 %v2130_v20  ;;  %1375 = vmatpush1.bf16.msra.mxu1 %v2132_v21 }
  0x8b   : > { %1303 = vmatprep.subr.bf16.mxu0 %v2139_v22  ;;  %1376 = vmatprep.subr.bf16.mxu1 %v2141_v23 }
  0x8e   : > { %1304 = vmatpush1.bf16.msra.mxu0 %v2138_v29  ;;  %1377 = vmatpush1.bf16.msra.mxu1 %v2140_v30 }
  0x8f   : > { %1305 = vmatprep.subr.bf16.mxu0 %v2147_v31  ;;  %1378 = vmatprep.subr.bf16.mxu1 %v2149_v33 }
  0x92   : > { %1306 = vmatpush1.bf16.msra.mxu0 %v2146_v34  ;;  %1379 = vmatpush1.bf16.msra.mxu1 %v2148_v35 }
  0x95   : > { %1308 = vmatmul.mubr.bf16.vlgmr.msra.gmra.mrb[16].mxu0 %v2436_v25  ;;  %1381 = vmatmul.mubr.bf16.vlgmr.msra.gmra.mrb[16].mxu1 %v2436_v25 }
  0x96   : > { %1317 = vmatprep.mubr.bf16.mxu0 %v2443_v32  ;;  %1390 = vmatprep.mubr.bf16.mxu1 %v2443_v32 }
  0x9d   : > { %1318 = vmatmul.mubr.bf16.gmra.mrb[20].mxu0 %v2458_v43  ;;  %1391 = vmatmul.mubr.bf16.gmra.mrb[20].mxu1 %v2458_v43 }
  0x9e   : > { %1327 = vmatprep.mubr.bf16.mxu0 %v2465_v50  ;;  %1400 = vmatprep.mubr.bf16.mxu1 %v2465_v50 }
  0xa3   : > { %v2560_v32 = vpop.permute.xlu1 %421 }
  0xa5   : > { %1328 = vmatmul.mubr.bf16.gmra.mrb[24].mxu0 %v2480_v62  ;;  %1401 = vmatmul.mubr.bf16.gmra.mrb[24].mxu1 %v2480_v62 }
  0xa6   : > { %1337 = vmatprep.mubr.bf16.mxu0 %v2487_v6  ;;  %1410 = vmatprep.mubr.bf16.mxu1 %v2487_v6 }
  0xa7   : > { %v2572_v63 = vpop.permute.xlu1 %426 }
  0xab   : > { %v2558_v25 = vpop.permute.xlu0 %411 }
  0xad   : > { %1338 = vmatmul.mubr.bf16.gmra.mrb[28].mxu0 %v2502_v17  ;;  %1411 = vmatmul.mubr.bf16.gmra.mrb[28].mxu1 %v2502_v17 }
  0xae   : > { %1594 = vmatprep.mubr.bf16.mxu0 %v2261_v59  ;;  %1647 = vmatprep.mubr.bf16.mxu1 %v2261_v59 }
  0xaf   : > { %v2562_v50 = vpop.permute.xlu0 %416  ;;  %v2584_v33 = vpop.permute.xlu1 %436 }
  0xb3   : > { %v2582_v26 = vpop.permute.xlu0 %431 }
 0x128   : > { %v1163_v43 = vpop.f32.mrb[0].mxu0  ;;  %v1236_v36 = vpop.f32.mrb[0].mxu1 }
 0x129   : > { %v1164_v62 = vadd.f32 %v1163_v43, %v2558_v25  ;;  %v1165_v37 = vpop.f32.mrb[1].mxu0  ;;  %v1237_v6 = vadd.f32 %v1236_v36, %v2558_v25  ;;  %v1238_v17 = vpop.f32.mrb[1].mxu1 }
 0x12a   : > { %v1166_v38 = vadd.f32 %v1165_v37, %v2558_v25  ;;  %v1167_v39 = vpop.f32.mrb[2].mxu0  ;;  %v1239_v41 = vadd.f32 %v1238_v17, %v2558_v25  ;;  %v1240_v44 = vpop.f32.mrb[2].mxu1 }
 0x12b   : > { %v1421_v40 = vmax.f32 %v1164_v62, 0.0  ;;  %v1168_v42 = vadd.f32 %v1167_v39, %v2562_v50  ;;  %v1169_v45 = vpop.f32.mrb[3].mxu0  ;;  %v1423_v46 = vmax.f32 %v1237_v6, 0.0  ;;  %v1241_v47 = vadd.f32 %v1240_v44, %v2562_v50  ;;  %v1242_v48 = vpop.f32.mrb[3].mxu1 }
 0x12c   : > { %v1170_v0 = vadd.f32 %v1169_v45, %v2562_v50  ;;  %v1243_v51 = vadd.f32 %v1242_v48, %v2562_v50  ;;  %v1422_v52 = vmax.f32 %v1166_v38, 0.0  ;;  %v1424_v55 = vmax.f32 %v1239_v41, 0.0 }
 0x12d   : > { %v1429_v49 = vmax.f32 %v1168_v42, 0.0  ;;  %v1431_v53 = vmax.f32 %v1241_v47, 0.0 }
 0x12e   : > { %v1430_v54 = vmax.f32 %v1170_v0, 0.0  ;;  %v1432_v57 = vmax.f32 %v1243_v51, 0.0 }
 0x12f   : > { %v1489_v56 = vpack.c.bf16 %v1429_v49, %v1421_v40  ;;  %v1491_v58 = vpack.c.bf16 %v1431_v53, %v1423_v46 }
 0x130   : > { %v1490_v60 = vpack.c.bf16 %v1430_v54, %v1422_v52  ;;  %v1173_v61 = vpop.f32.mrb[4].mxu0  ;;  %v1492_v1 = vpack.c.bf16 %v1432_v57, %v1424_v55  ;;  %v1246_v3 = vpop.f32.mrb[4].mxu1 }
 0x131   : > { %v1174_v2 = vadd.f32 %v1173_v61, %v2560_v32  ;;  %v1175_v4 = vpop.f32.mrb[5].mxu0  ;;  %v1247_v5 = vadd.f32 %v1246_v3, %v2560_v32  ;;  %v1248_v8 = vpop.f32.mrb[5].mxu1 }
 0x132   : > { %1562 = vmatprep.subr.bf16.mxu0 %v1490_v60  ;;  %v1176_v7 = vadd.f32 %v1175_v4, %v2560_v32  ;;  %v1177_v9 = vpop.f32.mrb[6].mxu0  ;;  %1615 = vmatprep.subr.bf16.mxu1 %v1492_v1  ;;  %v1249_v11 = vadd.f32 %v1248_v8, %v2560_v32  ;;  %v1250_v12 = vpop.f32.mrb[6].mxu1 }
 0x133   : > { %1563 = vmatpush1.bf16.msra.mxu0 %v1489_v56  ;;  %v1437_v10 = vmax.f32 %v1174_v2, 0.0  ;;  %v1179_v13 = vpop.f32.mrb[7].mxu0  ;;  %v1178_v14 = vadd.f32 %v1177_v9, %v2572_v63  ;;  %1616 = vmatpush1.bf16.msra.mxu1 %v1491_v58  ;;  %v1439_v15 = vmax.f32 %v1247_v5, 0.0  ;;  %v1252_v19 = vpop.f32.mrb[7].mxu1  ;;  %v1251_v20 = vadd.f32 %v1250_v12, %v2572_v63 }
 0x134   : > { %v1438_v16 = vmax.f32 %v1176_v7, 0.0  ;;  %v1180_v18 = vadd.f32 %v1179_v13, %v2572_v63  ;;  %v1440_v21 = vmax.f32 %v1249_v11, 0.0  ;;  %v1253_v22 = vadd.f32 %v1252_v19, %v2572_v63  ;;  %v2594_v54 = vpop.permute.xlu0 %441  ;;  %v2596_v61 = vpop.permute.xlu1 %446 }
 0x135   : > { %v1445_v23 = vmax.f32 %v1178_v14, 0.0  ;;  %v1447_v27 = vmax.f32 %v1251_v20, 0.0 }
 0x136   : > { %v1446_v24 = vmax.f32 %v1180_v18, 0.0  ;;  %v1448_v28 = vmax.f32 %v1253_v22, 0.0 }
 0x137   : > { %v1497_v29 = vpack.c.bf16 %v1445_v23, %v1437_v10  ;;  %v1499_v34 = vpack.c.bf16 %v1447_v27, %v1439_v15 }
 0x138   : > { %v1498_v30 = vpack.c.bf16 %v1446_v24, %v1438_v16  ;;  %v1183_v31 = vpop.f32.mrb[8].mxu0  ;;  %v1500_v35 = vpack.c.bf16 %v1448_v28, %v1440_v21  ;;  %v1256_v43 = vpop.f32.mrb[8].mxu1 }
 0x139   : > { %v1185_v62 = vpop.f32.mrb[9].mxu0  ;;  %v1184_v36 = vadd.f32 %v1183_v31, %v2582_v26  ;;  %v1258_v37 = vpop.f32.mrb[9].mxu1  ;;  %v1257_v17 = vadd.f32 %v1256_v43, %v2582_v26  ;;  %v2609_v43 = vld [vmem:[%s2744_s3] sm:$0xff]  }
 0x13a   : > { %v1187_v6 = vpop.f32.mrb[10].mxu0  ;;  %v1186_v38 = vadd.f32 %v1185_v62, %v2582_v26  ;;  %1564 = vmatprep.subr.bf16.mxu0 %v1498_v30  ;;  %v1260_v39 = vpop.f32.mrb[10].mxu1  ;;  %v1259_v41 = vadd.f32 %v1258_v37, %v2582_v26  ;;  %1617 = vmatprep.subr.bf16.mxu1 %v1500_v35  ;;  %v2620_v62 = vld [vmem:[%s2744_s3 + $0x8] sm:$0xff]  }
 0x13b   : > { %v1189_v40 = vpop.f32.mrb[11].mxu0  ;;  %1565 = vmatpush1.bf16.msra.mxu0 %v1497_v29  ;;  %v1188_v42 = vadd.f32 %v1187_v6, %v2584_v33  ;;  %v1453_v44 = vmax.f32 %v1184_v36, 0.0  ;;  %v1262_v47 = vpop.f32.mrb[11].mxu1  ;;  %1618 = vmatpush1.bf16.msra.mxu1 %v1499_v34  ;;  %v1261_v0 = vadd.f32 %v1260_v39, %v2584_v33  ;;  %v1455_v48 = vmax.f32 %v1257_v17, 0.0 }
 0x13c   : > { %v1190_v45 = vadd.f32 %v1189_v40, %v2584_v33  ;;  %v1454_v46 = vmax.f32 %v1186_v38, 0.0  ;;  %v1263_v49 = vadd.f32 %v1262_v47, %v2584_v33  ;;  %v1456_v51 = vmax.f32 %v1259_v41, 0.0 }
 0x13d   : > { %v1461_v52 = vmax.f32 %v1188_v42, 0.0  ;;  %v1463_v55 = vmax.f32 %v1261_v0, 0.0 }
 0x13e   : > { %v1462_v53 = vmax.f32 %v1190_v45, 0.0  ;;  %v1464_v56 = vmax.f32 %v1263_v49, 0.0 }
 0x13f   : > { %v1505_v57 = vpack.c.bf16 %v1461_v52, %v1453_v44  ;;  %v1507_v1 = vpack.c.bf16 %v1463_v55, %v1455_v48 }
 0x140   : > { %v1506_v58 = vpack.c.bf16 %v1462_v53, %v1454_v46  ;;  %v1193_v60 = vpop.f32.mrb[12].mxu0  ;;  %v1508_v2 = vpack.c.bf16 %v1464_v56, %v1456_v51  ;;  %v1266_v3 = vpop.f32.mrb[12].mxu1 }
 0x141   : > { %v1195_v4 = vpop.f32.mrb[13].mxu0  ;;  %v1194_v5 = vadd.f32 %v1193_v60, %v2594_v54  ;;  %v1268_v7 = vpop.f32.mrb[13].mxu1  ;;  %v1267_v10 = vadd.f32 %v1266_v3, %v2594_v54 }
 0x142   : > { %v1197_v8 = vpop.f32.mrb[14].mxu0  ;;  %v1196_v9 = vadd.f32 %v1195_v4, %v2594_v54  ;;  %1566 = vmatprep.subr.bf16.mxu0 %v1506_v58  ;;  %v1270_v11 = vpop.f32.mrb[14].mxu1  ;;  %v1269_v13 = vadd.f32 %v1268_v7, %v2594_v54  ;;  %1619 = vmatprep.subr.bf16.mxu1 %v1508_v2 }
 0x143   : > { %v1199_v12 = vpop.f32.mrb[15].mxu0  ;;  %1567 = vmatpush1.bf16.msra.mxu0 %v1505_v57  ;;  %v1198_v14 = vadd.f32 %v1197_v8, %v2596_v61  ;;  %v1469_v15 = vmax.f32 %v1194_v5, 0.0  ;;  %v1272_v19 = vpop.f32.mrb[15].mxu1  ;;  %1620 = vmatpush1.bf16.msra.mxu1 %v1507_v1  ;;  %v1271_v20 = vadd.f32 %v1270_v11, %v2596_v61  ;;  %v1471_v21 = vmax.f32 %v1267_v10, 0.0 }
 0x144   : > { %v1200_v16 = vadd.f32 %v1199_v12, %v2596_v61  ;;  %v1470_v18 = vmax.f32 %v1196_v9, 0.0  ;;  %v1273_v22 = vadd.f32 %v1272_v19, %v2596_v61  ;;  %v1472_v23 = vmax.f32 %v1269_v13, 0.0 }
 0x145   : > { %v1477_v24 = vmax.f32 %v1198_v14, 0.0  ;;  %v1479_v28 = vmax.f32 %v1271_v20, 0.0 }
 0x146   : > { %v1478_v27 = vmax.f32 %v1200_v16, 0.0  ;;  %v1480_v29 = vmax.f32 %v1273_v22, 0.0 }
 0x147   : > { %v1513_v30 = vpack.c.bf16 %v1477_v24, %v1469_v15  ;;  %v1515_v34 = vpack.c.bf16 %v1479_v28, %v1471_v21 }
 0x148   : > { %v1514_v31 = vpack.c.bf16 %v1478_v27, %v1470_v18  ;;  %v1516_v35 = vpack.c.bf16 %v1480_v29, %v1472_v23 }
 0x14a   : > { %1568 = vmatprep.subr.bf16.mxu0 %v1514_v31  ;;  %1621 = vmatprep.subr.bf16.mxu1 %v1516_v35 }
 0x14b   : > { %1569 = vmatpush1.bf16.msra.mxu0 %v1513_v30  ;;  %1622 = vmatpush1.bf16.msra.mxu1 %v1515_v34 }
 0x14e   : > { %2152 = vmatmul.mubr.msk.bf16.vlgmr.msra.gmra.mrb[32].mxu0 %vm1555_vm0, %v2609_v43  ;;  %2154 = vmatmul.mubr.msk.bf16.vlgmr.msra.gmra.mrb[32].mxu1 %vm1555_vm0, %v2609_v43 }
 0x14f   : > { %1604 = vmatprep.mubr.bf16.mxu0 %v2261_v59  ;;  %1657 = vmatprep.mubr.bf16.mxu1 %v2261_v59 }
 0x156   : > { %2153 = vmatmul.mubr.msk.bf16.gmra.mrb[36].mxu0 %vm1555_vm0, %v2620_v62  ;;  %2155 = vmatmul.mubr.msk.bf16.gmra.mrb[36].mxu1 %vm1555_vm0, %v2620_v62 }
 0x157   : > { %1700 = vmatprep.mubr.bf16.mxu0 %v2261_v59  ;;  %1753 = vmatprep.mubr.bf16.mxu1 %v2261_v59 }
 0x168   : > { %v1309_v36 = vpop.f32.mrb[16].mxu0  ;;  %v1382_v6 = vpop.f32.mrb[16].mxu1 }
 0x169   : > { %v1310_v37 = vadd.f32 %v1309_v36, %v2558_v25  ;;  %v1311_v38 = vpop.f32.mrb[17].mxu0  ;;  %v1383_v17 = vadd.f32 %v1382_v6, %v2558_v25  ;;  %v1384_v40 = vpop.f32.mrb[17].mxu1 }
 0x16a   : > { %v1312_v39 = vadd.f32 %v1311_v38, %v2558_v25  ;;  %v1313_v41 = vpop.f32.mrb[18].mxu0  ;;  %v1385_v42 = vadd.f32 %v1384_v40, %v2558_v25  ;;  %v1386_v45 = vpop.f32.mrb[18].mxu1 }
 0x16b   : > { %v1314_v44 = vadd.f32 %v1313_v41, %v2562_v50  ;;  %v1315_v46 = vpop.f32.mrb[19].mxu0  ;;  %v1387_v47 = vadd.f32 %v1386_v45, %v2562_v50  ;;  %v1388_v48 = vpop.f32.mrb[19].mxu1  ;;  %v1425_v49 = vmax.f32 %v1310_v37, 0.0  ;;  %v1427_v53 = vmax.f32 %v1383_v17, 0.0 }
 0x16c   : > { %v1316_v0 = vadd.f32 %v1315_v46, %v2562_v50  ;;  %v1389_v52 = vadd.f32 %v1388_v48, %v2562_v50  ;;  %v1426_v55 = vmax.f32 %v1312_v39, 0.0  ;;  %v1428_v58 = vmax.f32 %v1385_v42, 0.0 }
 0x16d   : > { %v1433_v51 = vmax.f32 %v1314_v44, 0.0  ;;  %v1435_v56 = vmax.f32 %v1387_v47, 0.0 }
 0x16e   : > { %v1434_v57 = vmax.f32 %v1316_v0, 0.0  ;;  %v1436_v25 = vmax.f32 %v1389_v52, 0.0 }
 0x16f   : > { %v1493_v60 = vpack.c.bf16 %v1433_v51, %v1425_v49  ;;  %v1495_v1 = vpack.c.bf16 %v1435_v56, %v1427_v53 }
 0x170   : > { %v1494_v2 = vpack.c.bf16 %v1434_v57, %v1426_v55  ;;  %v1319_v3 = vpop.f32.mrb[20].mxu0  ;;  %v1496_v4 = vpack.c.bf16 %v1436_v25, %v1428_v58  ;;  %v1392_v7 = vpop.f32.mrb[20].mxu1 }
 0x171   : > { %v1320_v5 = vadd.f32 %v1319_v3, %v2560_v32  ;;  %v1321_v8 = vpop.f32.mrb[21].mxu0  ;;  %v1393_v9 = vadd.f32 %v1392_v7, %v2560_v32  ;;  %v1394_v50 = vpop.f32.mrb[21].mxu1 }
 0x172   : > { %v1322_v10 = vadd.f32 %v1321_v8, %v2560_v32  ;;  %v1323_v11 = vpop.f32.mrb[22].mxu0  ;;  %1668 = vmatprep.subr.bf16.mxu0 %v1494_v2  ;;  %v1395_v12 = vadd.f32 %v1394_v50, %v2560_v32  ;;  %v1396_v14 = vpop.f32.mrb[22].mxu1  ;;  %1721 = vmatprep.subr.bf16.mxu1 %v1496_v4 }
 0x173   : > { %v1324_v13 = vadd.f32 %v1323_v11, %v2572_v63  ;;  %v1325_v15 = vpop.f32.mrb[23].mxu0  ;;  %1669 = vmatpush1.bf16.msra.mxu0 %v1493_v60  ;;  %v1397_v16 = vadd.f32 %v1396_v14, %v2572_v63  ;;  %v1398_v19 = vpop.f32.mrb[23].mxu1  ;;  %1722 = vmatpush1.bf16.msra.mxu1 %v1495_v1  ;;  %v1441_v20 = vmax.f32 %v1320_v5, 0.0  ;;  %v1443_v23 = vmax.f32 %v1393_v9, 0.0 }
 0x174   : > { %v1326_v18 = vadd.f32 %v1325_v15, %v2572_v63  ;;  %v1399_v22 = vadd.f32 %v1398_v19, %v2572_v63  ;;  %v1442_v24 = vmax.f32 %v1322_v10, 0.0  ;;  %v1444_v28 = vmax.f32 %v1395_v12, 0.0 }
 0x175   : > { %v1449_v21 = vmax.f32 %v1324_v13, 0.0  ;;  %v1451_v27 = vmax.f32 %v1397_v16, 0.0 }
 0x176   : > { %v1450_v32 = vmax.f32 %v1326_v18, 0.0  ;;  %v1452_v30 = vmax.f32 %v1399_v22, 0.0 }
 0x177   : > { %v1501_v29 = vpack.c.bf16 %v1449_v21, %v1441_v20  ;;  %v1503_v31 = vpack.c.bf16 %v1451_v27, %v1443_v23 }
 0x178   : > { %v1502_v34 = vpack.c.bf16 %v1450_v32, %v1442_v24  ;;  %v1329_v35 = vpop.f32.mrb[24].mxu0  ;;  %v1504_v36 = vpack.c.bf16 %v1452_v30, %v1444_v28  ;;  %v1402_v6 = vpop.f32.mrb[24].mxu1 }
 0x179   : > { %v1330_v37 = vadd.f32 %v1329_v35, %v2582_v26  ;;  %v1331_v38 = vpop.f32.mrb[25].mxu0  ;;  %v1403_v17 = vadd.f32 %v1402_v6, %v2582_v26  ;;  %v1404_v63 = vpop.f32.mrb[25].mxu1 }
 0x17a   : > { %v1332_v39 = vadd.f32 %v1331_v38, %v2582_v26  ;;  %v1333_v40 = vpop.f32.mrb[26].mxu0  ;;  %1670 = vmatprep.subr.bf16.mxu0 %v1502_v34  ;;  %v1405_v41 = vadd.f32 %v1404_v63, %v2582_v26  ;;  %v1406_v44 = vpop.f32.mrb[26].mxu1  ;;  %1723 = vmatprep.subr.bf16.mxu1 %v1504_v36 }
 0x17b   : > { %v1334_v42 = vadd.f32 %v1333_v40, %v2584_v33  ;;  %v1335_v45 = vpop.f32.mrb[27].mxu0  ;;  %1671 = vmatpush1.bf16.msra.mxu0 %v1501_v29  ;;  %v1407_v46 = vadd.f32 %v1406_v44, %v2584_v33  ;;  %v1408_v0 = vpop.f32.mrb[27].mxu1  ;;  %1724 = vmatpush1.bf16.msra.mxu1 %v1503_v31  ;;  %v1457_v48 = vmax.f32 %v1330_v37, 0.0  ;;  %v1459_v52 = vmax.f32 %v1403_v17, 0.0 }
 0x17c   : > { %v1336_v47 = vadd.f32 %v1335_v45, %v2584_v33  ;;  %v1409_v51 = vadd.f32 %v1408_v0, %v2584_v33  ;;  %v1458_v53 = vmax.f32 %v1332_v39, 0.0  ;;  %v1460_v56 = vmax.f32 %v1405_v41, 0.0  ;;  %v2672_v30 = vpop.permute.xlu1 %1532 }
 0x17d   : > { %v1465_v49 = vmax.f32 %v1334_v42, 0.0  ;;  %v1467_v55 = vmax.f32 %v1407_v46, 0.0 }
 0x17e   : > { %v1466_v26 = vmax.f32 %v1336_v47, 0.0  ;;  %v1468_v58 = vmax.f32 %v1409_v51, 0.0 }
 0x17f   : > { %v1509_v57 = vpack.c.bf16 %v1465_v49, %v1457_v48  ;;  %v1511_v60 = vpack.c.bf16 %v1467_v55, %v1459_v52 }
 0x180   : > { %v1510_v25 = vpack.c.bf16 %v1466_v26, %v1458_v53  ;;  %v1339_v1 = vpop.f32.mrb[28].mxu0  ;;  %v1512_v2 = vpack.c.bf16 %v1468_v58, %v1460_v56  ;;  %v1412_v4 = vpop.f32.mrb[28].mxu1 }
 0x181   : > { %v1340_v3 = vadd.f32 %v1339_v1, %v2594_v54  ;;  %v1341_v5 = vpop.f32.mrb[29].mxu0  ;;  %v1413_v7 = vadd.f32 %v1412_v4, %v2594_v54  ;;  %v1414_v33 = vpop.f32.mrb[29].mxu1 }
 0x182   : > { %v1342_v8 = vadd.f32 %v1341_v5, %v2594_v54  ;;  %v1343_v9 = vpop.f32.mrb[30].mxu0  ;;  %1672 = vmatprep.subr.bf16.mxu0 %v1510_v25  ;;  %v1415_v10 = vadd.f32 %v1414_v33, %v2594_v54  ;;  %v1416_v11 = vpop.f32.mrb[30].mxu1  ;;  %1725 = vmatprep.subr.bf16.mxu1 %v1512_v2 }
 0x183   : > { %v1344_v50 = vadd.f32 %v1343_v9, %v2596_v61  ;;  %v1345_v12 = vpop.f32.mrb[31].mxu0  ;;  %1673 = vmatpush1.bf16.msra.mxu0 %v1509_v57  ;;  %v1417_v13 = vadd.f32 %v1416_v11, %v2596_v61  ;;  %v1418_v15 = vpop.f32.mrb[31].mxu1  ;;  %1726 = vmatpush1.bf16.msra.mxu1 %v1511_v60  ;;  %v1473_v16 = vmax.f32 %v1340_v3, 0.0  ;;  %v1475_v20 = vmax.f32 %v1413_v7, 0.0 }
 0x184   : > { %v1346_v14 = vadd.f32 %v1345_v12, %v2596_v61  ;;  %v1419_v19 = vadd.f32 %v1418_v15, %v2596_v61  ;;  %v1474_v21 = vmax.f32 %v1342_v8, 0.0  ;;  %v1476_v23 = vmax.f32 %v1415_v10, 0.0  ;;  %v2670_v61 = vpop.permute.xlu0 %1527  ;;  %v2690_v26 = vpop.permute.xlu1 %1542 }
 0x185   : > { %v1481_v18 = vmax.f32 %v1344_v50, 0.0  ;;  %v1483_v22 = vmax.f32 %v1417_v13, 0.0 }
 0x186   : > { %v1482_v54 = vmax.f32 %v1346_v14, 0.0  ;;  %v1484_v27 = vmax.f32 %v1419_v19, 0.0 }
 0x187   : > { %v1517_v24 = vpack.c.bf16 %v1481_v18, %v1473_v16  ;;  %v1519_v32 = vpack.c.bf16 %v1483_v22, %v1475_v20 }
 0x188   : > { %v1518_v28 = vpack.c.bf16 %v1482_v54, %v1474_v21  ;;  %v1520_v29 = vpack.c.bf16 %v1484_v27, %v1476_v23  ;;  %v2688_v52 = vpop.permute.xlu0 %1537 }
 0x18a   : > { %1674 = vmatprep.subr.bf16.mxu0 %v1518_v28  ;;  %1727 = vmatprep.subr.bf16.mxu1 %v1520_v29 }
 0x18b   : > { %1675 = vmatpush1.bf16.msra.mxu0 %v1517_v24  ;;  %1728 = vmatpush1.bf16.msra.mxu1 %v1519_v32 }
 0x18e   : > { %2156 = vmatmul.mubr.msk.bf16.vlgmr.msra.gmra.mrb[40].mxu0 %vm1555_vm0, %v2609_v43  ;;  %2158 = vmatmul.mubr.msk.bf16.vlgmr.msra.gmra.mrb[40].mxu1 %vm1555_vm0, %v2609_v43 }
 0x18f   : > { %1710 = vmatprep.mubr.bf16.mxu0 %v2261_v59  ;;  %1763 = vmatprep.mubr.bf16.mxu1 %v2261_v59 }
 0x196   : > { %2157 = vmatmul.mubr.msk.bf16.gmra.mrb[44].mxu0 %vm1555_vm0, %v2620_v62  ;;  %2159 = vmatmul.mubr.msk.bf16.gmra.mrb[44].mxu1 %vm1555_vm0, %v2620_v62 }
 0x221   : > { %v1596_v31 = vpop.f32.mrb[32].mxu0  ;;  %v1649_v35 = vpop.f32.mrb[32].mxu1 }
 0x222   : > { %v1597_v34 = vadd.f32 %v1596_v31, %v2670_v61  ;;  %v1598_v36 = vpop.f32.mrb[33].mxu0  ;;  %v1650_v43 = vadd.f32 %v1649_v35, %v2670_v61  ;;  %v1651_v37 = vpop.f32.mrb[33].mxu1 }
 0x223   : > { %v1599_v59 = vadd.f32 %v1598_v36, %v2670_v61  ;;  %v1600_v6 = vpop.f32.mrb[34].mxu0  ;;  %v1652_v17 = vadd.f32 %v1651_v37, %v2670_v61  ;;  %v1653_v39 = vpop.f32.mrb[34].mxu1 }
 0x224   : > { %v1774_v38 = vmax.f32 %v1597_v34, 0.0  ;;  %v1601_v62 = vadd.f32 %v1600_v6, %v2672_v30  ;;  %v1602_v63 = vpop.f32.mrb[35].mxu0  ;;  %v1776_v40 = vmax.f32 %v1650_v43, 0.0  ;;  %v1654_v42 = vadd.f32 %v1653_v39, %v2672_v30  ;;  %v1655_v45 = vpop.f32.mrb[35].mxu1 }
 0x225   : > { %v1775_v41 = vmax.f32 %v1599_v59, 0.0  ;;  %v1603_v44 = vadd.f32 %v1602_v63, %v2672_v30  ;;  %v1777_v46 = vmax.f32 %v1652_v17, 0.0  ;;  %v1656_v0 = vadd.f32 %v1655_v45, %v2672_v30 }
 0x226   : > { %v1782_v47 = vmax.f32 %v1601_v62, 0.0  ;;  %v1784_v49 = vmax.f32 %v1654_v42, 0.0 }
 0x227   : > { %v2180_v48 = vpack.c.bf16 %v1775_v41, %v1774_v38  ;;  %v1783_v51 = vmax.f32 %v1603_v44, 0.0  ;;  %v2181_v53 = vpack.c.bf16 %v1777_v46, %v1776_v40  ;;  %v1785_v55 = vmax.f32 %v1656_v0, 0.0 }
 0x229   : > { %1902 = vst [vmem:[%s2685_s6] sm:$0xff] %v2180_v48  ;;  %v2184_v56 = vpack.c.bf16 %v1783_v51, %v1782_v47  ;;  %v1606_v57 = vpop.f32.mrb[36].mxu0  ;;  %1903 = vst [vmem:[%s2685_s6 + $0x8] sm:$0xff] %v2181_v53  ;;  %v2185_v58 = vpack.c.bf16 %v1785_v55, %v1784_v49  ;;  %v1659_v25 = vpop.f32.mrb[36].mxu1 }
 0x22a   : > { %v1607_v60 = vadd.f32 %v1606_v57, %v2688_v52  ;;  %v1608_v1 = vpop.f32.mrb[37].mxu0  ;;  %v1660_v2 = vadd.f32 %v1659_v25, %v2688_v52  ;;  %v1661_v4 = vpop.f32.mrb[37].mxu1 }
 0x22b   : > { %1906 = vst [vmem:[%s2685_s6 + $0x20] sm:$0xff] %v2184_v56  ;;  %v1609_v3 = vadd.f32 %v1608_v1, %v2688_v52  ;;  %v1610_v5 = vpop.f32.mrb[38].mxu0  ;;  %1907 = vst [vmem:[%s2685_s6 + $0x28] sm:$0xff] %v2185_v58  ;;  %v1662_v8 = vadd.f32 %v1661_v4, %v2688_v52  ;;  %v1663_v9 = vpop.f32.mrb[38].mxu1 }
 0x22c   : > { %v1790_v7 = vmax.f32 %v1607_v60, 0.0  ;;  %v1611_v33 = vadd.f32 %v1610_v5, %v2690_v26  ;;  %v1612_v10 = vpop.f32.mrb[39].mxu0  ;;  %v1792_v50 = vmax.f32 %v1660_v2, 0.0  ;;  %v1664_v12 = vadd.f32 %v1663_v9, %v2690_v26  ;;  %v1665_v14 = vpop.f32.mrb[39].mxu1 }
 0x22d   : > { %v1791_v11 = vmax.f32 %v1609_v3, 0.0  ;;  %v1613_v13 = vadd.f32 %v1612_v10, %v2690_v26  ;;  %v1793_v15 = vmax.f32 %v1662_v8, 0.0  ;;  %v1666_v18 = vadd.f32 %v1665_v14, %v2690_v26 }
 0x22e   : > { %v1798_v16 = vmax.f32 %v1611_v33, 0.0  ;;  %v1800_v20 = vmax.f32 %v1664_v12, 0.0 }
 0x22f   : > { %v2188_v19 = vpack.c.bf16 %v1791_v11, %v1790_v7  ;;  %v1799_v21 = vmax.f32 %v1613_v13, 0.0  ;;  %v2189_v22 = vpack.c.bf16 %v1793_v15, %v1792_v50  ;;  %v1801_v54 = vmax.f32 %v1666_v18, 0.0 }
 0x231   : > { %1910 = vst [vmem:[%s2685_s6 + $0x40] sm:$0xff] %v2188_v19  ;;  %v2192_v23 = vpack.c.bf16 %v1799_v21, %v1798_v16  ;;  %1911 = vst [vmem:[%s2685_s6 + $0x48] sm:$0xff] %v2189_v22  ;;  %v2193_v24 = vpack.c.bf16 %v1801_v54, %v1800_v20 }
 0x233   : > { %1914 = vst [vmem:[%s2685_s6 + $0x60] sm:$0xff] %v2192_v23  ;;  %1915 = vst [vmem:[%s2685_s6 + $0x68] sm:$0xff] %v2193_v24 }
 0x261   : > { %v1702_v27 = vpop.f32.mrb[40].mxu0  ;;  %v1755_v28 = vpop.f32.mrb[40].mxu1 }
 0x262   : > { %v1703_v32 = vadd.f32 %v1702_v27, %v2670_v61  ;;  %v1704_v29 = vpop.f32.mrb[41].mxu0  ;;  %v1756_v31 = vadd.f32 %v1755_v28, %v2670_v61  ;;  %v1757_v35 = vpop.f32.mrb[41].mxu1 }
 0x263   : > { %v1705_v34 = vadd.f32 %v1704_v29, %v2670_v61  ;;  %v1706_v36 = vpop.f32.mrb[42].mxu0  ;;  %v1758_v59 = vadd.f32 %v1757_v35, %v2670_v61  ;;  %v1759_v6 = vpop.f32.mrb[42].mxu1 }
 0x264   : > { %v1778_v43 = vmax.f32 %v1703_v32, 0.0  ;;  %v1707_v37 = vadd.f32 %v1706_v36, %v2672_v30  ;;  %v1708_v38 = vpop.f32.mrb[43].mxu0  ;;  %v1780_v17 = vmax.f32 %v1756_v31, 0.0  ;;  %v1760_v39 = vadd.f32 %v1759_v6, %v2672_v30  ;;  %v1761_v40 = vpop.f32.mrb[43].mxu1 }
 0x265   : > { %v1779_v62 = vmax.f32 %v1705_v34, 0.0  ;;  %v1709_v63 = vadd.f32 %v1708_v38, %v2672_v30  ;;  %v1781_v41 = vmax.f32 %v1758_v59, 0.0  ;;  %v1762_v44 = vadd.f32 %v1761_v40, %v2672_v30 }
 0x266   : > { %v1786_v42 = vmax.f32 %v1707_v37, 0.0  ;;  %v1788_v61 = vmax.f32 %v1760_v39, 0.0 }
 0x267   : > { %v2182_v45 = vpack.c.bf16 %v1779_v62, %v1778_v43  ;;  %v1787_v46 = vmax.f32 %v1709_v63, 0.0  ;;  %v2183_v47 = vpack.c.bf16 %v1781_v41, %v1780_v17  ;;  %v1789_v0 = vmax.f32 %v1762_v44, 0.0 }
 0x269   : > { %1904 = vst [vmem:[%s2685_s6 + $0x10] sm:$0xff] %v2182_v45  ;;  %v2186_v48 = vpack.c.bf16 %v1787_v46, %v1786_v42  ;;  %v1712_v49 = vpop.f32.mrb[44].mxu0  ;;  %1905 = vst [vmem:[%s2685_s6 + $0x18] sm:$0xff] %v2183_v47  ;;  %v2187_v51 = vpack.c.bf16 %v1789_v0, %v1788_v61  ;;  %v1765_v55 = vpop.f32.mrb[44].mxu1 }
 0x26a   : > { %v1713_v53 = vadd.f32 %v1712_v49, %v2688_v52  ;;  %v1714_v56 = vpop.f32.mrb[45].mxu0  ;;  %v1766_v57 = vadd.f32 %v1765_v55, %v2688_v52  ;;  %v1767_v58 = vpop.f32.mrb[45].mxu1 }
 0x26b   : > { %1908 = vst [vmem:[%s2685_s6 + $0x30] sm:$0xff] %v2186_v48  ;;  %v1715_v30 = vadd.f32 %v1714_v56, %v2688_v52  ;;  %v1716_v60 = vpop.f32.mrb[46].mxu0  ;;  %1909 = vst [vmem:[%s2685_s6 + $0x38] sm:$0xff] %v2187_v51  ;;  %v1768_v1 = vadd.f32 %v1767_v58, %v2688_v52  ;;  %v1769_v3 = vpop.f32.mrb[46].mxu1 }
 0x26c   : > { %v1794_v25 = vmax.f32 %v1713_v53, 0.0  ;;  %v1717_v2 = vadd.f32 %v1716_v60, %v2690_v26  ;;  %v1718_v4 = vpop.f32.mrb[47].mxu0  ;;  %v1796_v5 = vmax.f32 %v1766_v57, 0.0  ;;  %v1770_v8 = vadd.f32 %v1769_v3, %v2690_v26  ;;  %v1771_v9 = vpop.f32.mrb[47].mxu1 }
 0x26d   : > { %v1795_v7 = vmax.f32 %v1715_v30, 0.0  ;;  %v1719_v33 = vadd.f32 %v1718_v4, %v2690_v26  ;;  %v1797_v10 = vmax.f32 %v1768_v1, 0.0  ;;  %v1772_v11 = vadd.f32 %v1771_v9, %v2690_v26 }
 0x26e   : > { %v1802_v50 = vmax.f32 %v1717_v2, 0.0  ;;  %v1804_v12 = vmax.f32 %v1770_v8, 0.0 }
 0x26f   : > { %v2190_v52 = vpack.c.bf16 %v1795_v7, %v1794_v25  ;;  %v1803_v13 = vmax.f32 %v1719_v33, 0.0  ;;  %v2191_v14 = vpack.c.bf16 %v1797_v10, %v1796_v5  ;;  %v1805_v15 = vmax.f32 %v1772_v11, 0.0 }
 0x271   : > { %1912 = vst [vmem:[%s2685_s6 + $0x50] sm:$0xff] %v2190_v52  ;;  %v2194_v16 = vpack.c.bf16 %v1803_v13, %v1802_v50  ;;  %1913 = vst [vmem:[%s2685_s6 + $0x58] sm:$0xff] %v2191_v14  ;;  %v2195_v18 = vpack.c.bf16 %v1805_v15, %v1804_v12 }
 0x273   : > { %1916 = vst [vmem:[%s2685_s6 + $0x70] sm:$0xff] %v2194_v16  ;;  %1917 = vst [vmem:[%s2685_s6 + $0x78] sm:$0xff] %v2195_v18 }
 0x274 PF: > { %s15_s20 = sadd.s32 1, %s2259_s20   ;;  %s2747_s18 = smov %s2255_s19 }
 0x275   : > { %p12_p5 = scmp.ge.s32.totalorder %s15_s20, 4   ;;  %s2748_s19 = smov %s2750_s21 }
 0x277   :  { %14 = sbr.rel (!%p12_p5) target bundleno = 2 (0x2), region = 70 }

// kernel: super_resolution_forward.7
= control target key start
LH: loop header
LB: loop body
LE: loop exit
PB: predicated region body
PF: predicated region fallthrough
CT: control target
= control target key end

     0   :  { %s3974_s12 = smov 0   ;;  %s3976_s13 = smov 0   ;;  %s4495_s0 = inlined_call_operand.vmem [shape: bf16[2,800,1024], index: 0, kind: input, shape index: {}]   ;;  %s4496_s1 = inlined_call_operand.vmem [shape: bf16[3,800], index: 1, kind: input, shape index: {}]   ;;  %s4497_s2 = inlined_call_operand.vmem [shape: f32[3,1], index: 2, kind: input, shape index: {}]   ;;  %s4498_s3 = inlined_call_operand.vmem [shape: f32[2,3,1024], index: 3, kind: output, shape index: {}]  }
   0x1   :  { %s3978_s14 = smov 0  }
   0x2 LB: > { %s25_s15 = sadd.s32 1, %s3946_s13  ;;  %p3431_p0 = scmp.ge.s32.totalorder %s3950_s14, 1  ;;  %s3950_s14 = sphi %s3978_s14, %s13_s14   ;;  %s3946_s13 = sphi %s3976_s13, %s4500_s13   ;;  %s3942_s12 = sphi %s3974_s12, %s4499_s12  }
   0x3   : > { %p27_p1 = scmp.ge.s32.totalorder %s25_s15, 2  ;;  %p158_p2 = scmp.lt.s32.totalorder %s3950_s14, 3 }
   0x5   : > { %s4502_s15 = smov (%p27_p1, %s25_s15), 0  ;;  %p159_p3 = pnand %p3431_p0, %p158_p2 }
   0x6   : > { %p191_p4 = scmp.lt.s32.totalorder (!%p159_p3), %s3942_s12, 1  ;;  %v625_v0 = vlaneseq (!%p159_p3)  ;;  %v3952_v1 = vmov (!%p159_p3), 1983009808   ;;  %v3998_v5 = vld [vmem:[%s4496_s1] sm:$0xff] (!%p159_p3)  ;;  %vm2660_vm0 = vcmask (!%p159_p3), 261120  }
   0x7   : > { %162 = sbr.rel (%p159_p3) target bundleno = 648 (0x288), region = 32  ;;  %v623_v2 = vunpack.c.l.s4 (!%p159_p3), %v3952_v1 }
   0x8   : > { %v626_v3 = vshrl.u32 (!%p159_p3), %v625_v0, 7 }
   0x9   : > { %v624_v4 = vunpack.c.0.s8 (!%p159_p3), %v623_v2 }
   0xb   : > { %v4000_v6 = vsub.s32 (!%p159_p3), %v624_v4, %v626_v3 }
   0xd   : > { %v4012_v10 = vrot.slane (!%p159_p3), %v3998_v5, %v4000_v6 }
   0xe   : > { %s4504_s12 = smov (!%p191_p4, %s3942_s12), 1 }
   0xf   : > { %s3898_s16 = smul.u32 3200, %s4504_s12  ;;  %v4025_v26 = vcombine.high %v4012_v10, %v4012_v10  ;;  %s3841_s26 = sshll.u32 %s4504_s12, 5 }
  0x10   : > { %s208_s29 = scalar_lea.vmem %s4498_s3, %s3841_s26 }
  0x11   : > { %s4005_s21 = scalar_lea.vmem %s4495_s0, %s3898_s16  ;;  %2696 = vmatprep.mubr.bf16.mxu0 %v4025_v26  ;;  %2860 = vmatprep.mubr.bf16.mxu1 %v4025_v26 }
  0x12   : > { %v213_v7 = vld [vmem:[%s4005_s21] sm:$0xff]  ;;  %v214_v9 = vld [vmem:[%s4005_s21 + $0x8] sm:$0xff] }
  0x13   : > { %v217_v8 = vld [vmem:[%s4005_s21 + $0x20] sm:$0xff]  ;;  %v218_v12 = vld [vmem:[%s4005_s21 + $0x28] sm:$0xff] }
  0x14   : > { %v3436_v11 = vcombine.high %v213_v7, %v217_v8  ;;  %v3435_v13 = vcombine.low %v213_v7, %v217_v8  ;;  %v221_v14 = vld [vmem:[%s4005_s21 + $0x40] sm:$0xff]  ;;  %v3438_v16 = vcombine.high %v214_v9, %v218_v12  ;;  %v3437_v17 = vcombine.low %v214_v9, %v218_v12  ;;  %v222_v19 = vld [vmem:[%s4005_s21 + $0x48] sm:$0xff] }
  0x15   : > { %v225_v15 = vld [vmem:[%s4005_s21 + $0x60] sm:$0xff]  ;;  %v226_v20 = vld [vmem:[%s4005_s21 + $0x68] sm:$0xff] }
  0x16   : > { %v3444_v18 = vcombine.high %v221_v14, %v225_v15  ;;  %v229_v21 = vld [vmem:[%s4005_s21 + $0x80] sm:$0xff]  ;;  %2664 = vmatprep.subr.bf16.mxu0 %v3436_v11  ;;  %v3446_v22 = vcombine.high %v222_v19, %v226_v20  ;;  %v230_v24 = vld [vmem:[%s4005_s21 + $0x88] sm:$0xff]  ;;  %2828 = vmatprep.subr.bf16.mxu1 %v3438_v16  ;;  %v3443_v27 = vcombine.low %v221_v14, %v225_v15 }
  0x17   : > { %v233_v23 = vld [vmem:[%s4005_s21 + $0xa0] sm:$0xff]  ;;  %v234_v25 = vld [vmem:[%s4005_s21 + $0xa8] sm:$0xff]  ;;  %2665 = vmatpush1.bf16.msra.mxu0 %v3435_v13  ;;  %2829 = vmatpush1.bf16.msra.mxu1 %v3437_v17  ;;  %v3445_v28 = vcombine.low %v222_v19, %v226_v20 }
  0x18   : > { %2666 = vmatprep.subr.bf16.mxu0 %v3444_v18  ;;  %v3452_v29 = vcombine.high %v229_v21, %v233_v23  ;;  %2830 = vmatprep.subr.bf16.mxu1 %v3446_v22  ;;  %v3454_v30 = vcombine.high %v230_v24, %v234_v25  ;;  %v237_v31 = vld [vmem:[%s4005_s21 + $0xc0] sm:$0xff]  ;;  %v238_v33 = vld [vmem:[%s4005_s21 + $0xc8] sm:$0xff]  ;;  %v3451_v35 = vcombine.low %v229_v21, %v233_v23 }
  0x19   : > { %v241_v32 = vld [vmem:[%s4005_s21 + $0xe0] sm:$0xff]  ;;  %v242_v34 = vld [vmem:[%s4005_s21 + $0xe8] sm:$0xff]  ;;  %v3453_v36 = vcombine.low %v230_v24, %v234_v25 }
  0x1a   : > { %v3460_v37 = vcombine.high %v237_v31, %v241_v32  ;;  %v3462_v38 = vcombine.high %v238_v33, %v242_v34  ;;  %v245_v39 = vld [vmem:[%s4005_s21 + $0x100] sm:$0xff]  ;;  %v246_v41 = vld [vmem:[%s4005_s21 + $0x108] sm:$0xff]  ;;  %v3459_v43 = vcombine.low %v237_v31, %v241_v32  ;;  %v3461_v44 = vcombine.low %v238_v33, %v242_v34 }
  0x1b   : > { %2667 = vmatpush1.bf16.msra.mxu0 %v3443_v27  ;;  %2831 = vmatpush1.bf16.msra.mxu1 %v3445_v28  ;;  %v249_v40 = vld [vmem:[%s4005_s21 + $0x120] sm:$0xff]  ;;  %v250_v42 = vld [vmem:[%s4005_s21 + $0x128] sm:$0xff] }
  0x1c   : > { %2668 = vmatprep.subr.bf16.mxu0 %v3452_v29  ;;  %2832 = vmatprep.subr.bf16.mxu1 %v3454_v30  ;;  %v3468_v45 = vcombine.high %v245_v39, %v249_v40  ;;  %v3470_v46 = vcombine.high %v246_v41, %v250_v42  ;;  %v253_v47 = vld [vmem:[%s4005_s21 + $0x140] sm:$0xff]  ;;  %v254_v49 = vld [vmem:[%s4005_s21 + $0x148] sm:$0xff]  ;;  %v3467_v51 = vcombine.low %v245_v39, %v249_v40 }
  0x1d   : > { %v257_v48 = vld [vmem:[%s4005_s21 + $0x160] sm:$0xff]  ;;  %v258_v50 = vld [vmem:[%s4005_s21 + $0x168] sm:$0xff]  ;;  %v3469_v52 = vcombine.low %v246_v41, %v250_v42 }
  0x1e   : > { %v3476_v53 = vcombine.high %v253_v47, %v257_v48  ;;  %v3478_v54 = vcombine.high %v254_v49, %v258_v50  ;;  %v261_v55 = vld [vmem:[%s4005_s21 + $0x180] sm:$0xff]  ;;  %v262_v57 = vld [vmem:[%s4005_s21 + $0x188] sm:$0xff]  ;;  %v3475_v59 = vcombine.low %v253_v47, %v257_v48  ;;  %v3477_v60 = vcombine.low %v254_v49, %v258_v50 }
  0x1f   : > { %2669 = vmatpush1.bf16.msra.mxu0 %v3451_v35  ;;  %2833 = vmatpush1.bf16.msra.mxu1 %v3453_v36  ;;  %v265_v56 = vld [vmem:[%s4005_s21 + $0x1a0] sm:$0xff]  ;;  %v266_v58 = vld [vmem:[%s4005_s21 + $0x1a8] sm:$0xff] }
  0x20   : > { %2670 = vmatprep.subr.bf16.mxu0 %v3460_v37  ;;  %2834 = vmatprep.subr.bf16.mxu1 %v3462_v38  ;;  %v3484_v61 = vcombine.high %v261_v55, %v265_v56  ;;  %v3486_v62 = vcombine.high %v262_v57, %v266_v58  ;;  %v269_v63 = vld [vmem:[%s4005_s21 + $0x1c0] sm:$0xff]  ;;  %v270_v1 = vld [vmem:[%s4005_s21 + $0x1c8] sm:$0xff]  ;;  %v3483_v3 = vcombine.low %v261_v55, %v265_v56 }
  0x21   : > { %v273_v0 = vld [vmem:[%s4005_s21 + $0x1e0] sm:$0xff]  ;;  %v274_v2 = vld [vmem:[%s4005_s21 + $0x1e8] sm:$0xff]  ;;  %v3485_v4 = vcombine.low %v262_v57, %v266_v58 }
  0x22   : > { %v3492_v7 = vcombine.high %v269_v63, %v273_v0  ;;  %v3494_v8 = vcombine.high %v270_v1, %v274_v2  ;;  %v277_v9 = vld [vmem:[%s4005_s21 + $0x200] sm:$0xff]  ;;  %v278_v12 = vld [vmem:[%s4005_s21 + $0x208] sm:$0xff]  ;;  %v3491_v14 = vcombine.low %v269_v63, %v273_v0  ;;  %v3493_v15 = vcombine.low %v270_v1, %v274_v2 }
  0x23   : > { %2671 = vmatpush1.bf16.msra.mxu0 %v3459_v43  ;;  %2835 = vmatpush1.bf16.msra.mxu1 %v3461_v44  ;;  %v281_v11 = vld [vmem:[%s4005_s21 + $0x220] sm:$0xff]  ;;  %v282_v13 = vld [vmem:[%s4005_s21 + $0x228] sm:$0xff] }
  0x24   : > { %2672 = vmatprep.subr.bf16.mxu0 %v3468_v45  ;;  %2836 = vmatprep.subr.bf16.mxu1 %v3470_v46  ;;  %v3500_v16 = vcombine.high %v277_v9, %v281_v11  ;;  %v3502_v17 = vcombine.high %v278_v12, %v282_v13  ;;  %v285_v18 = vld [vmem:[%s4005_s21 + $0x240] sm:$0xff]  ;;  %v286_v20 = vld [vmem:[%s4005_s21 + $0x248] sm:$0xff]  ;;  %v3499_v22 = vcombine.low %v277_v9, %v281_v11 }
  0x25   : > { %v289_v19 = vld [vmem:[%s4005_s21 + $0x260] sm:$0xff]  ;;  %v290_v21 = vld [vmem:[%s4005_s21 + $0x268] sm:$0xff]  ;;  %v3501_v23 = vcombine.low %v278_v12, %v282_v13 }
  0x26   : > { %v3508_v24 = vcombine.high %v285_v18, %v289_v19  ;;  %v3510_v25 = vcombine.high %v286_v20, %v290_v21  ;;  %v293_v27 = vld [vmem:[%s4005_s21 + $0x280] sm:$0xff]  ;;  %v294_v29 = vld [vmem:[%s4005_s21 + $0x288] sm:$0xff]  ;;  %v3507_v31 = vcombine.low %v285_v18, %v289_v19  ;;  %v3509_v32 = vcombine.low %v286_v20, %v290_v21 }
  0x27   : > { %2673 = vmatpush1.bf16.msra.mxu0 %v3467_v51  ;;  %2837 = vmatpush1.bf16.msra.mxu1 %v3469_v52  ;;  %v297_v28 = vld [vmem:[%s4005_s21 + $0x2a0] sm:$0xff]  ;;  %v298_v30 = vld [vmem:[%s4005_s21 + $0x2a8] sm:$0xff] }
  0x28   : > { %2674 = vmatprep.subr.bf16.mxu0 %v3476_v53  ;;  %2838 = vmatprep.subr.bf16.mxu1 %v3478_v54  ;;  %v3516_v33 = vcombine.high %v293_v27, %v297_v28  ;;  %v3518_v34 = vcombine.high %v294_v29, %v298_v30  ;;  %v301_v35 = vld [vmem:[%s4005_s21 + $0x2c0] sm:$0xff]  ;;  %v302_v37 = vld [vmem:[%s4005_s21 + $0x2c8] sm:$0xff]  ;;  %v3515_v39 = vcombine.low %v293_v27, %v297_v28 }
  0x29   : > { %v305_v36 = vld [vmem:[%s4005_s21 + $0x2e0] sm:$0xff]  ;;  %v306_v38 = vld [vmem:[%s4005_s21 + $0x2e8] sm:$0xff]  ;;  %v3517_v40 = vcombine.low %v294_v29, %v298_v30 }
  0x2a   : > { %v3524_v41 = vcombine.high %v301_v35, %v305_v36  ;;  %v3526_v42 = vcombine.high %v302_v37, %v306_v38  ;;  %v309_v43 = vld [vmem:[%s4005_s21 + $0x300] sm:$0xff]  ;;  %v310_v45 = vld [vmem:[%s4005_s21 + $0x308] sm:$0xff]  ;;  %v3523_v47 = vcombine.low %v301_v35, %v305_v36  ;;  %v3525_v48 = vcombine.low %v302_v37, %v306_v38 }
  0x2b   : > { %2675 = vmatpush1.bf16.msra.mxu0 %v3475_v59  ;;  %2839 = vmatpush1.bf16.msra.mxu1 %v3477_v60  ;;  %v313_v44 = vld [vmem:[%s4005_s21 + $0x320] sm:$0xff]  ;;  %v314_v46 = vld [vmem:[%s4005_s21 + $0x328] sm:$0xff] }
  0x2c   : > { %2676 = vmatprep.subr.bf16.mxu0 %v3484_v61  ;;  %2840 = vmatprep.subr.bf16.mxu1 %v3486_v62  ;;  %v3532_v49 = vcombine.high %v309_v43, %v313_v44  ;;  %v3534_v50 = vcombine.high %v310_v45, %v314_v46  ;;  %v317_v51 = vld [vmem:[%s4005_s21 + $0x340] sm:$0xff]  ;;  %v318_v53 = vld [vmem:[%s4005_s21 + $0x348] sm:$0xff]  ;;  %v3531_v55 = vcombine.low %v309_v43, %v313_v44 }
  0x2d   : > { %v321_v52 = vld [vmem:[%s4005_s21 + $0x360] sm:$0xff]  ;;  %v322_v54 = vld [vmem:[%s4005_s21 + $0x368] sm:$0xff]  ;;  %v3533_v56 = vcombine.low %v310_v45, %v314_v46 }
  0x2e   : > { %v3540_v57 = vcombine.high %v317_v51, %v321_v52  ;;  %v3542_v58 = vcombine.high %v318_v53, %v322_v54  ;;  %v325_v59 = vld [vmem:[%s4005_s21 + $0x380] sm:$0xff]  ;;  %v326_v61 = vld [vmem:[%s4005_s21 + $0x388] sm:$0xff]  ;;  %v3539_v63 = vcombine.low %v317_v51, %v321_v52  ;;  %v3541_v0 = vcombine.low %v318_v53, %v322_v54 }
  0x2f   : > { %2677 = vmatpush1.bf16.msra.mxu0 %v3483_v3  ;;  %2841 = vmatpush1.bf16.msra.mxu1 %v3485_v4  ;;  %v329_v60 = vld [vmem:[%s4005_s21 + $0x3a0] sm:$0xff]  ;;  %v330_v62 = vld [vmem:[%s4005_s21 + $0x3a8] sm:$0xff]  ;;  %v3953_v51 = vmov 0  }
  0x30   : > { %2678 = vmatprep.subr.bf16.mxu0 %v3492_v7  ;;  %2842 = vmatprep.subr.bf16.mxu1 %v3494_v8  ;;  %v3548_v1 = vcombine.high %v325_v59, %v329_v60  ;;  %v3550_v2 = vcombine.high %v326_v61, %v330_v62  ;;  %v333_v3 = vld [vmem:[%s4005_s21 + $0x3c0] sm:$0xff]  ;;  %v334_v7 = vld [vmem:[%s4005_s21 + $0x3c8] sm:$0xff]  ;;  %v3547_v9 = vcombine.low %v325_v59, %v329_v60 }
  0x31   : > { %v337_v4 = vld [vmem:[%s4005_s21 + $0x3e0] sm:$0xff]  ;;  %v338_v8 = vld [vmem:[%s4005_s21 + $0x3e8] sm:$0xff]  ;;  %v3549_v11 = vcombine.low %v326_v61, %v330_v62  ;;  %3925 = vset.pattern.permute.xlu0 %v3953_v51 }
  0x32   : > { %v3556_v12 = vcombine.high %v333_v3, %v337_v4  ;;  %v3558_v13 = vcombine.high %v334_v7, %v338_v8  ;;  %v346_v18 = vld [vmem:[%s4005_s21 + $0x428] sm:$0xff]  ;;  %v3555_v19 = vcombine.low %v333_v3, %v337_v4  ;;  %v3557_v20 = vcombine.low %v334_v7, %v338_v8  ;;  %v385_v59 = vld [vmem:[%s4005_s21 + $0x560] sm:$0xff] }
  0x33   : > { %2679 = vmatpush1.bf16.msra.mxu0 %v3491_v14  ;;  %2843 = vmatpush1.bf16.msra.mxu1 %v3493_v15  ;;  %v341_v14 = vld [vmem:[%s4005_s21 + $0x400] sm:$0xff]  ;;  %v354_v27 = vld [vmem:[%s4005_s21 + $0x468] sm:$0xff] }
  0x34   : > { %2680 = vmatprep.subr.bf16.mxu0 %v3500_v16  ;;  %2844 = vmatprep.subr.bf16.mxu1 %v3502_v17  ;;  %v345_v15 = vld [vmem:[%s4005_s21 + $0x420] sm:$0xff]  ;;  %v621_v16 = vcombine.high %v3998_v5, %v3998_v5  ;;  %v342_v17 = vld [vmem:[%s4005_s21 + $0x408] sm:$0xff] }
  0x35   : > { %v3564_v21 = vcombine.high %v341_v14, %v345_v15  ;;  %v350_v5 = vld [vmem:[%s4005_s21 + $0x448] sm:$0xff]  ;;  %v3563_v28 = vcombine.low %v341_v14, %v345_v15  ;;  %v3565_v29 = vcombine.low %v342_v17, %v346_v18  ;;  %v393_v3 = vld [vmem:[%s4005_s21 + $0x5a0] sm:$0xff] }
  0x36   : > { %v358_v35 = vld [vmem:[%s4005_s21 + $0x488] sm:$0xff]  ;;  %v3573_v38 = vcombine.low %v350_v5, %v354_v27  ;;  %v401_v14 = vld [vmem:[%s4005_s21 + $0x5e0] sm:$0xff] }
  0x37   : > { %2681 = vmatpush1.bf16.msra.mxu0 %v3499_v22  ;;  %2845 = vmatpush1.bf16.msra.mxu1 %v3501_v23  ;;  %v3566_v22 = vcombine.high %v342_v17, %v346_v18  ;;  %v349_v23 = vld [vmem:[%s4005_s21 + $0x440] sm:$0xff]  ;;  %v362_v36 = vld [vmem:[%s4005_s21 + $0x4a8] sm:$0xff] }
  0x38   : > { %2682 = vmatprep.subr.bf16.mxu0 %v3508_v24  ;;  %2846 = vmatprep.subr.bf16.mxu1 %v3510_v25  ;;  %v353_v24 = vld [vmem:[%s4005_s21 + $0x460] sm:$0xff]  ;;  %v4090_v25 = vrot.slane %v621_v16, %v4000_v6  ;;  %v366_v43 = vld [vmem:[%s4005_s21 + $0x4c8] sm:$0xff]  ;;  %v3581_v46 = vcombine.low %v358_v35, %v362_v36 }
  0x39   : > { %v3572_v30 = vcombine.high %v349_v23, %v353_v24  ;;  %v3571_v37 = vcombine.low %v349_v23, %v353_v24  ;;  %v370_v44 = vld [vmem:[%s4005_s21 + $0x4e8] sm:$0xff] }
  0x3a   : > { %v374_v52 = vld [vmem:[%s4005_s21 + $0x508] sm:$0xff] }
  0x3b   : > { %2683 = vmatpush1.bf16.msra.mxu0 %v3507_v31  ;;  %2847 = vmatpush1.bf16.msra.mxu1 %v3509_v32  ;;  %v3574_v31 = vcombine.high %v350_v5, %v354_v27  ;;  %v357_v32 = vld [vmem:[%s4005_s21 + $0x480] sm:$0xff]  ;;  %v378_v53 = vld [vmem:[%s4005_s21 + $0x528] sm:$0xff] }
  0x3c   : > { %2684 = vmatprep.subr.bf16.mxu0 %v3516_v33  ;;  %2848 = vmatprep.subr.bf16.mxu1 %v3518_v34  ;;  %v361_v33 = vld [vmem:[%s4005_s21 + $0x4a0] sm:$0xff]  ;;  %v4098_v34 = vcombine.high %v4090_v25, %v4090_v25  ;;  %v382_v60 = vld [vmem:[%s4005_s21 + $0x548] sm:$0xff] }
  0x3d   : > { %v3579_v45 = vcombine.low %v357_v32, %v361_v33  ;;  %v386_v61 = vld [vmem:[%s4005_s21 + $0x568] sm:$0xff] }
  0x3e   : > { %v390_v4 = vld [vmem:[%s4005_s21 + $0x588] sm:$0xff] }
  0x3f   : > { %2685 = vmatpush1.bf16.msra.mxu0 %v3515_v39  ;;  %2849 = vmatpush1.bf16.msra.mxu1 %v3517_v40  ;;  %v3580_v39 = vcombine.high %v357_v32, %v361_v33  ;;  %v3582_v40 = vcombine.high %v358_v35, %v362_v36  ;;  %v394_v7 = vld [vmem:[%s4005_s21 + $0x5a8] sm:$0xff] }
  0x40   : > { %2686 = vmatprep.subr.bf16.mxu0 %v3524_v41  ;;  %2850 = vmatprep.subr.bf16.mxu1 %v3526_v42  ;;  %v365_v41 = vld [vmem:[%s4005_s21 + $0x4c0] sm:$0xff]  ;;  %v398_v15 = vld [vmem:[%s4005_s21 + $0x5c8] sm:$0xff]  ;;  %v3613_v18 = vcombine.low %v390_v4, %v394_v7 }
  0x41   : > { %v369_v42 = vld [vmem:[%s4005_s21 + $0x4e0] sm:$0xff]  ;;  %v402_v16 = vld [vmem:[%s4005_s21 + $0x5e8] sm:$0xff] }
  0x42   : > { %v3587_v54 = vcombine.low %v365_v41, %v369_v42  ;;  %v406_v23 = vld [vmem:[%s4005_s21 + $0x608] sm:$0xff]  ;;  %v3621_v27 = vcombine.low %v398_v15, %v402_v16 }
  0x43   : > { %2687 = vmatpush1.bf16.msra.mxu0 %v3523_v47  ;;  %2851 = vmatpush1.bf16.msra.mxu1 %v3525_v48  ;;  %v3588_v47 = vcombine.high %v365_v41, %v369_v42  ;;  %v3590_v48 = vcombine.high %v366_v43, %v370_v44  ;;  %v410_v24 = vld [vmem:[%s4005_s21 + $0x628] sm:$0xff] }
  0x44   : > { %2688 = vmatprep.subr.bf16.mxu0 %v3532_v49  ;;  %2852 = vmatprep.subr.bf16.mxu1 %v3534_v50  ;;  %v373_v49 = vld [vmem:[%s4005_s21 + $0x500] sm:$0xff]  ;;  %v414_v32 = vld [vmem:[%s4005_s21 + $0x648] sm:$0xff]  ;;  %v3629_v36 = vcombine.low %v406_v23, %v410_v24 }
  0x45   : > { %v377_v50 = vld [vmem:[%s4005_s21 + $0x520] sm:$0xff]  ;;  %v418_v33 = vld [vmem:[%s4005_s21 + $0x668] sm:$0xff] }
  0x46   : > { %v3595_v62 = vcombine.low %v373_v49, %v377_v50  ;;  %v422_v41 = vld [vmem:[%s4005_s21 + $0x688] sm:$0xff] }
  0x47   : > { %2689 = vmatpush1.bf16.msra.mxu0 %v3531_v55  ;;  %2853 = vmatpush1.bf16.msra.mxu1 %v3533_v56  ;;  %v3589_v55 = vcombine.low %v366_v43, %v370_v44  ;;  %v3596_v56 = vcombine.high %v373_v49, %v377_v50  ;;  %v426_v42 = vld [vmem:[%s4005_s21 + $0x6a8] sm:$0xff]  ;;  %v3637_v44 = vcombine.low %v414_v32, %v418_v33 }
  0x48   : > { %2690 = vmatprep.subr.bf16.mxu0 %v3540_v57  ;;  %2854 = vmatprep.subr.bf16.mxu1 %v3542_v58  ;;  %v3598_v57 = vcombine.high %v374_v52, %v378_v53  ;;  %v381_v58 = vld [vmem:[%s4005_s21 + $0x540] sm:$0xff]  ;;  %v430_v49 = vld [vmem:[%s4005_s21 + $0x6c8] sm:$0xff] }
  0x49   : > { %v3603_v8 = vcombine.low %v381_v58, %v385_v59  ;;  %v434_v50 = vld [vmem:[%s4005_s21 + $0x6e8] sm:$0xff] }
  0x4b   : > { %2691 = vmatpush1.bf16.msra.mxu0 %v3539_v63  ;;  %2855 = vmatpush1.bf16.msra.mxu1 %v3541_v0  ;;  %v3597_v63 = vcombine.low %v374_v52, %v378_v53  ;;  %v3604_v0 = vcombine.high %v381_v58, %v385_v59  ;;  %v3645_v53 = vcombine.low %v422_v41, %v426_v42  ;;  %v438_v58 = vld [vmem:[%s4005_s21 + $0x708] sm:$0xff] }
  0x4c   : > { %2692 = vmatprep.subr.bf16.mxu0 %v3548_v1  ;;  %2856 = vmatprep.subr.bf16.mxu1 %v3550_v2  ;;  %v3606_v1 = vcombine.high %v382_v60, %v386_v61  ;;  %v389_v2 = vld [vmem:[%s4005_s21 + $0x580] sm:$0xff]  ;;  %v442_v59 = vld [vmem:[%s4005_s21 + $0x728] sm:$0xff] }
  0x4d   : > { %v3611_v17 = vcombine.low %v389_v2, %v393_v3 }
  0x4f   : > { %2693 = vmatpush1.bf16.msra.mxu0 %v3547_v9  ;;  %2857 = vmatpush1.bf16.msra.mxu1 %v3549_v11  ;;  %v3605_v9 = vcombine.low %v382_v60, %v386_v61  ;;  %v3612_v11 = vcombine.high %v389_v2, %v393_v3  ;;  %v3653_v61 = vcombine.low %v430_v49, %v434_v50  ;;  %v446_v2 = vld [vmem:[%s4005_s21 + $0x748] sm:$0xff] }
  0x50   : > { %2694 = vmatprep.subr.bf16.mxu0 %v3556_v12  ;;  %2858 = vmatprep.subr.bf16.mxu1 %v3558_v13  ;;  %v3614_v12 = vcombine.high %v390_v4, %v394_v7  ;;  %v397_v13 = vld [vmem:[%s4005_s21 + $0x5c0] sm:$0xff]  ;;  %v450_v3 = vld [vmem:[%s4005_s21 + $0x768] sm:$0xff]  ;;  %v3661_v7 = vcombine.low %v438_v58, %v442_v59 }
  0x51   : > { %v3619_v5 = vcombine.low %v397_v13, %v401_v14 }
  0x53   : > { %2695 = vmatpush1.bf16.msra.mxu0 %v3555_v19  ;;  %2859 = vmatpush1.bf16.msra.mxu1 %v3557_v20  ;;  %v3620_v19 = vcombine.high %v397_v13, %v401_v14  ;;  %v3622_v20 = vcombine.high %v398_v15, %v402_v16  ;;  %v454_v13 = vld [vmem:[%s4005_s21 + $0x788] sm:$0xff]  ;;  %v3669_v16 = vcombine.low %v446_v2, %v450_v3 }
  0x54   : > { %2705 = vmatprep.subr.bf16.mxu0 %v3564_v21  ;;  %2869 = vmatprep.subr.bf16.mxu1 %v3566_v22  ;;  %v405_v21 = vld [vmem:[%s4005_s21 + $0x600] sm:$0xff]  ;;  %v458_v14 = vld [vmem:[%s4005_s21 + $0x7a8] sm:$0xff] }
  0x55   : > { %v409_v22 = vld [vmem:[%s4005_s21 + $0x620] sm:$0xff] }
  0x56   : > { %2697 = vmatmul.mubr.bf16.vlgmr.msra.gmra.mrb[0].mxu0 %v4012_v10  ;;  %2861 = vmatmul.mubr.bf16.vlgmr.msra.gmra.mrb[0].mxu1 %v4012_v10  ;;  %v3627_v35 = vcombine.low %v405_v21, %v409_v22 }
  0x57   : > { %2706 = vmatpush1.bf16.msra.mxu0 %v3563_v28  ;;  %2870 = vmatpush1.bf16.msra.mxu1 %v3565_v29  ;;  %v3628_v28 = vcombine.high %v405_v21, %v409_v22  ;;  %v3630_v29 = vcombine.high %v406_v23, %v410_v24  ;;  %v462_v21 = vld [vmem:[%s4005_s21 + $0x7c8] sm:$0xff]  ;;  %v3677_v24 = vcombine.low %v454_v13, %v458_v14 }
  0x58   : > { %2707 = vmatprep.subr.bf16.mxu0 %v3572_v30  ;;  %2871 = vmatprep.subr.bf16.mxu1 %v3574_v31  ;;  %v413_v30 = vld [vmem:[%s4005_s21 + $0x640] sm:$0xff]  ;;  %v466_v22 = vld [vmem:[%s4005_s21 + $0x7e8] sm:$0xff] }
  0x59   : > { %2737 = vmatprep.mubr.bf16.mxu0 %v4098_v34  ;;  %2901 = vmatprep.mubr.bf16.mxu1 %v4098_v34  ;;  %v417_v31 = vld [vmem:[%s4005_s21 + $0x660] sm:$0xff] }
  0x5a   : > { %v3635_v43 = vcombine.low %v413_v30, %v417_v31 }
  0x5b   : > { %2708 = vmatpush1.bf16.msra.mxu0 %v3571_v37  ;;  %2872 = vmatpush1.bf16.msra.mxu1 %v3573_v38  ;;  %v3636_v37 = vcombine.high %v413_v30, %v417_v31  ;;  %v3638_v38 = vcombine.high %v414_v32, %v418_v33  ;;  %v470_v30 = vld [vmem:[%s4005_s21 + $0x808] sm:$0xff] }
  0x5c   : > { %2709 = vmatprep.subr.bf16.mxu0 %v3580_v39  ;;  %2873 = vmatprep.subr.bf16.mxu1 %v3582_v40  ;;  %v421_v39 = vld [vmem:[%s4005_s21 + $0x680] sm:$0xff]  ;;  %v474_v31 = vld [vmem:[%s4005_s21 + $0x828] sm:$0xff] }
  0x5d   : > { %v425_v40 = vld [vmem:[%s4005_s21 + $0x6a0] sm:$0xff]  ;;  %v4166_v32 = vld [vmem:[%s4496_s1 + $0x8] sm:$0x3f] }
  0x5e   : > { %v3643_v52 = vcombine.low %v421_v39, %v425_v40 }
  0x5f   : > { %2710 = vmatpush1.bf16.msra.mxu0 %v3579_v45  ;;  %2874 = vmatpush1.bf16.msra.mxu1 %v3581_v46  ;;  %v3644_v45 = vcombine.high %v421_v39, %v425_v40  ;;  %v3646_v46 = vcombine.high %v422_v41, %v426_v42  ;;  %v481_v39 = vld [vmem:[%s4005_s21 + $0x860] sm:$0xff]  ;;  %v4172_v40 = vrot.slane %v4166_v32, %v4000_v6  ;;  %v478_v41 = vld [vmem:[%s4005_s21 + $0x848] sm:$0xff] }
  0x60   : > { %2711 = vmatprep.subr.bf16.mxu0 %v3588_v47  ;;  %2875 = vmatprep.subr.bf16.mxu1 %v3590_v48  ;;  %v429_v47 = vld [vmem:[%s4005_s21 + $0x6c0] sm:$0xff]  ;;  %v482_v42 = vld [vmem:[%s4005_s21 + $0x868] sm:$0xff] }
  0x61   : > { %v433_v48 = vld [vmem:[%s4005_s21 + $0x6e0] sm:$0xff] }
  0x62   : > { %v3651_v60 = vcombine.low %v429_v47, %v433_v48 }
  0x63   : > { %2712 = vmatpush1.bf16.msra.mxu0 %v3587_v54  ;;  %2876 = vmatpush1.bf16.msra.mxu1 %v3589_v55  ;;  %v3652_v54 = vcombine.high %v429_v47, %v433_v48  ;;  %v3654_v55 = vcombine.high %v430_v49, %v434_v50  ;;  %v485_v47 = vld [vmem:[%s4005_s21 + $0x880] sm:$0xff]  ;;  %v4180_v49 = vcombine.high %v4172_v40, %v4172_v40  ;;  %v486_v50 = vld [vmem:[%s4005_s21 + $0x888] sm:$0xff] }
  0x64   : > { %2713 = vmatprep.subr.bf16.mxu0 %v3596_v56  ;;  %2877 = vmatprep.subr.bf16.mxu1 %v3598_v57  ;;  %v437_v56 = vld [vmem:[%s4005_s21 + $0x700] sm:$0xff] }
  0x65   : > { %v441_v57 = vld [vmem:[%s4005_s21 + $0x720] sm:$0xff] }
  0x66   : > { %v3659_v4 = vcombine.low %v437_v56, %v441_v57  ;;  %v489_v48 = vld [vmem:[%s4005_s21 + $0x8a0] sm:$0xff] }
  0x67   : > { %2714 = vmatpush1.bf16.msra.mxu0 %v3595_v62  ;;  %2878 = vmatpush1.bf16.msra.mxu1 %v3597_v63  ;;  %v3660_v62 = vcombine.high %v437_v56, %v441_v57  ;;  %v3662_v63 = vcombine.high %v438_v58, %v442_v59  ;;  %v493_v57 = vld [vmem:[%s4005_s21 + $0x8c0] sm:$0xff]  ;;  %v494_v59 = vld [vmem:[%s4005_s21 + $0x8c8] sm:$0xff] }
  0x68   : > { %2715 = vmatprep.subr.bf16.mxu0 %v3604_v0  ;;  %2879 = vmatprep.subr.bf16.mxu1 %v3606_v1  ;;  %v445_v0 = vld [vmem:[%s4005_s21 + $0x740] sm:$0xff] }
  0x69   : > { %v449_v1 = vld [vmem:[%s4005_s21 + $0x760] sm:$0xff] }
  0x6a   : > { %v3667_v15 = vcombine.low %v445_v0, %v449_v1  ;;  %v497_v58 = vld [vmem:[%s4005_s21 + $0x8e0] sm:$0xff] }
  0x6b   : > { %2716 = vmatpush1.bf16.msra.mxu0 %v3603_v8  ;;  %2880 = vmatpush1.bf16.msra.mxu1 %v3605_v9  ;;  %v3668_v8 = vcombine.high %v445_v0, %v449_v1  ;;  %v3670_v9 = vcombine.high %v446_v2, %v450_v3  ;;  %v501_v1 = vld [vmem:[%s4005_s21 + $0x900] sm:$0xff]  ;;  %v502_v3 = vld [vmem:[%s4005_s21 + $0x908] sm:$0xff] }
  0x6c   : > { %2717 = vmatprep.subr.bf16.mxu0 %v3612_v11  ;;  %2881 = vmatprep.subr.bf16.mxu1 %v3614_v12  ;;  %v453_v11 = vld [vmem:[%s4005_s21 + $0x780] sm:$0xff] }
  0x6d   : > { %v457_v12 = vld [vmem:[%s4005_s21 + $0x7a0] sm:$0xff] }
  0x6e   : > { %v3675_v23 = vcombine.low %v453_v11, %v457_v12  ;;  %v505_v2 = vld [vmem:[%s4005_s21 + $0x920] sm:$0xff] }
  0x6f   : > { %2718 = vmatpush1.bf16.msra.mxu0 %v3611_v17  ;;  %2882 = vmatpush1.bf16.msra.mxu1 %v3613_v18  ;;  %v3676_v17 = vcombine.high %v453_v11, %v457_v12  ;;  %v3678_v18 = vcombine.high %v454_v13, %v458_v14  ;;  %v509_v12 = vld [vmem:[%s4005_s21 + $0x940] sm:$0xff]  ;;  %v510_v14 = vld [vmem:[%s4005_s21 + $0x948] sm:$0xff] }
  0x70   : > { %2719 = vmatprep.subr.bf16.mxu0 %v3620_v19  ;;  %2883 = vmatprep.subr.bf16.mxu1 %v3622_v20  ;;  %v461_v19 = vld [vmem:[%s4005_s21 + $0x7c0] sm:$0xff] }
  0x71   : > { %v465_v20 = vld [vmem:[%s4005_s21 + $0x7e0] sm:$0xff] }
  0x72   : > { %v3683_v33 = vcombine.low %v461_v19, %v465_v20  ;;  %v513_v13 = vld [vmem:[%s4005_s21 + $0x960] sm:$0xff] }
  0x73   : > { %2720 = vmatpush1.bf16.msra.mxu0 %v3619_v5  ;;  %2884 = vmatpush1.bf16.msra.mxu1 %v3621_v27  ;;  %v3684_v5 = vcombine.high %v461_v19, %v465_v20  ;;  %v3686_v27 = vcombine.high %v462_v21, %v466_v22  ;;  %v517_v20 = vld [vmem:[%s4005_s21 + $0x980] sm:$0xff] }
  0x74   : > { %2721 = vmatprep.subr.bf16.mxu0 %v3628_v28  ;;  %2885 = vmatprep.subr.bf16.mxu1 %v3630_v29  ;;  %v469_v28 = vld [vmem:[%s4005_s21 + $0x800] sm:$0xff] }
  0x75   : > { %v473_v29 = vld [vmem:[%s4005_s21 + $0x820] sm:$0xff] }
  0x77   : > { %2722 = vmatpush1.bf16.msra.mxu0 %v3627_v35  ;;  %2886 = vmatpush1.bf16.msra.mxu1 %v3629_v36  ;;  %v3685_v35 = vcombine.low %v462_v21, %v466_v22  ;;  %v3692_v36 = vcombine.high %v469_v28, %v473_v29  ;;  %v521_v21 = vld [vmem:[%s4005_s21 + $0x9a0] sm:$0xff]  ;;  %v518_v22 = vld [vmem:[%s4005_s21 + $0x988] sm:$0xff] }
  0x78   : > { %2723 = vmatprep.subr.bf16.mxu0 %v3636_v37  ;;  %2887 = vmatprep.subr.bf16.mxu1 %v3638_v38  ;;  %v3694_v37 = vcombine.high %v470_v30, %v474_v31  ;;  %v477_v38 = vld [vmem:[%s4005_s21 + $0x840] sm:$0xff] }
  0x7b   : > { %2724 = vmatpush1.bf16.msra.mxu0 %v3635_v43  ;;  %2888 = vmatpush1.bf16.msra.mxu1 %v3637_v44  ;;  %v3691_v43 = vcombine.low %v469_v28, %v473_v29  ;;  %v3693_v44 = vcombine.low %v470_v30, %v474_v31  ;;  %v525_v29 = vld [vmem:[%s4005_s21 + $0x9c0] sm:$0xff]  ;;  %v526_v31 = vld [vmem:[%s4005_s21 + $0x9c8] sm:$0xff] }
  0x7c   : > { %2725 = vmatprep.subr.bf16.mxu0 %v3644_v45  ;;  %2889 = vmatprep.subr.bf16.mxu1 %v3646_v46  ;;  %v3700_v45 = vcombine.high %v477_v38, %v481_v39  ;;  %v3702_v46 = vcombine.high %v478_v41, %v482_v42  ;;  %v529_v30 = vld [vmem:[%s4005_s21 + $0x9e0] sm:$0xff] }
  0x7f   : > { %2726 = vmatpush1.bf16.msra.mxu0 %v3643_v52  ;;  %2890 = vmatpush1.bf16.msra.mxu1 %v3645_v53  ;;  %v490_v52 = vld [vmem:[%s4005_s21 + $0x8a8] sm:$0xff]  ;;  %v3699_v53 = vcombine.low %v477_v38, %v481_v39  ;;  %v533_v39 = vld [vmem:[%s4005_s21 + $0xa00] sm:$0xff] }
  0x80   : > { %2727 = vmatprep.subr.bf16.mxu0 %v3652_v54  ;;  %2891 = vmatprep.subr.bf16.mxu1 %v3654_v55  ;;  %v3701_v54 = vcombine.low %v478_v41, %v482_v42  ;;  %v3708_v55 = vcombine.high %v485_v47, %v489_v48  ;;  %v3710_v56 = vcombine.high %v486_v50, %v490_v52  ;;  %v537_v41 = vld [vmem:[%s4005_s21 + $0xa20] sm:$0xff]  ;;  %v534_v42 = vld [vmem:[%s4005_s21 + $0xa08] sm:$0xff] }
  0x83   : > { %2728 = vmatpush1.bf16.msra.mxu0 %v3651_v60  ;;  %2892 = vmatpush1.bf16.msra.mxu1 %v3653_v61  ;;  %v498_v60 = vld [vmem:[%s4005_s21 + $0x8e8] sm:$0xff]  ;;  %v3707_v61 = vcombine.low %v485_v47, %v489_v48  ;;  %v541_v48 = vld [vmem:[%s4005_s21 + $0xa40] sm:$0xff] }
  0x84   : > { %2729 = vmatprep.subr.bf16.mxu0 %v3660_v62  ;;  %2893 = vmatprep.subr.bf16.mxu1 %v3662_v63  ;;  %v3709_v62 = vcombine.low %v486_v50, %v490_v52  ;;  %v3716_v63 = vcombine.high %v493_v57, %v497_v58  ;;  %v3718_v0 = vcombine.high %v494_v59, %v498_v60  ;;  %v545_v50 = vld [vmem:[%s4005_s21 + $0xa60] sm:$0xff]  ;;  %v542_v52 = vld [vmem:[%s4005_s21 + $0xa48] sm:$0xff] }
  0x87   : > { %2730 = vmatpush1.bf16.msra.mxu0 %v3659_v4  ;;  %2894 = vmatpush1.bf16.msra.mxu1 %v3661_v7  ;;  %v506_v4 = vld [vmem:[%s4005_s21 + $0x928] sm:$0xff]  ;;  %v3715_v7 = vcombine.low %v493_v57, %v497_v58  ;;  %v549_v58 = vld [vmem:[%s4005_s21 + $0xa80] sm:$0xff] }
  0x88   : > { %2731 = vmatprep.subr.bf16.mxu0 %v3668_v8  ;;  %2895 = vmatprep.subr.bf16.mxu1 %v3670_v9  ;;  %v3717_v8 = vcombine.low %v494_v59, %v498_v60  ;;  %v3724_v9 = vcombine.high %v501_v1, %v505_v2  ;;  %v3726_v11 = vcombine.high %v502_v3, %v506_v4  ;;  %v553_v59 = vld [vmem:[%s4005_s21 + $0xaa0] sm:$0xff] }
  0x89   : > { %v613_v60 = vld [vmem:[%s4497_s2] sm:$0x7] }
  0x8a   : > { %616 = vperm.xlu0 %3925, %v613_v60   ;;  %v605_v60 = vld [vmem:[%s4005_s21 + $0xc40] sm:$0xff] }
  0x8b   : > { %2732 = vmatpush1.bf16.msra.mxu0 %v3667_v15  ;;  %2896 = vmatpush1.bf16.msra.mxu1 %v3669_v16  ;;  %v514_v15 = vld [vmem:[%s4005_s21 + $0x968] sm:$0xff]  ;;  %v3723_v16 = vcombine.low %v501_v1, %v505_v2  ;;  %v3772_v1 = vcombine.high %v549_v58, %v553_v59 }
  0x8c   : > { %2733 = vmatprep.subr.bf16.mxu0 %v3676_v17  ;;  %2897 = vmatprep.subr.bf16.mxu1 %v3678_v18  ;;  %v3725_v17 = vcombine.low %v502_v3, %v506_v4  ;;  %v3732_v18 = vcombine.high %v509_v12, %v513_v13  ;;  %v3734_v19 = vcombine.high %v510_v14, %v514_v15  ;;  %v557_v3 = vld [vmem:[%s4005_s21 + $0xac0] sm:$0xff] }
  0x8d   : > { %v561_v4 = vld [vmem:[%s4005_s21 + $0xae0] sm:$0xff] }
  0x8f   : > { %2734 = vmatpush1.bf16.msra.mxu0 %v3675_v23  ;;  %2898 = vmatpush1.bf16.msra.mxu1 %v3677_v24  ;;  %v522_v23 = vld [vmem:[%s4005_s21 + $0x9a8] sm:$0xff]  ;;  %v3731_v24 = vcombine.low %v509_v12, %v513_v13  ;;  %v3780_v12 = vcombine.high %v557_v3, %v561_v4 }
  0x90   : > { %2735 = vmatprep.subr.bf16.mxu0 %v3684_v5  ;;  %2899 = vmatprep.subr.bf16.mxu1 %v3686_v27  ;;  %v3733_v5 = vcombine.low %v510_v14, %v514_v15  ;;  %v3740_v27 = vcombine.high %v517_v20, %v521_v21  ;;  %v3742_v28 = vcombine.high %v518_v22, %v522_v23  ;;  %v565_v14 = vld [vmem:[%s4005_s21 + $0xb00] sm:$0xff] }
  0x91   : > { %v569_v15 = vld [vmem:[%s4005_s21 + $0xb20] sm:$0xff] }
  0x93   : > { %2736 = vmatpush1.bf16.msra.mxu0 %v3683_v33  ;;  %2900 = vmatpush1.bf16.msra.mxu1 %v3685_v35  ;;  %v530_v33 = vld [vmem:[%s4005_s21 + $0x9e8] sm:$0xff]  ;;  %v3739_v35 = vcombine.low %v517_v20, %v521_v21  ;;  %v3788_v20 = vcombine.high %v565_v14, %v569_v15 }
  0x94   : > { %2746 = vmatprep.subr.bf16.mxu0 %v3692_v36  ;;  %2910 = vmatprep.subr.bf16.mxu1 %v3694_v37  ;;  %v3741_v36 = vcombine.low %v518_v22, %v522_v23  ;;  %v3748_v37 = vcombine.high %v525_v29, %v529_v30  ;;  %v3750_v38 = vcombine.high %v526_v31, %v530_v33  ;;  %v573_v22 = vld [vmem:[%s4005_s21 + $0xb40] sm:$0xff] }
  0x95   : > { %v577_v23 = vld [vmem:[%s4005_s21 + $0xb60] sm:$0xff] }
  0x96   : > { %2738 = vmatmul.mubr.bf16.vlgmr.msra.gmra.mrb[0].mxu0 %v4090_v25  ;;  %2902 = vmatmul.mubr.bf16.vlgmr.msra.gmra.mrb[0].mxu1 %v4090_v25 }
  0x97   : > { %2747 = vmatpush1.bf16.msra.mxu0 %v3691_v43  ;;  %2911 = vmatpush1.bf16.msra.mxu1 %v3693_v44  ;;  %v538_v43 = vld [vmem:[%s4005_s21 + $0xa28] sm:$0xff]  ;;  %v3747_v44 = vcombine.low %v525_v29, %v529_v30  ;;  %v3796_v29 = vcombine.high %v573_v22, %v577_v23 }
  0x98   : > { %2748 = vmatprep.subr.bf16.mxu0 %v3700_v45  ;;  %2912 = vmatprep.subr.bf16.mxu1 %v3702_v46  ;;  %v3749_v45 = vcombine.low %v526_v31, %v530_v33  ;;  %v3756_v46 = vcombine.high %v533_v39, %v537_v41  ;;  %v3758_v47 = vcombine.high %v534_v42, %v538_v43  ;;  %v581_v31 = vld [vmem:[%s4005_s21 + $0xb80] sm:$0xff] }
  0x99   : > { %2778 = vmatprep.mubr.bf16.mxu0 %v4180_v49  ;;  %2942 = vmatprep.mubr.bf16.mxu1 %v4180_v49  ;;  %v585_v33 = vld [vmem:[%s4005_s21 + $0xba0] sm:$0xff] }
  0x9b   : > { %2749 = vmatpush1.bf16.msra.mxu0 %v3699_v53  ;;  %2913 = vmatpush1.bf16.msra.mxu1 %v3701_v54  ;;  %v546_v53 = vld [vmem:[%s4005_s21 + $0xa68] sm:$0xff]  ;;  %v3755_v54 = vcombine.low %v533_v39, %v537_v41  ;;  %v3804_v39 = vcombine.high %v581_v31, %v585_v33 }
  0x9c   : > { %2750 = vmatprep.subr.bf16.mxu0 %v3708_v55  ;;  %2914 = vmatprep.subr.bf16.mxu1 %v3710_v56  ;;  %v3757_v55 = vcombine.low %v534_v42, %v538_v43  ;;  %v3764_v56 = vcombine.high %v541_v48, %v545_v50  ;;  %v3766_v57 = vcombine.high %v542_v52, %v546_v53  ;;  %v589_v42 = vld [vmem:[%s4005_s21 + $0xbc0] sm:$0xff] }
  0x9d   : > { %v593_v43 = vld [vmem:[%s4005_s21 + $0xbe0] sm:$0xff] }
  0x9f   : > { %2751 = vmatpush1.bf16.msra.mxu0 %v3707_v61  ;;  %2915 = vmatpush1.bf16.msra.mxu1 %v3709_v62  ;;  %v550_v61 = vld [vmem:[%s4005_s21 + $0xa88] sm:$0xff] }
  0xa0   : > { %2752 = vmatprep.subr.bf16.mxu0 %v3716_v63  ;;  %2916 = vmatprep.subr.bf16.mxu1 %v3718_v0  ;;  %v554_v62 = vld [vmem:[%s4005_s21 + $0xaa8] sm:$0xff]  ;;  %v3763_v63 = vcombine.low %v541_v48, %v545_v50  ;;  %v3765_v0 = vcombine.low %v542_v52, %v546_v53  ;;  %v3812_v48 = vcombine.high %v589_v42, %v593_v43  ;;  %v597_v52 = vld [vmem:[%s4005_s21 + $0xc00] sm:$0xff] }
  0xa1   : > { %v3774_v2 = vcombine.high %v550_v61, %v554_v62  ;;  %v601_v53 = vld [vmem:[%s4005_s21 + $0xc20] sm:$0xff] }
  0xa3   : > { %2753 = vmatpush1.bf16.msra.mxu0 %v3715_v7  ;;  %2917 = vmatpush1.bf16.msra.mxu1 %v3717_v8  ;;  %v558_v7 = vld [vmem:[%s4005_s21 + $0xac8] sm:$0xff] }
  0xa4   : > { %2754 = vmatprep.subr.bf16.mxu0 %v3724_v9  ;;  %2918 = vmatprep.subr.bf16.mxu1 %v3726_v11  ;;  %v562_v8 = vld [vmem:[%s4005_s21 + $0xae8] sm:$0xff]  ;;  %v3771_v9 = vcombine.low %v549_v58, %v553_v59  ;;  %v3773_v11 = vcombine.low %v550_v61, %v554_v62  ;;  %v3820_v58 = vcombine.high %v597_v52, %v601_v53  ;;  %v609_v61 = vld [vmem:[%s4005_s21 + $0xc60] sm:$0xff] }
  0xa5   : > { %v3782_v13 = vcombine.high %v558_v7, %v562_v8  ;;  %v606_v62 = vld [vmem:[%s4005_s21 + $0xc48] sm:$0xff] }
  0xa7   : > { %2755 = vmatpush1.bf16.msra.mxu0 %v3723_v16  ;;  %2919 = vmatpush1.bf16.msra.mxu1 %v3725_v17  ;;  %v566_v16 = vld [vmem:[%s4005_s21 + $0xb08] sm:$0xff] }
  0xa8   : > { %2756 = vmatprep.subr.bf16.mxu0 %v3732_v18  ;;  %2920 = vmatprep.subr.bf16.mxu1 %v3734_v19  ;;  %v570_v17 = vld [vmem:[%s4005_s21 + $0xb28] sm:$0xff]  ;;  %v3779_v18 = vcombine.low %v557_v3, %v561_v4  ;;  %v3781_v19 = vcombine.low %v558_v7, %v562_v8  ;;  %v215_v4 = vld [vmem:[%s4005_s21 + $0x10] sm:$0xff]  ;;  %v216_v8 = vld [vmem:[%s4005_s21 + $0x18] sm:$0xff] }
  0xa9   : > { %v3790_v21 = vcombine.high %v566_v16, %v570_v17  ;;  %v219_v7 = vld [vmem:[%s4005_s21 + $0x30] sm:$0xff] }
  0xab   : > { %2757 = vmatpush1.bf16.msra.mxu0 %v3731_v24  ;;  %2921 = vmatpush1.bf16.msra.mxu1 %v3733_v5  ;;  %v574_v24 = vld [vmem:[%s4005_s21 + $0xb48] sm:$0xff] }
  0xac   : > { %2758 = vmatprep.subr.bf16.mxu0 %v3740_v27  ;;  %2922 = vmatprep.subr.bf16.mxu1 %v3742_v28  ;;  %v578_v5 = vld [vmem:[%s4005_s21 + $0xb68] sm:$0xff]  ;;  %v3787_v27 = vcombine.low %v565_v14, %v569_v15  ;;  %v3789_v28 = vcombine.low %v566_v16, %v570_v17  ;;  %v638_v15 = vcombine.high %v4166_v32, %v4166_v32  ;;  %v223_v16 = vld [vmem:[%s4005_s21 + $0x50] sm:$0xff] }
  0xad   : > { %v3798_v30 = vcombine.high %v574_v24, %v578_v5  ;;  %v227_v17 = vld [vmem:[%s4005_s21 + $0x70] sm:$0xff] }
  0xaf   : > { %2759 = vmatpush1.bf16.msra.mxu0 %v3739_v35  ;;  %2923 = vmatpush1.bf16.msra.mxu1 %v3741_v36  ;;  %v582_v35 = vld [vmem:[%s4005_s21 + $0xb88] sm:$0xff] }
  0xb0   : > { %2760 = vmatprep.subr.bf16.mxu0 %v3748_v37  ;;  %2924 = vmatprep.subr.bf16.mxu1 %v3750_v38  ;;  %v586_v36 = vld [vmem:[%s4005_s21 + $0xba8] sm:$0xff]  ;;  %v3795_v37 = vcombine.low %v573_v22, %v577_v23  ;;  %v3797_v38 = vcombine.low %v574_v24, %v578_v5  ;;  %v3448_v23 = vcombine.high %v223_v16, %v227_v17  ;;  %v231_v24 = vld [vmem:[%s4005_s21 + $0x90] sm:$0xff] }
  0xb1   : > { %v3806_v41 = vcombine.high %v582_v35, %v586_v36  ;;  %v235_v5 = vld [vmem:[%s4005_s21 + $0xb0] sm:$0xff] }
  0xb3   : > { %2761 = vmatpush1.bf16.msra.mxu0 %v3747_v44  ;;  %2925 = vmatpush1.bf16.msra.mxu1 %v3749_v45  ;;  %v590_v44 = vld [vmem:[%s4005_s21 + $0xbc8] sm:$0xff] }
  0xb4   : > { %2762 = vmatprep.subr.bf16.mxu0 %v3756_v46  ;;  %2926 = vmatprep.subr.bf16.mxu1 %v3758_v47  ;;  %v594_v45 = vld [vmem:[%s4005_s21 + $0xbe8] sm:$0xff]  ;;  %v3803_v46 = vcombine.low %v581_v31, %v585_v33  ;;  %v3805_v47 = vcombine.low %v582_v35, %v586_v36  ;;  %v239_v33 = vld [vmem:[%s4005_s21 + $0xd0] sm:$0xff]  ;;  %v240_v36 = vld [vmem:[%s4005_s21 + $0xd8] sm:$0xff] }
  0xb5   : > { %v3814_v50 = vcombine.high %v590_v44, %v594_v45  ;;  %v243_v35 = vld [vmem:[%s4005_s21 + $0xf0] sm:$0xff] }
  0xb7   : > { %2763 = vmatpush1.bf16.msra.mxu0 %v3755_v54  ;;  %2927 = vmatpush1.bf16.msra.mxu1 %v3757_v55  ;;  %v598_v54 = vld [vmem:[%s4005_s21 + $0xc08] sm:$0xff] }
  0xb8   : > { %2764 = vmatprep.subr.bf16.mxu0 %v3764_v56  ;;  %2928 = vmatprep.subr.bf16.mxu1 %v3766_v57  ;;  %v602_v55 = vld [vmem:[%s4005_s21 + $0xc28] sm:$0xff]  ;;  %v3811_v56 = vcombine.low %v589_v42, %v593_v43  ;;  %v3813_v57 = vcombine.low %v590_v44, %v594_v45  ;;  %v247_v43 = vld [vmem:[%s4005_s21 + $0x110] sm:$0xff]  ;;  %v248_v45 = vld [vmem:[%s4005_s21 + $0x118] sm:$0xff] }
  0xb9   : > { %v3822_v59 = vcombine.high %v598_v54, %v602_v55  ;;  %v251_v44 = vld [vmem:[%s4005_s21 + $0x130] sm:$0xff] }
  0xbb   : > { %2765 = vmatpush1.bf16.msra.mxu0 %v3763_v63  ;;  %2929 = vmatpush1.bf16.msra.mxu1 %v3765_v0  ;;  %v610_v63 = vld [vmem:[%s4005_s21 + $0xc68] sm:$0xff]  ;;  %v3819_v0 = vcombine.low %v597_v52, %v601_v53  ;;  %v255_v52 = vld [vmem:[%s4005_s21 + $0x150] sm:$0xff] }
  0xbc   : > { %2766 = vmatprep.subr.bf16.mxu0 %v3772_v1  ;;  %2930 = vmatprep.subr.bf16.mxu1 %v3774_v2  ;;  %v3821_v1 = vcombine.low %v598_v54, %v602_v55  ;;  %v3828_v2 = vcombine.high %v605_v60, %v609_v61  ;;  %v3830_v3 = vcombine.high %v606_v62, %v610_v63  ;;  %v259_v53 = vld [vmem:[%s4005_s21 + $0x170] sm:$0xff]  ;;  %v256_v54 = vld [vmem:[%s4005_s21 + $0x158] sm:$0xff] }
  0xbd   : > { %v260_v55 = vld [vmem:[%s4005_s21 + $0x178] sm:$0xff] }
  0xbf   : > { %2767 = vmatpush1.bf16.msra.mxu0 %v3771_v9  ;;  %2931 = vmatpush1.bf16.msra.mxu1 %v3773_v11  ;;  %v220_v9 = vld [vmem:[%s4005_s21 + $0x38] sm:$0xff]  ;;  %v3827_v11 = vcombine.low %v605_v60, %v609_v61  ;;  %v263_v60 = vld [vmem:[%s4005_s21 + $0x190] sm:$0xff] }
  0xc0   : > { %2768 = vmatprep.subr.bf16.mxu0 %v3780_v12  ;;  %2932 = vmatprep.subr.bf16.mxu1 %v3782_v13  ;;  %v3829_v12 = vcombine.low %v606_v62, %v610_v63  ;;  %v3440_v13 = vcombine.high %v215_v4, %v219_v7  ;;  %v3442_v14 = vcombine.high %v216_v8, %v220_v9  ;;  %v267_v61 = vld [vmem:[%s4005_s21 + $0x1b0] sm:$0xff]  ;;  %v264_v62 = vld [vmem:[%s4005_s21 + $0x198] sm:$0xff] }
  0xc1   : > { %v3441_v22 = vcombine.low %v216_v8, %v220_v9  ;;  %v268_v63 = vld [vmem:[%s4005_s21 + $0x1b8] sm:$0xff] }
  0xc2   : > { %v272_v8 = vld [vmem:[%s4005_s21 + $0x1d8] sm:$0xff] }
  0xc3   : > { %2769 = vmatpush1.bf16.msra.mxu0 %v3779_v18  ;;  %2933 = vmatpush1.bf16.msra.mxu1 %v3781_v19  ;;  %v4264_v18 = vrot.slane %v638_v15, %v4000_v6  ;;  %v224_v19 = vld [vmem:[%s4005_s21 + $0x58] sm:$0xff]  ;;  %v3447_v6 = vcombine.low %v223_v16, %v227_v17  ;;  %v279_v15 = vld [vmem:[%s4005_s21 + $0x210] sm:$0xff] }
  0xc4   : > { %2770 = vmatprep.subr.bf16.mxu0 %v3788_v20  ;;  %2934 = vmatprep.subr.bf16.mxu1 %v3790_v21  ;;  %v228_v20 = vld [vmem:[%s4005_s21 + $0x78] sm:$0xff]  ;;  %v3439_v21 = vcombine.low %v215_v4, %v219_v7  ;;  %v271_v4 = vld [vmem:[%s4005_s21 + $0x1d0] sm:$0xff] }
  0xc5   : > { %v3450_v32 = vcombine.high %v224_v19, %v228_v20  ;;  %v275_v7 = vld [vmem:[%s4005_s21 + $0x1f0] sm:$0xff]  ;;  %v276_v9 = vld [vmem:[%s4005_s21 + $0x1f8] sm:$0xff] }
  0xc6   : > { %v283_v16 = vld [vmem:[%s4005_s21 + $0x230] sm:$0xff]  ;;  %v280_v17 = vld [vmem:[%s4005_s21 + $0x218] sm:$0xff] }
  0xc7   : > { %2771 = vmatpush1.bf16.msra.mxu0 %v3787_v27  ;;  %2935 = vmatpush1.bf16.msra.mxu1 %v3789_v28  ;;  %v232_v27 = vld [vmem:[%s4005_s21 + $0x98] sm:$0xff] }
  0xc8   : > { %2772 = vmatprep.subr.bf16.mxu0 %v3796_v29  ;;  %2936 = vmatprep.subr.bf16.mxu1 %v3798_v30  ;;  %v236_v28 = vld [vmem:[%s4005_s21 + $0xb8] sm:$0xff]  ;;  %v3449_v29 = vcombine.low %v224_v19, %v228_v20  ;;  %v3456_v30 = vcombine.high %v231_v24, %v235_v5  ;;  %v3495_v20 = vcombine.low %v271_v4, %v275_v7 }
  0xc9   : > { %v3458_v31 = vcombine.high %v232_v27, %v236_v28  ;;  %v284_v19 = vld [vmem:[%s4005_s21 + $0x238] sm:$0xff] }
  0xcb   : > { %2773 = vmatpush1.bf16.msra.mxu0 %v3795_v37  ;;  %2937 = vmatpush1.bf16.msra.mxu1 %v3797_v38  ;;  %v244_v37 = vld [vmem:[%s4005_s21 + $0xf8] sm:$0xff]  ;;  %v3455_v38 = vcombine.low %v231_v24, %v235_v5  ;;  %v291_v24 = vld [vmem:[%s4005_s21 + $0x270] sm:$0xff] }
  0xcc   : > { %2774 = vmatprep.subr.bf16.mxu0 %v3804_v39  ;;  %2938 = vmatprep.subr.bf16.mxu1 %v3806_v41  ;;  %v3457_v39 = vcombine.low %v232_v27, %v236_v28  ;;  %v3464_v41 = vcombine.high %v239_v33, %v243_v35  ;;  %v3466_v42 = vcombine.high %v240_v36, %v244_v37  ;;  %v288_v5 = vld [vmem:[%s4005_s21 + $0x258] sm:$0xff] }
  0xcd   : > { %v292_v27 = vld [vmem:[%s4005_s21 + $0x278] sm:$0xff]  ;;  %v3503_v28 = vcombine.low %v279_v15, %v283_v16 }
  0xcf   : > { %2775 = vmatpush1.bf16.msra.mxu0 %v3803_v46  ;;  %2939 = vmatpush1.bf16.msra.mxu1 %v3805_v47  ;;  %v252_v46 = vld [vmem:[%s4005_s21 + $0x138] sm:$0xff]  ;;  %v3463_v47 = vcombine.low %v239_v33, %v243_v35  ;;  %v299_v33 = vld [vmem:[%s4005_s21 + $0x2b0] sm:$0xff] }
  0xd0   : > { %2776 = vmatprep.subr.bf16.mxu0 %v3812_v48  ;;  %2940 = vmatprep.subr.bf16.mxu1 %v3814_v50  ;;  %v3472_v48 = vcombine.high %v247_v43, %v251_v44  ;;  %v3474_v50 = vcombine.high %v248_v45, %v252_v46  ;;  %v296_v35 = vld [vmem:[%s4005_s21 + $0x298] sm:$0xff] }
  0xd3   : > { %2777 = vmatpush1.bf16.msra.mxu0 %v3811_v56  ;;  %2941 = vmatpush1.bf16.msra.mxu1 %v3813_v57  ;;  %v3471_v56 = vcombine.low %v247_v43, %v251_v44  ;;  %v3473_v57 = vcombine.low %v248_v45, %v252_v46  ;;  %v307_v43 = vld [vmem:[%s4005_s21 + $0x2f0] sm:$0xff]  ;;  %v304_v44 = vld [vmem:[%s4005_s21 + $0x2d8] sm:$0xff] }
  0xd4   : > { %2787 = vmatprep.subr.bf16.mxu0 %v3820_v58  ;;  %2951 = vmatprep.subr.bf16.mxu1 %v3822_v59  ;;  %v3480_v58 = vcombine.high %v255_v52, %v259_v53  ;;  %v3482_v59 = vcombine.high %v256_v54, %v260_v55  ;;  %v308_v45 = vld [vmem:[%s4005_s21 + $0x2f8] sm:$0xff] }
  0xd6   : > { %2779 = vmatmul.mubr.bf16.vlgmr.msra.gmra.mrb[0].mxu0 %v4172_v40  ;;  %2943 = vmatmul.mubr.bf16.vlgmr.msra.gmra.mrb[0].mxu1 %v4172_v40 }
  0xd7   : > { %2788 = vmatpush1.bf16.msra.mxu0 %v3819_v0  ;;  %2952 = vmatpush1.bf16.msra.mxu1 %v3821_v1  ;;  %v3479_v0 = vcombine.low %v255_v52, %v259_v53  ;;  %v3481_v1 = vcombine.low %v256_v54, %v260_v55  ;;  %v315_v52 = vld [vmem:[%s4005_s21 + $0x330] sm:$0xff]  ;;  %v312_v53 = vld [vmem:[%s4005_s21 + $0x318] sm:$0xff] }
  0xd8   : > { %2789 = vmatprep.subr.bf16.mxu0 %v3828_v2  ;;  %2953 = vmatprep.subr.bf16.mxu1 %v3830_v3  ;;  %v3488_v2 = vcombine.high %v263_v60, %v267_v61  ;;  %v3490_v3 = vcombine.high %v264_v62, %v268_v63  ;;  %v316_v54 = vld [vmem:[%s4005_s21 + $0x338] sm:$0xff] }
  0xd9   : > { %2819 = vmatprep.mubr.bf16.mxu0 %v3953_v51  ;;  %2983 = vmatprep.mubr.bf16.mxu1 %v3953_v51 }
  0xdb   : > { %2790 = vmatpush1.bf16.msra.mxu0 %v3827_v11  ;;  %2954 = vmatpush1.bf16.msra.mxu1 %v3829_v12  ;;  %v3487_v11 = vcombine.low %v263_v60, %v267_v61  ;;  %v3489_v12 = vcombine.low %v264_v62, %v268_v63  ;;  %v323_v60 = vld [vmem:[%s4005_s21 + $0x370] sm:$0xff]  ;;  %v320_v61 = vld [vmem:[%s4005_s21 + $0x358] sm:$0xff] }
  0xdc   : > { %2992 = vmatprep.subr.bf16.mxu0 %v3440_v13  ;;  %3156 = vmatprep.subr.bf16.mxu1 %v3442_v14  ;;  %v3496_v13 = vcombine.high %v271_v4, %v275_v7  ;;  %v3498_v14 = vcombine.high %v272_v8, %v276_v9  ;;  %v324_v62 = vld [vmem:[%s4005_s21 + $0x378] sm:$0xff]  ;;  %v331_v4 = vld [vmem:[%s4005_s21 + $0x3b0] sm:$0xff] }
  0xdd   : > { %v328_v7 = vld [vmem:[%s4005_s21 + $0x398] sm:$0xff] }
  0xe2   : > { %3835 = vmatmul.mubr.msk.bf16.vlgmr.msra.gmra.mrb[0].mxu0 %vm2660_vm0, %v4264_v18  ;;  %3836 = vmatmul.mubr.msk.bf16.vlgmr.msra.gmra.mrb[0].mxu1 %vm2660_vm0, %v4264_v18 }
  0xe3   : > { %2993 = vmatpush1.bf16.msra.mxu0 %v3439_v21  ;;  %3157 = vmatpush1.bf16.msra.mxu1 %v3441_v22  ;;  %v3497_v21 = vcombine.low %v272_v8, %v276_v9  ;;  %v3504_v22 = vcombine.high %v279_v15, %v283_v16  ;;  %v332_v8 = vld [vmem:[%s4005_s21 + $0x3b8] sm:$0xff]  ;;  %v339_v15 = vld [vmem:[%s4005_s21 + $0x3f0] sm:$0xff] }
  0xe4   : > { %2994 = vmatprep.subr.bf16.mxu0 %v3448_v23  ;;  %3158 = vmatprep.subr.bf16.mxu1 %v3450_v32  ;;  %v3506_v23 = vcombine.high %v280_v17, %v284_v19  ;;  %v287_v32 = vld [vmem:[%s4005_s21 + $0x250] sm:$0xff]  ;;  %v336_v16 = vld [vmem:[%s4005_s21 + $0x3d8] sm:$0xff] }
  0xe5   : > { %3024 = vmatprep.mubr.bf16.mxu0 %v4025_v26  ;;  %3188 = vmatprep.mubr.bf16.mxu1 %v4025_v26  ;;  %v3465_v26 = vcombine.low %v240_v36, %v244_v37  ;;  %v300_v36 = vld [vmem:[%s4005_s21 + $0x2b8] sm:$0xff]  ;;  %v3511_v37 = vcombine.low %v287_v32, %v291_v24 }
  0xe7   : > { %2995 = vmatpush1.bf16.msra.mxu0 %v3447_v6  ;;  %3159 = vmatpush1.bf16.msra.mxu1 %v3449_v29  ;;  %v3505_v6 = vcombine.low %v280_v17, %v284_v19  ;;  %v3512_v29 = vcombine.high %v287_v32, %v291_v24  ;;  %v340_v17 = vld [vmem:[%s4005_s21 + $0x3f8] sm:$0xff]  ;;  %v347_v32 = vld [vmem:[%s4005_s21 + $0x430] sm:$0xff] }
  0xe8   : > { %2996 = vmatprep.subr.bf16.mxu0 %v3456_v30  ;;  %3160 = vmatprep.subr.bf16.mxu1 %v3458_v31  ;;  %v3514_v30 = vcombine.high %v288_v5, %v292_v27  ;;  %v295_v31 = vld [vmem:[%s4005_s21 + $0x290] sm:$0xff]  ;;  %v344_v24 = vld [vmem:[%s4005_s21 + $0x418] sm:$0xff] }
  0xe9   : > { %v3519_v46 = vcombine.low %v295_v31, %v299_v33 }
  0xeb   : > { %2997 = vmatpush1.bf16.msra.mxu0 %v3455_v38  ;;  %3161 = vmatpush1.bf16.msra.mxu1 %v3457_v39  ;;  %v3513_v38 = vcombine.low %v288_v5, %v292_v27  ;;  %v3520_v39 = vcombine.high %v295_v31, %v299_v33  ;;  %v348_v5 = vld [vmem:[%s4005_s21 + $0x438] sm:$0xff]  ;;  %v355_v31 = vld [vmem:[%s4005_s21 + $0x470] sm:$0xff] }
  0xec   : > { %2998 = vmatprep.subr.bf16.mxu0 %v3464_v41  ;;  %3162 = vmatprep.subr.bf16.mxu1 %v3466_v42  ;;  %v3522_v41 = vcombine.high %v296_v35, %v300_v36  ;;  %v303_v42 = vld [vmem:[%s4005_s21 + $0x2d0] sm:$0xff]  ;;  %v352_v33 = vld [vmem:[%s4005_s21 + $0x458] sm:$0xff] }
  0xed   : > { %v3527_v55 = vcombine.low %v303_v42, %v307_v43 }
  0xef   : > { %2999 = vmatpush1.bf16.msra.mxu0 %v3463_v47  ;;  %3163 = vmatpush1.bf16.msra.mxu1 %v3465_v26  ;;  %v3521_v47 = vcombine.low %v296_v35, %v300_v36  ;;  %v3528_v26 = vcombine.high %v303_v42, %v307_v43  ;;  %v356_v35 = vld [vmem:[%s4005_s21 + $0x478] sm:$0xff]  ;;  %v363_v42 = vld [vmem:[%s4005_s21 + $0x4b0] sm:$0xff] }
  0xf0   : > { %3000 = vmatprep.subr.bf16.mxu0 %v3472_v48  ;;  %3164 = vmatprep.subr.bf16.mxu1 %v3474_v50  ;;  %v3530_v48 = vcombine.high %v304_v44, %v308_v45  ;;  %v311_v50 = vld [vmem:[%s4005_s21 + $0x310] sm:$0xff]  ;;  %v360_v43 = vld [vmem:[%s4005_s21 + $0x498] sm:$0xff] }
  0xf1   : > { %v3535_v63 = vcombine.low %v311_v50, %v315_v52 }
  0xf3   : > { %3001 = vmatpush1.bf16.msra.mxu0 %v3471_v56  ;;  %3165 = vmatpush1.bf16.msra.mxu1 %v3473_v57  ;;  %v3529_v56 = vcombine.low %v304_v44, %v308_v45  ;;  %v3536_v57 = vcombine.high %v311_v50, %v315_v52  ;;  %v364_v44 = vld [vmem:[%s4005_s21 + $0x4b8] sm:$0xff]  ;;  %v371_v50 = vld [vmem:[%s4005_s21 + $0x4f0] sm:$0xff] }
  0xf4   : > { %3002 = vmatprep.subr.bf16.mxu0 %v3480_v58  ;;  %3166 = vmatprep.subr.bf16.mxu1 %v3482_v59  ;;  %v3538_v58 = vcombine.high %v312_v53, %v316_v54  ;;  %v319_v59 = vld [vmem:[%s4005_s21 + $0x350] sm:$0xff]  ;;  %v368_v52 = vld [vmem:[%s4005_s21 + $0x4d8] sm:$0xff] }
  0xf5   : > { %v3543_v9 = vcombine.low %v319_v59, %v323_v60 }
  0xf7   : > { %3003 = vmatpush1.bf16.msra.mxu0 %v3479_v0  ;;  %3167 = vmatpush1.bf16.msra.mxu1 %v3481_v1  ;;  %v3537_v0 = vcombine.low %v312_v53, %v316_v54  ;;  %v3544_v1 = vcombine.high %v319_v59, %v323_v60  ;;  %v372_v53 = vld [vmem:[%s4005_s21 + $0x4f8] sm:$0xff]  ;;  %v3585_v54 = vcombine.low %v360_v43, %v364_v44 }
  0xf8   : > { %3004 = vmatprep.subr.bf16.mxu0 %v3488_v2  ;;  %3168 = vmatprep.subr.bf16.mxu1 %v3490_v3  ;;  %v3546_v2 = vcombine.high %v320_v61, %v324_v62  ;;  %v327_v3 = vld [vmem:[%s4005_s21 + $0x390] sm:$0xff]  ;;  %v376_v59 = vld [vmem:[%s4005_s21 + $0x518] sm:$0xff] }
  0xf9   : > { %v3551_v19 = vcombine.low %v327_v3, %v331_v4  ;;  %v380_v60 = vld [vmem:[%s4005_s21 + $0x538] sm:$0xff] }
  0xfb   : > { %3005 = vmatpush1.bf16.msra.mxu0 %v3487_v11  ;;  %3169 = vmatpush1.bf16.msra.mxu1 %v3489_v12  ;;  %v3545_v11 = vcombine.low %v320_v61, %v324_v62  ;;  %v3552_v12 = vcombine.high %v327_v3, %v331_v4  ;;  %v388_v3 = vld [vmem:[%s4005_s21 + $0x578] sm:$0xff] }
  0xfc   : > { %3006 = vmatprep.subr.bf16.mxu0 %v3496_v13  ;;  %3170 = vmatprep.subr.bf16.mxu1 %v3498_v14  ;;  %v3554_v13 = vcombine.high %v328_v7, %v332_v8  ;;  %v335_v14 = vld [vmem:[%s4005_s21 + $0x3d0] sm:$0xff] }
  0xfd   : > { %v3559_v27 = vcombine.low %v335_v14, %v339_v15 }
  0xff   : > { %3007 = vmatpush1.bf16.msra.mxu0 %v3495_v20  ;;  %3171 = vmatpush1.bf16.msra.mxu1 %v3497_v21  ;;  %v3553_v20 = vcombine.low %v328_v7, %v332_v8  ;;  %v3560_v21 = vcombine.high %v335_v14, %v339_v15  ;;  %v3601_v7 = vcombine.low %v376_v59, %v380_v60  ;;  %v396_v14 = vld [vmem:[%s4005_s21 + $0x5b8] sm:$0xff] }
 0x100   : > { %3008 = vmatprep.subr.bf16.mxu0 %v3504_v22  ;;  %3172 = vmatprep.subr.bf16.mxu1 %v3506_v23  ;;  %v3562_v22 = vcombine.high %v336_v16, %v340_v17  ;;  %v343_v23 = vld [vmem:[%s4005_s21 + $0x410] sm:$0xff] }
 0x101   : > { %v3567_v36 = vcombine.low %v343_v23, %v347_v32 }
 0x103   : > { %3009 = vmatpush1.bf16.msra.mxu0 %v3503_v28  ;;  %3173 = vmatpush1.bf16.msra.mxu1 %v3505_v6  ;;  %v3561_v28 = vcombine.low %v336_v16, %v340_v17  ;;  %v3568_v6 = vcombine.high %v343_v23, %v347_v32  ;;  %v404_v23 = vld [vmem:[%s4005_s21 + $0x5f8] sm:$0xff] }
 0x104   : > { %3010 = vmatprep.subr.bf16.mxu0 %v3512_v29  ;;  %3174 = vmatprep.subr.bf16.mxu1 %v3514_v30  ;;  %v3570_v29 = vcombine.high %v344_v24, %v348_v5  ;;  %v351_v30 = vld [vmem:[%s4005_s21 + $0x450] sm:$0xff] }
 0x105   : > { %v3575_v45 = vcombine.low %v351_v30, %v355_v31 }
 0x107   : > { %3011 = vmatpush1.bf16.msra.mxu0 %v3511_v37  ;;  %3175 = vmatpush1.bf16.msra.mxu1 %v3513_v38  ;;  %v3569_v37 = vcombine.low %v344_v24, %v348_v5  ;;  %v3576_v38 = vcombine.high %v351_v30, %v355_v31  ;;  %v412_v30 = vld [vmem:[%s4005_s21 + $0x638] sm:$0xff] }
 0x108   : > { %3012 = vmatprep.subr.bf16.mxu0 %v3520_v39  ;;  %3176 = vmatprep.subr.bf16.mxu1 %v3522_v41  ;;  %v3578_v39 = vcombine.high %v352_v33, %v356_v35  ;;  %v359_v41 = vld [vmem:[%s4005_s21 + $0x490] sm:$0xff] }
 0x10b   : > { %3013 = vmatpush1.bf16.msra.mxu0 %v3519_v46  ;;  %3177 = vmatpush1.bf16.msra.mxu1 %v3521_v47  ;;  %v3577_v46 = vcombine.low %v352_v33, %v356_v35  ;;  %v3584_v47 = vcombine.high %v359_v41, %v363_v42 }
 0x10c   : > { %3014 = vmatprep.subr.bf16.mxu0 %v3528_v26  ;;  %3178 = vmatprep.subr.bf16.mxu1 %v3530_v48  ;;  %v3586_v26 = vcombine.high %v360_v43, %v364_v44  ;;  %v367_v48 = vld [vmem:[%s4005_s21 + $0x4d0] sm:$0xff] }
 0x10d   : > { %v3591_v61 = vcombine.low %v367_v48, %v371_v50 }
 0x10f   : > { %3015 = vmatpush1.bf16.msra.mxu0 %v3527_v55  ;;  %3179 = vmatpush1.bf16.msra.mxu1 %v3529_v56  ;;  %v3592_v55 = vcombine.high %v367_v48, %v371_v50  ;;  %v3594_v56 = vcombine.high %v368_v52, %v372_v53  ;;  %v428_v48 = vld [vmem:[%s4005_s21 + $0x6b8] sm:$0xff] }
 0x110   : > { %3016 = vmatprep.subr.bf16.mxu0 %v3536_v57  ;;  %3180 = vmatprep.subr.bf16.mxu1 %v3538_v58  ;;  %v375_v57 = vld [vmem:[%s4005_s21 + $0x510] sm:$0xff] }
 0x111   : > { %v379_v58 = vld [vmem:[%s4005_s21 + $0x530] sm:$0xff] }
 0x112   : > { %v3600_v62 = vcombine.high %v375_v57, %v379_v58  ;;  %v3599_v4 = vcombine.low %v375_v57, %v379_v58  ;;  %v436_v57 = vld [vmem:[%s4005_s21 + $0x6f8] sm:$0xff] }
 0x113   : > { %3017 = vmatpush1.bf16.msra.mxu0 %v3535_v63  ;;  %3181 = vmatpush1.bf16.msra.mxu1 %v3537_v0  ;;  %v3602_v63 = vcombine.high %v376_v59, %v380_v60  ;;  %v383_v0 = vld [vmem:[%s4005_s21 + $0x550] sm:$0xff] }
 0x114   : > { %3018 = vmatprep.subr.bf16.mxu0 %v3544_v1  ;;  %3182 = vmatprep.subr.bf16.mxu1 %v3546_v2  ;;  %v387_v1 = vld [vmem:[%s4005_s21 + $0x570] sm:$0xff]  ;;  %v384_v2 = vld [vmem:[%s4005_s21 + $0x558] sm:$0xff] }
 0x115   : > { %v3608_v8 = vcombine.high %v383_v0, %v387_v1  ;;  %v3607_v15 = vcombine.low %v383_v0, %v387_v1  ;;  %v3609_v16 = vcombine.low %v384_v2, %v388_v3  ;;  %v444_v0 = vld [vmem:[%s4005_s21 + $0x738] sm:$0xff] }
 0x117   : > { %3019 = vmatpush1.bf16.msra.mxu0 %v3543_v9  ;;  %3183 = vmatpush1.bf16.msra.mxu1 %v3545_v11  ;;  %v3610_v9 = vcombine.high %v384_v2, %v388_v3  ;;  %v391_v11 = vld [vmem:[%s4005_s21 + $0x590] sm:$0xff] }
 0x118   : > { %3020 = vmatprep.subr.bf16.mxu0 %v3552_v12  ;;  %3184 = vmatprep.subr.bf16.mxu1 %v3554_v13  ;;  %v395_v12 = vld [vmem:[%s4005_s21 + $0x5b0] sm:$0xff]  ;;  %v392_v13 = vld [vmem:[%s4005_s21 + $0x598] sm:$0xff] }
 0x119   : > { %v3616_v17 = vcombine.high %v391_v11, %v395_v12  ;;  %v3615_v32 = vcombine.low %v391_v11, %v395_v12  ;;  %v3617_v24 = vcombine.low %v392_v13, %v396_v14  ;;  %v452_v11 = vld [vmem:[%s4005_s21 + $0x778] sm:$0xff] }
 0x11b   : > { %3021 = vmatpush1.bf16.msra.mxu0 %v3551_v19  ;;  %3185 = vmatpush1.bf16.msra.mxu1 %v3553_v20  ;;  %v3618_v19 = vcombine.high %v392_v13, %v396_v14  ;;  %v399_v20 = vld [vmem:[%s4005_s21 + $0x5d0] sm:$0xff] }
 0x11c   : > { %3022 = vmatprep.subr.bf16.mxu0 %v3560_v21  ;;  %3186 = vmatprep.subr.bf16.mxu1 %v3562_v22  ;;  %v403_v21 = vld [vmem:[%s4005_s21 + $0x5f0] sm:$0xff]  ;;  %v400_v22 = vld [vmem:[%s4005_s21 + $0x5d8] sm:$0xff] }
 0x11d   : > { %v3624_v5 = vcombine.high %v399_v20, %v403_v21  ;;  %v3623_v31 = vcombine.low %v399_v20, %v403_v21  ;;  %v3625_v33 = vcombine.low %v400_v22, %v404_v23  ;;  %v460_v20 = vld [vmem:[%s4005_s21 + $0x7b8] sm:$0xff] }
 0x11f   : > { %3023 = vmatpush1.bf16.msra.mxu0 %v3559_v27  ;;  %3187 = vmatpush1.bf16.msra.mxu1 %v3561_v28  ;;  %v3626_v27 = vcombine.high %v400_v22, %v404_v23  ;;  %v407_v28 = vld [vmem:[%s4005_s21 + $0x610] sm:$0xff] }
 0x120   : > { %3033 = vmatprep.subr.bf16.mxu0 %v3568_v6  ;;  %3197 = vmatprep.subr.bf16.mxu1 %v3570_v29  ;;  %v411_v6 = vld [vmem:[%s4005_s21 + $0x630] sm:$0xff]  ;;  %v408_v29 = vld [vmem:[%s4005_s21 + $0x618] sm:$0xff] }
 0x121   : > { %v3632_v35 = vcombine.high %v407_v28, %v411_v6  ;;  %v3633_v43 = vcombine.low %v408_v29, %v412_v30 }
 0x122   : > { %3025 = vmatmul.mubr.bf16.vlgmr.msra.gmra.mrb[4].mxu0 %v4012_v10  ;;  %3189 = vmatmul.mubr.bf16.vlgmr.msra.gmra.mrb[4].mxu1 %v4012_v10  ;;  %v3583_v10 = vcombine.low %v359_v41, %v363_v42  ;;  %v420_v41 = vld [vmem:[%s4005_s21 + $0x678] sm:$0xff]  ;;  %v3631_v42 = vcombine.low %v407_v28, %v411_v6 }
 0x123   : > { %3034 = vmatpush1.bf16.msra.mxu0 %v3567_v36  ;;  %3198 = vmatpush1.bf16.msra.mxu1 %v3569_v37  ;;  %v3634_v36 = vcombine.high %v408_v29, %v412_v30  ;;  %v415_v37 = vld [vmem:[%s4005_s21 + $0x650] sm:$0xff]  ;;  %v468_v28 = vld [vmem:[%s4005_s21 + $0x7f8] sm:$0xff] }
 0x124   : > { %3035 = vmatprep.subr.bf16.mxu0 %v3576_v38  ;;  %3199 = vmatprep.subr.bf16.mxu1 %v3578_v39  ;;  %v419_v38 = vld [vmem:[%s4005_s21 + $0x670] sm:$0xff]  ;;  %v416_v39 = vld [vmem:[%s4005_s21 + $0x658] sm:$0xff] }
 0x125   : > { %3065 = vmatprep.mubr.bf16.mxu0 %v4098_v34  ;;  %3229 = vmatprep.mubr.bf16.mxu1 %v4098_v34  ;;  %v3593_v34 = vcombine.low %v368_v52, %v372_v53  ;;  %v3640_v44 = vcombine.high %v415_v37, %v419_v38  ;;  %v3639_v50 = vcombine.low %v415_v37, %v419_v38  ;;  %v476_v37 = vld [vmem:[%s4005_s21 + $0x838] sm:$0xff] }
 0x126   : > { %v3641_v52 = vcombine.low %v416_v39, %v420_v41 }
 0x127   : > { %3036 = vmatpush1.bf16.msra.mxu0 %v3575_v45  ;;  %3200 = vmatpush1.bf16.msra.mxu1 %v3577_v46  ;;  %v3642_v45 = vcombine.high %v416_v39, %v420_v41  ;;  %v423_v46 = vld [vmem:[%s4005_s21 + $0x690] sm:$0xff] }
 0x128   : > { %3037 = vmatprep.subr.bf16.mxu0 %v3584_v47  ;;  %3201 = vmatprep.subr.bf16.mxu1 %v3586_v26  ;;  %v427_v47 = vld [vmem:[%s4005_s21 + $0x6b0] sm:$0xff]  ;;  %v424_v26 = vld [vmem:[%s4005_s21 + $0x698] sm:$0xff] }
 0x129   : > { %v3648_v53 = vcombine.high %v423_v46, %v427_v47  ;;  %v3647_v58 = vcombine.low %v423_v46, %v427_v47  ;;  %v3649_v59 = vcombine.low %v424_v26, %v428_v48  ;;  %v484_v46 = vld [vmem:[%s4005_s21 + $0x878] sm:$0xff] }
 0x12b   : > { %3038 = vmatpush1.bf16.msra.mxu0 %v3583_v10  ;;  %3202 = vmatpush1.bf16.msra.mxu1 %v3585_v54  ;;  %v3650_v10 = vcombine.high %v424_v26, %v428_v48  ;;  %v431_v54 = vld [vmem:[%s4005_s21 + $0x6d0] sm:$0xff] }
 0x12c   : > { %3039 = vmatprep.subr.bf16.mxu0 %v3592_v55  ;;  %3203 = vmatprep.subr.bf16.mxu1 %v3594_v56  ;;  %v435_v55 = vld [vmem:[%s4005_s21 + $0x6f0] sm:$0xff]  ;;  %v432_v56 = vld [vmem:[%s4005_s21 + $0x6d8] sm:$0xff] }
 0x12d   : > { %v3656_v60 = vcombine.high %v431_v54, %v435_v55  ;;  %v3655_v1 = vcombine.low %v431_v54, %v435_v55  ;;  %v3657_v2 = vcombine.low %v432_v56, %v436_v57  ;;  %v492_v54 = vld [vmem:[%s4005_s21 + $0x8b8] sm:$0xff] }
 0x12f   : > { %3040 = vmatpush1.bf16.msra.mxu0 %v3591_v61  ;;  %3204 = vmatpush1.bf16.msra.mxu1 %v3593_v34  ;;  %v3658_v61 = vcombine.high %v432_v56, %v436_v57  ;;  %v439_v34 = vld [vmem:[%s4005_s21 + $0x710] sm:$0xff] }
 0x130   : > { %3041 = vmatprep.subr.bf16.mxu0 %v3600_v62  ;;  %3205 = vmatprep.subr.bf16.mxu1 %v3602_v63  ;;  %v443_v62 = vld [vmem:[%s4005_s21 + $0x730] sm:$0xff]  ;;  %v440_v63 = vld [vmem:[%s4005_s21 + $0x718] sm:$0xff] }
 0x131   : > { %v3664_v3 = vcombine.high %v439_v34, %v443_v62  ;;  %v3663_v12 = vcombine.low %v439_v34, %v443_v62  ;;  %v3665_v13 = vcombine.low %v440_v63, %v444_v0  ;;  %v500_v34 = vld [vmem:[%s4005_s21 + $0x8f8] sm:$0xff] }
 0x133   : > { %3042 = vmatpush1.bf16.msra.mxu0 %v3599_v4  ;;  %3206 = vmatpush1.bf16.msra.mxu1 %v3601_v7  ;;  %v3666_v4 = vcombine.high %v440_v63, %v444_v0  ;;  %v447_v7 = vld [vmem:[%s4005_s21 + $0x750] sm:$0xff] }
 0x134   : > { %3043 = vmatprep.subr.bf16.mxu0 %v3608_v8  ;;  %3207 = vmatprep.subr.bf16.mxu1 %v3610_v9  ;;  %v451_v8 = vld [vmem:[%s4005_s21 + $0x770] sm:$0xff]  ;;  %v448_v9 = vld [vmem:[%s4005_s21 + $0x758] sm:$0xff] }
 0x135   : > { %v3672_v14 = vcombine.high %v447_v7, %v451_v8  ;;  %v3671_v21 = vcombine.low %v447_v7, %v451_v8  ;;  %v3673_v22 = vcombine.low %v448_v9, %v452_v11 }
 0x137   : > { %3044 = vmatpush1.bf16.msra.mxu0 %v3607_v15  ;;  %3208 = vmatpush1.bf16.msra.mxu1 %v3609_v16  ;;  %v3674_v15 = vcombine.high %v448_v9, %v452_v11  ;;  %v455_v16 = vld [vmem:[%s4005_s21 + $0x790] sm:$0xff] }
 0x138   : > { %3045 = vmatprep.subr.bf16.mxu0 %v3616_v17  ;;  %3209 = vmatprep.subr.bf16.mxu1 %v3618_v19  ;;  %v459_v17 = vld [vmem:[%s4005_s21 + $0x7b0] sm:$0xff]  ;;  %v456_v19 = vld [vmem:[%s4005_s21 + $0x798] sm:$0xff] }
 0x139   : > { %v3680_v23 = vcombine.high %v455_v16, %v459_v17  ;;  %v3679_v6 = vcombine.low %v455_v16, %v459_v17  ;;  %v3681_v29 = vcombine.low %v456_v19, %v460_v20  ;;  %v511_v11 = vld [vmem:[%s4005_s21 + $0x950] sm:$0xff] }
 0x13b   : > { %3046 = vmatpush1.bf16.msra.mxu0 %v3615_v32  ;;  %3210 = vmatpush1.bf16.msra.mxu1 %v3617_v24  ;;  %v3682_v32 = vcombine.high %v456_v19, %v460_v20  ;;  %v463_v24 = vld [vmem:[%s4005_s21 + $0x7d0] sm:$0xff] }
 0x13c   : > { %3047 = vmatprep.subr.bf16.mxu0 %v3624_v5  ;;  %3211 = vmatprep.subr.bf16.mxu1 %v3626_v27  ;;  %v467_v5 = vld [vmem:[%s4005_s21 + $0x7f0] sm:$0xff]  ;;  %v464_v27 = vld [vmem:[%s4005_s21 + $0x7d8] sm:$0xff] }
 0x13d   : > { %v3688_v30 = vcombine.high %v463_v24, %v467_v5  ;;  %v3687_v38 = vcombine.low %v463_v24, %v467_v5  ;;  %v3689_v39 = vcombine.low %v464_v27, %v468_v28  ;;  %v519_v20 = vld [vmem:[%s4005_s21 + $0x990] sm:$0xff] }
 0x13f   : > { %3048 = vmatpush1.bf16.msra.mxu0 %v3623_v31  ;;  %3212 = vmatpush1.bf16.msra.mxu1 %v3625_v33  ;;  %v3690_v31 = vcombine.high %v464_v27, %v468_v28  ;;  %v471_v33 = vld [vmem:[%s4005_s21 + $0x810] sm:$0xff] }
 0x140   : > { %3049 = vmatprep.subr.bf16.mxu0 %v3632_v35  ;;  %3213 = vmatprep.subr.bf16.mxu1 %v3634_v36  ;;  %v475_v35 = vld [vmem:[%s4005_s21 + $0x830] sm:$0xff]  ;;  %v472_v36 = vld [vmem:[%s4005_s21 + $0x818] sm:$0xff] }
 0x141   : > { %v3696_v41 = vcombine.high %v471_v33, %v475_v35  ;;  %v3695_v47 = vcombine.low %v471_v33, %v475_v35  ;;  %v3697_v26 = vcombine.low %v472_v36, %v476_v37  ;;  %v527_v28 = vld [vmem:[%s4005_s21 + $0x9d0] sm:$0xff] }
 0x143   : > { %3050 = vmatpush1.bf16.msra.mxu0 %v3631_v42  ;;  %3214 = vmatpush1.bf16.msra.mxu1 %v3633_v43  ;;  %v3698_v42 = vcombine.high %v472_v36, %v476_v37  ;;  %v479_v43 = vld [vmem:[%s4005_s21 + $0x850] sm:$0xff] }
 0x144   : > { %3051 = vmatprep.subr.bf16.mxu0 %v3640_v44  ;;  %3215 = vmatprep.subr.bf16.mxu1 %v3642_v45  ;;  %v483_v44 = vld [vmem:[%s4005_s21 + $0x870] sm:$0xff]  ;;  %v480_v45 = vld [vmem:[%s4005_s21 + $0x858] sm:$0xff] }
 0x145   : > { %v3704_v48 = vcombine.high %v479_v43, %v483_v44  ;;  %v3703_v55 = vcombine.low %v479_v43, %v483_v44  ;;  %v3705_v56 = vcombine.low %v480_v45, %v484_v46  ;;  %v535_v37 = vld [vmem:[%s4005_s21 + $0xa10] sm:$0xff] }
 0x147   : > { %3052 = vmatpush1.bf16.msra.mxu0 %v3639_v50  ;;  %3216 = vmatpush1.bf16.msra.mxu1 %v3641_v52  ;;  %v3706_v50 = vcombine.high %v480_v45, %v484_v46  ;;  %v487_v52 = vld [vmem:[%s4005_s21 + $0x890] sm:$0xff] }
 0x148   : > { %3053 = vmatprep.subr.bf16.mxu0 %v3648_v53  ;;  %3217 = vmatprep.subr.bf16.mxu1 %v3650_v10  ;;  %v491_v53 = vld [vmem:[%s4005_s21 + $0x8b0] sm:$0xff]  ;;  %v488_v10 = vld [vmem:[%s4005_s21 + $0x898] sm:$0xff] }
 0x149   : > { %v3712_v57 = vcombine.high %v487_v52, %v491_v53  ;;  %v3713_v62 = vcombine.low %v488_v10, %v492_v54  ;;  %v543_v46 = vld [vmem:[%s4005_s21 + $0xa50] sm:$0xff] }
 0x14b   : > { %3054 = vmatpush1.bf16.msra.mxu0 %v3647_v58  ;;  %3218 = vmatpush1.bf16.msra.mxu1 %v3649_v59  ;;  %v3714_v58 = vcombine.high %v488_v10, %v492_v54  ;;  %v495_v59 = vld [vmem:[%s4005_s21 + $0x8d0] sm:$0xff] }
 0x14c   : > { %3055 = vmatprep.subr.bf16.mxu0 %v3656_v60  ;;  %3219 = vmatprep.subr.bf16.mxu1 %v3658_v61  ;;  %v499_v60 = vld [vmem:[%s4005_s21 + $0x8f0] sm:$0xff]  ;;  %v496_v61 = vld [vmem:[%s4005_s21 + $0x8d8] sm:$0xff] }
 0x14d   : > { %v3720_v63 = vcombine.high %v495_v59, %v499_v60  ;;  %v3722_v0 = vcombine.high %v496_v61, %v500_v34  ;;  %v3719_v7 = vcombine.low %v495_v59, %v499_v60  ;;  %v551_v54 = vld [vmem:[%s4005_s21 + $0xa90] sm:$0xff] }
 0x14f   : > { %3056 = vmatpush1.bf16.msra.mxu0 %v3655_v1  ;;  %3220 = vmatpush1.bf16.msra.mxu1 %v3657_v2  ;;  %v503_v1 = vld [vmem:[%s4005_s21 + $0x910] sm:$0xff] }
 0x150   : > { %3057 = vmatprep.subr.bf16.mxu0 %v3664_v3  ;;  %3221 = vmatprep.subr.bf16.mxu1 %v3666_v4  ;;  %v507_v2 = vld [vmem:[%s4005_s21 + $0x930] sm:$0xff]  ;;  %v504_v3 = vld [vmem:[%s4005_s21 + $0x918] sm:$0xff] }
 0x151   : > { %v508_v4 = vld [vmem:[%s4005_s21 + $0x938] sm:$0xff]  ;;  %v3728_v8 = vcombine.high %v503_v1, %v507_v2 }
 0x152   : > { %v3730_v9 = vcombine.high %v504_v3, %v508_v4  ;;  %v3729_v16 = vcombine.low %v504_v3, %v508_v4  ;;  %v567_v4 = vld [vmem:[%s4005_s21 + $0xb10] sm:$0xff] }
 0x153   : > { %3058 = vmatpush1.bf16.msra.mxu0 %v3663_v12  ;;  %3222 = vmatpush1.bf16.msra.mxu1 %v3665_v13  ;;  %v515_v12 = vld [vmem:[%s4005_s21 + $0x970] sm:$0xff]  ;;  %v512_v13 = vld [vmem:[%s4005_s21 + $0x958] sm:$0xff] }
 0x154   : > { %3059 = vmatprep.subr.bf16.mxu0 %v3672_v14  ;;  %3223 = vmatprep.subr.bf16.mxu1 %v3674_v15  ;;  %v516_v14 = vld [vmem:[%s4005_s21 + $0x978] sm:$0xff]  ;;  %v3727_v15 = vcombine.low %v503_v1, %v507_v2  ;;  %v3736_v17 = vcombine.high %v511_v11, %v515_v12 }
 0x155   : > { %v3738_v19 = vcombine.high %v512_v13, %v516_v14  ;;  %v3737_v24 = vcombine.low %v512_v13, %v516_v14  ;;  %v575_v14 = vld [vmem:[%s4005_s21 + $0xb50] sm:$0xff] }
 0x157   : > { %3060 = vmatpush1.bf16.msra.mxu0 %v3671_v21  ;;  %3224 = vmatpush1.bf16.msra.mxu1 %v3673_v22  ;;  %v523_v21 = vld [vmem:[%s4005_s21 + $0x9b0] sm:$0xff]  ;;  %v520_v22 = vld [vmem:[%s4005_s21 + $0x998] sm:$0xff] }
 0x158   : > { %3061 = vmatprep.subr.bf16.mxu0 %v3680_v23  ;;  %3225 = vmatprep.subr.bf16.mxu1 %v3682_v32  ;;  %v524_v23 = vld [vmem:[%s4005_s21 + $0x9b8] sm:$0xff]  ;;  %v3735_v32 = vcombine.low %v511_v11, %v515_v12  ;;  %v3744_v5 = vcombine.high %v519_v20, %v523_v21 }
 0x159   : > { %v3746_v27 = vcombine.high %v520_v22, %v524_v23  ;;  %v3745_v33 = vcombine.low %v520_v22, %v524_v23  ;;  %v583_v23 = vld [vmem:[%s4005_s21 + $0xb90] sm:$0xff] }
 0x15b   : > { %3062 = vmatpush1.bf16.msra.mxu0 %v3679_v6  ;;  %3226 = vmatpush1.bf16.msra.mxu1 %v3681_v29  ;;  %v531_v6 = vld [vmem:[%s4005_s21 + $0x9f0] sm:$0xff]  ;;  %v528_v29 = vld [vmem:[%s4005_s21 + $0x9d8] sm:$0xff] }
 0x15c   : > { %3063 = vmatprep.subr.bf16.mxu0 %v3688_v30  ;;  %3227 = vmatprep.subr.bf16.mxu1 %v3690_v31  ;;  %v532_v30 = vld [vmem:[%s4005_s21 + $0x9f8] sm:$0xff]  ;;  %v3743_v31 = vcombine.low %v519_v20, %v523_v21  ;;  %v3752_v35 = vcombine.high %v527_v28, %v531_v6 }
 0x15d   : > { %v3754_v36 = vcombine.high %v528_v29, %v532_v30  ;;  %v3753_v43 = vcombine.low %v528_v29, %v532_v30  ;;  %v591_v30 = vld [vmem:[%s4005_s21 + $0xbd0] sm:$0xff] }
 0x15f   : > { %3064 = vmatpush1.bf16.msra.mxu0 %v3687_v38  ;;  %3228 = vmatpush1.bf16.msra.mxu1 %v3689_v39  ;;  %v539_v38 = vld [vmem:[%s4005_s21 + $0xa30] sm:$0xff]  ;;  %v536_v39 = vld [vmem:[%s4005_s21 + $0xa18] sm:$0xff] }
 0x160   : > { %3074 = vmatprep.subr.bf16.mxu0 %v3696_v41  ;;  %3238 = vmatprep.subr.bf16.mxu1 %v3698_v42  ;;  %v540_v41 = vld [vmem:[%s4005_s21 + $0xa38] sm:$0xff]  ;;  %v3751_v42 = vcombine.low %v527_v28, %v531_v6  ;;  %v3760_v44 = vcombine.high %v535_v37, %v539_v38 }
 0x161   : > { %v3762_v45 = vcombine.high %v536_v39, %v540_v41 }
 0x162   : > { %3066 = vmatmul.mubr.bf16.vlgmr.msra.gmra.mrb[4].mxu0 %v4090_v25  ;;  %3230 = vmatmul.mubr.bf16.vlgmr.msra.gmra.mrb[4].mxu1 %v4090_v25  ;;  %v3711_v25 = vcombine.low %v487_v52, %v491_v53  ;;  %v3761_v52 = vcombine.low %v536_v39, %v540_v41  ;;  %v599_v41 = vld [vmem:[%s4005_s21 + $0xc10] sm:$0xff] }
 0x163   : > { %3075 = vmatpush1.bf16.msra.mxu0 %v3695_v47  ;;  %3239 = vmatpush1.bf16.msra.mxu1 %v3697_v26  ;;  %v547_v47 = vld [vmem:[%s4005_s21 + $0xa70] sm:$0xff]  ;;  %v544_v26 = vld [vmem:[%s4005_s21 + $0xa58] sm:$0xff] }
 0x164   : > { %3076 = vmatprep.subr.bf16.mxu0 %v3704_v48  ;;  %3240 = vmatprep.subr.bf16.mxu1 %v3706_v50  ;;  %v548_v48 = vld [vmem:[%s4005_s21 + $0xa78] sm:$0xff]  ;;  %v3759_v50 = vcombine.low %v535_v37, %v539_v38  ;;  %v3768_v53 = vcombine.high %v543_v46, %v547_v47 }
 0x165   : > { %3106 = vmatprep.mubr.bf16.mxu0 %v4180_v49  ;;  %3270 = vmatprep.mubr.bf16.mxu1 %v4180_v49  ;;  %v3721_v49 = vcombine.low %v496_v61, %v500_v34  ;;  %v3770_v10 = vcombine.high %v544_v26, %v548_v48  ;;  %v3769_v59 = vcombine.low %v544_v26, %v548_v48  ;;  %v559_v34 = vld [vmem:[%s4005_s21 + $0xad0] sm:$0xff] }
 0x166   : > { %v607_v48 = vld [vmem:[%s4005_s21 + $0xc50] sm:$0xff] }
 0x167   : > { %3077 = vmatpush1.bf16.msra.mxu0 %v3703_v55  ;;  %3241 = vmatpush1.bf16.msra.mxu1 %v3705_v56  ;;  %v555_v55 = vld [vmem:[%s4005_s21 + $0xab0] sm:$0xff]  ;;  %v552_v56 = vld [vmem:[%s4005_s21 + $0xa98] sm:$0xff] }
 0x168   : > { %3078 = vmatprep.subr.bf16.mxu0 %v3712_v57  ;;  %3242 = vmatprep.subr.bf16.mxu1 %v3714_v58  ;;  %v556_v57 = vld [vmem:[%s4005_s21 + $0xab8] sm:$0xff]  ;;  %v3767_v58 = vcombine.low %v543_v46, %v547_v47  ;;  %v3776_v60 = vcombine.high %v551_v54, %v555_v55 }
 0x169   : > { %v3778_v61 = vcombine.high %v552_v56, %v556_v57  ;;  %v3777_v1 = vcombine.low %v552_v56, %v556_v57 }
 0x16b   : > { %3079 = vmatpush1.bf16.msra.mxu0 %v3711_v25  ;;  %3243 = vmatpush1.bf16.msra.mxu1 %v3713_v62  ;;  %v563_v25 = vld [vmem:[%s4005_s21 + $0xaf0] sm:$0xff]  ;;  %v560_v62 = vld [vmem:[%s4005_s21 + $0xad8] sm:$0xff] }
 0x16c   : > { %3080 = vmatprep.subr.bf16.mxu0 %v3720_v63  ;;  %3244 = vmatprep.subr.bf16.mxu1 %v3722_v0  ;;  %v564_v63 = vld [vmem:[%s4005_s21 + $0xaf8] sm:$0xff]  ;;  %v3775_v0 = vcombine.low %v551_v54, %v555_v55  ;;  %v3784_v2 = vcombine.high %v559_v34, %v563_v25 }
 0x16d   : > { %v3786_v3 = vcombine.high %v560_v62, %v564_v63  ;;  %v3785_v11 = vcombine.low %v560_v62, %v564_v63 }
 0x16f   : > { %3081 = vmatpush1.bf16.msra.mxu0 %v3719_v7  ;;  %3245 = vmatpush1.bf16.msra.mxu1 %v3721_v49  ;;  %v571_v7 = vld [vmem:[%s4005_s21 + $0xb30] sm:$0xff]  ;;  %v568_v49 = vld [vmem:[%s4005_s21 + $0xb18] sm:$0xff] }
 0x170   : > { %3082 = vmatprep.subr.bf16.mxu0 %v3728_v8  ;;  %3246 = vmatprep.subr.bf16.mxu1 %v3730_v9  ;;  %v572_v8 = vld [vmem:[%s4005_s21 + $0xb38] sm:$0xff]  ;;  %v3783_v9 = vcombine.low %v559_v34, %v563_v25  ;;  %v3792_v12 = vcombine.high %v567_v4, %v571_v7 }
 0x171   : > { %v3794_v13 = vcombine.high %v568_v49, %v572_v8  ;;  %v3793_v20 = vcombine.low %v568_v49, %v572_v8 }
 0x173   : > { %3083 = vmatpush1.bf16.msra.mxu0 %v3727_v15  ;;  %3247 = vmatpush1.bf16.msra.mxu1 %v3729_v16  ;;  %v579_v15 = vld [vmem:[%s4005_s21 + $0xb70] sm:$0xff]  ;;  %v576_v16 = vld [vmem:[%s4005_s21 + $0xb58] sm:$0xff] }
 0x174   : > { %3084 = vmatprep.subr.bf16.mxu0 %v3736_v17  ;;  %3248 = vmatprep.subr.bf16.mxu1 %v3738_v19  ;;  %v580_v17 = vld [vmem:[%s4005_s21 + $0xb78] sm:$0xff]  ;;  %v3791_v19 = vcombine.low %v567_v4, %v571_v7  ;;  %v3800_v21 = vcombine.high %v575_v14, %v579_v15 }
 0x175   : > { %v3802_v22 = vcombine.high %v576_v16, %v580_v17  ;;  %v3801_v28 = vcombine.low %v576_v16, %v580_v17 }
 0x177   : > { %3085 = vmatpush1.bf16.msra.mxu0 %v3735_v32  ;;  %3249 = vmatpush1.bf16.msra.mxu1 %v3737_v24  ;;  %v587_v32 = vld [vmem:[%s4005_s21 + $0xbb0] sm:$0xff]  ;;  %v584_v24 = vld [vmem:[%s4005_s21 + $0xb98] sm:$0xff] }
 0x178   : > { %3086 = vmatprep.subr.bf16.mxu0 %v3744_v5  ;;  %3250 = vmatprep.subr.bf16.mxu1 %v3746_v27  ;;  %v588_v5 = vld [vmem:[%s4005_s21 + $0xbb8] sm:$0xff]  ;;  %v3799_v27 = vcombine.low %v575_v14, %v579_v15  ;;  %v3808_v6 = vcombine.high %v583_v23, %v587_v32 }
 0x179   : > { %v3810_v29 = vcombine.high %v584_v24, %v588_v5  ;;  %v3809_v37 = vcombine.low %v584_v24, %v588_v5 }
 0x17b   : > { %3087 = vmatpush1.bf16.msra.mxu0 %v3743_v31  ;;  %3251 = vmatpush1.bf16.msra.mxu1 %v3745_v33  ;;  %v595_v31 = vld [vmem:[%s4005_s21 + $0xbf0] sm:$0xff]  ;;  %v592_v33 = vld [vmem:[%s4005_s21 + $0xbd8] sm:$0xff] }
 0x17c   : > { %3088 = vmatprep.subr.bf16.mxu0 %v3752_v35  ;;  %3252 = vmatprep.subr.bf16.mxu1 %v3754_v36  ;;  %v596_v35 = vld [vmem:[%s4005_s21 + $0xbf8] sm:$0xff]  ;;  %v3807_v36 = vcombine.low %v583_v23, %v587_v32  ;;  %v3816_v38 = vcombine.high %v591_v30, %v595_v31 }
 0x17d   : > { %v3818_v39 = vcombine.high %v592_v33, %v596_v35  ;;  %v3817_v46 = vcombine.low %v592_v33, %v596_v35 }
 0x17f   : > { %3089 = vmatpush1.bf16.msra.mxu0 %v3751_v42  ;;  %3253 = vmatpush1.bf16.msra.mxu1 %v3753_v43  ;;  %v603_v42 = vld [vmem:[%s4005_s21 + $0xc30] sm:$0xff]  ;;  %v600_v43 = vld [vmem:[%s4005_s21 + $0xc18] sm:$0xff] }
 0x180   : > { %3090 = vmatprep.subr.bf16.mxu0 %v3760_v44  ;;  %3254 = vmatprep.subr.bf16.mxu1 %v3762_v45  ;;  %v604_v44 = vld [vmem:[%s4005_s21 + $0xc38] sm:$0xff]  ;;  %v3815_v45 = vcombine.low %v591_v30, %v595_v31  ;;  %v3824_v47 = vcombine.high %v599_v41, %v603_v42 }
 0x181   : > { %v3826_v26 = vcombine.high %v600_v43, %v604_v44  ;;  %v3825_v54 = vcombine.low %v600_v43, %v604_v44 }
 0x183   : > { %3091 = vmatpush1.bf16.msra.mxu0 %v3759_v50  ;;  %3255 = vmatpush1.bf16.msra.mxu1 %v3761_v52  ;;  %v611_v50 = vld [vmem:[%s4005_s21 + $0xc70] sm:$0xff]  ;;  %v608_v52 = vld [vmem:[%s4005_s21 + $0xc58] sm:$0xff] }
 0x184   : > { %3092 = vmatprep.subr.bf16.mxu0 %v3768_v53  ;;  %3256 = vmatprep.subr.bf16.mxu1 %v3770_v10  ;;  %v612_v53 = vld [vmem:[%s4005_s21 + $0xc78] sm:$0xff]  ;;  %v3823_v10 = vcombine.low %v599_v41, %v603_v42  ;;  %v3832_v55 = vcombine.high %v607_v48, %v611_v50  ;;  %v3831_v57 = vcombine.low %v607_v48, %v611_v50 }
 0x185   : > { %v3834_v56 = vcombine.high %v608_v52, %v612_v53 }
 0x187   : > { %3093 = vmatpush1.bf16.msra.mxu0 %v3767_v58  ;;  %3257 = vmatpush1.bf16.msra.mxu1 %v3769_v59  ;;  %v3833_v58 = vcombine.low %v608_v52, %v612_v53  ;;  %v617_v59 = vpop.permute.xlu0 %616 }
 0x188   : > { %3094 = vmatprep.subr.bf16.mxu0 %v3776_v60  ;;  %3258 = vmatprep.subr.bf16.mxu1 %v3778_v61 }
 0x18b   : > { %3095 = vmatpush1.bf16.msra.mxu0 %v3775_v0  ;;  %3259 = vmatpush1.bf16.msra.mxu1 %v3777_v1 }
 0x18c   : > { %3096 = vmatprep.subr.bf16.mxu0 %v3784_v2  ;;  %3260 = vmatprep.subr.bf16.mxu1 %v3786_v3 }
 0x18f   : > { %3097 = vmatpush1.bf16.msra.mxu0 %v3783_v9  ;;  %3261 = vmatpush1.bf16.msra.mxu1 %v3785_v11 }
 0x190   : > { %3098 = vmatprep.subr.bf16.mxu0 %v3792_v12  ;;  %3262 = vmatprep.subr.bf16.mxu1 %v3794_v13 }
 0x193   : > { %3099 = vmatpush1.bf16.msra.mxu0 %v3791_v19  ;;  %3263 = vmatpush1.bf16.msra.mxu1 %v3793_v20 }
 0x194   : > { %3100 = vmatprep.subr.bf16.mxu0 %v3800_v21  ;;  %3264 = vmatprep.subr.bf16.mxu1 %v3802_v22 }
 0x197   : > { %3101 = vmatpush1.bf16.msra.mxu0 %v3799_v27  ;;  %3265 = vmatpush1.bf16.msra.mxu1 %v3801_v28 }
 0x198   : > { %3102 = vmatprep.subr.bf16.mxu0 %v3808_v6  ;;  %3266 = vmatprep.subr.bf16.mxu1 %v3810_v29 }
 0x19b   : > { %3103 = vmatpush1.bf16.msra.mxu0 %v3807_v36  ;;  %3267 = vmatpush1.bf16.msra.mxu1 %v3809_v37 }
 0x19c   : > { %3104 = vmatprep.subr.bf16.mxu0 %v3816_v38  ;;  %3268 = vmatprep.subr.bf16.mxu1 %v3818_v39 }
 0x19f   : > { %3105 = vmatpush1.bf16.msra.mxu0 %v3815_v45  ;;  %3269 = vmatpush1.bf16.msra.mxu1 %v3817_v46 }
 0x1a0   : > { %3115 = vmatprep.subr.bf16.mxu0 %v3824_v47  ;;  %3279 = vmatprep.subr.bf16.mxu1 %v3826_v26 }
 0x1a2   : > { %3107 = vmatmul.mubr.bf16.vlgmr.msra.gmra.mrb[4].mxu0 %v4172_v40  ;;  %3271 = vmatmul.mubr.bf16.vlgmr.msra.gmra.mrb[4].mxu1 %v4172_v40 }
 0x1a3   : > { %3116 = vmatpush1.bf16.msra.mxu0 %v3823_v10  ;;  %3280 = vmatpush1.bf16.msra.mxu1 %v3825_v54 }
 0x1a4   : > { %3117 = vmatprep.subr.bf16.mxu0 %v3832_v55  ;;  %3281 = vmatprep.subr.bf16.mxu1 %v3834_v56 }
 0x1a5   : > { %3147 = vmatprep.mubr.bf16.mxu0 %v3953_v51  ;;  %3311 = vmatprep.mubr.bf16.mxu1 %v3953_v51 }
 0x1a7   : > { %3118 = vmatpush1.bf16.msra.mxu0 %v3831_v57  ;;  %3282 = vmatpush1.bf16.msra.mxu1 %v3833_v58 }
 0x1ae   : > { %3837 = vmatmul.mubr.msk.bf16.vlgmr.msra.gmra.mrb[4].mxu0 %vm2660_vm0, %v4264_v18  ;;  %3838 = vmatmul.mubr.msk.bf16.vlgmr.msra.gmra.mrb[4].mxu1 %vm2660_vm0, %v4264_v18 }
 0x1b5   : > { %v2821_v40 = vpop.f32.mrb[0].mxu0  ;;  %v2985_v61 = vpop.f32.mrb[0].mxu1 }
 0x1b6   : > { %v3842_v60 = vadd.f32 %v2821_v40, %v617_v59  ;;  %v2823_v34 = vpop.f32.mrb[1].mxu0  ;;  %v3844_v25 = vadd.f32 %v2985_v61, %v617_v59  ;;  %v2987_v63 = vpop.f32.mrb[1].mxu1 }
 0x1b7   : > { %v3843_v62 = vadd.f32 %v2823_v34, %v617_v59  ;;  %v2825_v0 = vpop.f32.mrb[2].mxu0  ;;  %v3845_v51 = vadd.f32 %v2987_v63, %v617_v59  ;;  %v2989_v1 = vpop.f32.mrb[2].mxu1 }
 0x1b8   : > { %v2826_v2 = vpop.f32.mrb[3].mxu0  ;;  %v2990_v4 = vpop.f32.mrb[3].mxu1 }
 0x1b9   : > { %v3328_v3 = vcombine.low %v3842_v60, %v3843_v62  ;;  %v3329_v18 = vcombine.low %v3844_v25, %v3845_v51 }
 0x1bb   : > { %3336 = vst [vmem:[%s208_s29] sm:$0x77] %v3328_v3  ;;  %3337 = vst [vmem:[%s208_s29 + $0x8] sm:$0x77] %v3329_v18 }
 0x281   : > { %v3149_v7 = vpop.f32.mrb[4].mxu0  ;;  %v3313_v8 = vpop.f32.mrb[4].mxu1 }
 0x282   : > { %v3846_v49 = vadd.f32 %v3149_v7, %v617_v59  ;;  %v3151_v9 = vpop.f32.mrb[5].mxu0  ;;  %v3848_v11 = vadd.f32 %v3313_v8, %v617_v59  ;;  %v3315_v13 = vpop.f32.mrb[5].mxu1 }
 0x283   : > { %v3847_v12 = vadd.f32 %v3151_v9, %v617_v59  ;;  %v3153_v14 = vpop.f32.mrb[6].mxu0  ;;  %v3849_v15 = vadd.f32 %v3315_v13, %v617_v59  ;;  %v3317_v16 = vpop.f32.mrb[6].mxu1 }
 0x284   : > { %v3154_v17 = vpop.f32.mrb[7].mxu0  ;;  %v3318_v20 = vpop.f32.mrb[7].mxu1 }
 0x285   : > { %v3330_v19 = vcombine.low %v3846_v49, %v3847_v12  ;;  %v3331_v21 = vcombine.low %v3848_v11, %v3849_v15 }
 0x287   : > { %3338 = vst [vmem:[%s208_s29 + $0x10] sm:$0x77] %v3330_v19  ;;  %3339 = vst [vmem:[%s208_s29 + $0x18] sm:$0x77] %v3331_v21 }
 0x288 PF: > { %s13_s14 = sadd.s32 1, %s3950_s14   ;;  %s4499_s12 = smov %s3946_s13 }
 0x289   : > { %p10_p5 = scmp.ge.s32.totalorder %s13_s14, 4   ;;  %s4500_s13 = smov %s4502_s15 }
 0x28b   :  { %12 = sbr.rel (!%p10_p5) target bundleno = 2 (0x2), region = 62 }

</bundles_post_ra>
